<compile_context>
chip_gen: v7x
topology: tpu7x:2x2x1
jax: 0.10.0
libtpu: 0.0.40
codegen_flags: <defaults>
</compile_context>

<pallas_src>
import math

import jax
import jax.numpy as jnp
import numpy as np
from jax.experimental import pallas as pl
from jax.experimental.pallas import tpu as pltpu


def _rope3d_kernel(tab_ref, x_ref, o_ref):
    # tab_ref: (4, L)   rows 0..2 = coordinate-masked per-lane freqs, row 3 = +pi/2 on cos lanes
    # x_ref:   (TN, 3)  flattened (batch*point, xyz) coordinates for this tile
    # o_ref:   (TN, L)  L = 2*feature_dim, lanes interleaved [cos f, sin f] per feature
    x = x_ref[...].astype(jnp.float32)
    fx = tab_ref[0:1, :]                          # (1, L)
    fy = tab_ref[1:2, :]
    fz = tab_ref[2:3, :]
    off = tab_ref[3:4, :]
    # (TN,1) * (1,L) broadcasting multiplies; exactly one of fx/fy/fz is nonzero per lane.
    phase = x[:, 0:1] * fx + x[:, 1:2] * fy + x[:, 2:3] * fz + off
    # cos lanes carry a baked-in +pi/2: one sin evaluation serves both channels.
    o_ref[...] = jnp.sin(phase).astype(o_ref.dtype)


def _build_lane_table(feature_dim: int) -> np.ndarray:
    """(4, 2*feature_dim) table: rows 0..2 = masked freqs per coordinate, row 3 = cos offset."""
    f3 = feature_dim // 3
    L = 2 * feature_dim
    div_term = np.exp(np.arange(0, f3, 2, dtype=np.float32) * (-math.log(10000.0) / f3))
    lane = np.arange(L)
    feat = lane // 2                      # feature index f in [0, feature_dim)
    chan = lane % 2                       # 0 = cos, 1 = sin
    coord = feat // f3                    # 0=x, 1=y, 2=z
    freq = div_term[(feat % f3) // 2]     # duplicated-pair frequency per feature
    tab = np.zeros((4, L), dtype=np.float32)
    for i in range(3):
        tab[i] = np.where(coord == i, freq, 0.0).astype(np.float32)
    tab[3] = np.where(chan == 0, np.float32(math.pi / 2.0), np.float32(0.0))
    return tab


def _choose_block_rows(M: int, L: int, out_bytes: int) -> int:
    if M <= 128:
        return M
    # Per-row VMEM: double-buffered output + double-buffered (lane-padded) input + ~3 temps.
    per_row = 2 * L * out_bytes + 2 * 128 * 4 + 3 * L * 4
    budget = 16 * 1024 * 1024
    tn = min(budget // per_row, 1024, M)
    tn = max(128, tn - tn % 128)
    # Prefer >= 8 grid steps so v7x's two TensorCores and the DMA pipeline stay busy.
    while tn > 128 and -(-M // tn) < 8:
        tn -= 128
    return tn


def rotary_position_encoding_3d(xyz: jax.Array, feature_dim: int, *,
                                block_rows=None, out_dtype=jnp.float32) -> jax.Array:
    """Pallas TPU forward of RotaryPositionEncoding3D: (B, N, 3) -> (B, N, feature_dim, 2)."""
    B, N, C = xyz.shape
    assert C == 3, "RotaryPositionEncoding3D expects (B, N, 3) positions"
    assert feature_dim % 6 == 0, "feature_dim must be divisible by 6"
    L = 2 * feature_dim
    M = B * N

    tab = jnp.asarray(_build_lane_table(feature_dim))      # (4, L)
    x_flat = xyz.reshape(M, 3)                              # free row-major view

    out_bytes = jnp.dtype(out_dtype).itemsize
    tn = _choose_block_rows(M, L, out_bytes) if block_rows is None else min(int(block_rows), M)
    assert tn == M or tn % 128 == 0, "block_rows must be a multiple of 128 (or cover all rows)"
    grid = (pl.cdiv(M, tn),)

    out = pl.pallas_call(
        _rope3d_kernel,
        out_shape=jax.ShapeDtypeStruct((M, L), out_dtype),
        grid=grid,
        in_specs=[
            pl.BlockSpec((4, L), lambda i: (0, 0)),         # shared per-lane freq/offset table
            pl.BlockSpec((tn, 3), lambda i: (i, 0)),        # coordinate rows for this tile
        ],
        out_specs=pl.BlockSpec((tn, L), lambda i: (i, 0)),  # lane-dense interleaved cos/sin
        compiler_params=pltpu.CompilerParams(
            dimension_semantics=("parallel",),
            vmem_limit_bytes=32 * 1024 * 1024,
        ),
    )(tab, x_flat)

    # Row-major reshape back to the PyTorch output layout (element order unchanged -> free view).
    return out.reshape(B, N, feature_dim, 2)


def _reference(xyz: jax.Array, feature_dim: int) -> jax.Array:
    # Pure-JAX reference mirroring the PyTorch forward exactly.
    B, N, _ = xyz.shape
    f3 = feature_dim // 3
    div_term = jnp.exp(jnp.arange(0, f3, 2, dtype=jnp.float32)
                       * (-math.log(10000.0) / f3)).reshape(1, 1, -1)

    def dup(f):  # torch.stack([f, f], -1).view(B, N, -1)
        return jnp.stack([f, f], axis=-1).reshape(B, N, -1)

    x, y, z = xyz[..., 0:1], xyz[..., 1:2], xyz[..., 2:3]
    sinx, cosx = dup(jnp.sin(x * div_term)), dup(jnp.cos(x * div_term))
    siny, cosy = dup(jnp.sin(y * div_term)), dup(jnp.cos(y * div_term))
    sinz, cosz = dup(jnp.sin(z * div_term)), dup(jnp.cos(z * div_term))
    cos_pos = jnp.concatenate([cosx, cosy, cosz], axis=-1)
    sin_pos = jnp.concatenate([sinx, siny, sinz], axis=-1)
    return jnp.stack([cos_pos, sin_pos], axis=-1)            # (B, N, feature_dim, 2)


if __name__ == "__main__":
    key = jax.random.PRNGKey(0)
    k1, k2 = jax.random.split(key)

    # Main check (multiple full 128-row tiles).
    B, N, feature_dim = 2, 256, 96                           # feature_dim % 6 == 0
    xyz = jax.random.normal(k1, (B, N, 3), dtype=jnp.float32)
    out = jax.block_until_ready(rotary_position_encoding_3d(xyz, feature_dim))
    ref = _reference(xyz, feature_dim)
    assert out.shape == (B, N, feature_dim, 2), (out.shape, (B, N, feature_dim, 2))
    assert jnp.allclose(out, ref, atol=1e-4, rtol=1e-4), "mismatch vs reference"

    # Ragged check: row count not a multiple of the tile -> partial boundary tile writeback.
    B2, N2, fd2 = 1, 200, 48
    xyz2 = jax.random.normal(k2, (B2, N2, 3), dtype=jnp.float32)
    out2 = jax.block_until_ready(rotary_position_encoding_3d(xyz2, fd2))
    ref2 = _reference(xyz2, fd2)
    assert out2.shape == (B2, N2, fd2, 2)
    assert jnp.allclose(out2, ref2, atol=1e-4, rtol=1e-4), "mismatch vs reference (ragged)"

    print("KERNEL_OK")
</pallas_src>

<mosaic_0001>
module attributes {stable_mosaic.version = 11 : i64} {
  func.func @_rope3d_kernel(%arg0: i32, %arg1: memref<4x192xf32, #tpu.memory_space<vmem>>, %arg2: memref<128x3xf32, #tpu.memory_space<vmem>>, %arg3: memref<128x192xf32, #tpu.memory_space<vmem>>) attributes {dimension_semantics = [#tpu.dimension_semantics<parallel>], iteration_bounds = array<i64: 4>, scalar_prefetch = 0 : i64, scratch_operands = 0 : i64, tpu.core_type = #tpu.core_type<tc>, window_params = [{pipeline_mode = #tpu.pipeline_mode<synchronous>, transform_indices = @transform_0, window_bounds = array<i64: 4, 192>}, {transform_indices = @transform_1, window_bounds = array<i64: 128, 3>}, {transform_indices = @transform_2, window_bounds = array<i64: 128, 192>}]} {
    %c0 = arith.constant 0 : index
    %c0_0 = arith.constant 0 : index
    %0 = vector.load %arg2[%c0, %c0_0] : memref<128x3xf32, #tpu.memory_space<vmem>>, vector<128x3xf32>
    %c0_1 = arith.constant 0 : index
    %c0_2 = arith.constant 0 : index
    %1 = vector.load %arg1[%c0_1, %c0_2] : memref<4x192xf32, #tpu.memory_space<vmem>>, vector<1x192xf32>
    %c1 = arith.constant 1 : index
    %c0_3 = arith.constant 0 : index
    %2 = vector.load %arg1[%c1, %c0_3] : memref<4x192xf32, #tpu.memory_space<vmem>>, vector<1x192xf32>
    %c2 = arith.constant 2 : index
    %c0_4 = arith.constant 0 : index
    %3 = vector.load %arg1[%c2, %c0_4] : memref<4x192xf32, #tpu.memory_space<vmem>>, vector<1x192xf32>
    %c3 = arith.constant 3 : index
    %c0_5 = arith.constant 0 : index
    %4 = vector.load %arg1[%c3, %c0_5] : memref<4x192xf32, #tpu.memory_space<vmem>>, vector<1x192xf32>
    %5 = vector.extract_strided_slice %0 {offsets = [0, 0], sizes = [128, 1], strides = [1, 1]} : vector<128x3xf32> to vector<128x1xf32>
    %6 = vector.broadcast %5 : vector<128x1xf32> to vector<128x192xf32>
    %7 = vector.broadcast %1 : vector<1x192xf32> to vector<128x192xf32>
    %8 = arith.mulf %6, %7 : vector<128x192xf32>
    %9 = vector.extract_strided_slice %0 {offsets = [0, 1], sizes = [128, 1], strides = [1, 1]} : vector<128x3xf32> to vector<128x1xf32>
    %10 = vector.broadcast %9 : vector<128x1xf32> to vector<128x192xf32>
    %11 = vector.broadcast %2 : vector<1x192xf32> to vector<128x192xf32>
    %12 = arith.mulf %10, %11 : vector<128x192xf32>
    %13 = arith.addf %8, %12 : vector<128x192xf32>
    %14 = vector.extract_strided_slice %0 {offsets = [0, 2], sizes = [128, 1], strides = [1, 1]} : vector<128x3xf32> to vector<128x1xf32>
    %15 = vector.broadcast %14 : vector<128x1xf32> to vector<128x192xf32>
    %16 = vector.broadcast %3 : vector<1x192xf32> to vector<128x192xf32>
    %17 = arith.mulf %15, %16 : vector<128x192xf32>
    %18 = arith.addf %13, %17 : vector<128x192xf32>
    %19 = vector.broadcast %4 : vector<1x192xf32> to vector<128x192xf32>
    %20 = arith.addf %18, %19 : vector<128x192xf32>
    %21 = math.sin %20 : vector<128x192xf32>
    %c0_6 = arith.constant 0 : index
    %c0_7 = arith.constant 0 : index
    %22 = vector.load %arg3[%c0_6, %c0_7] : memref<128x192xf32, #tpu.memory_space<vmem>>, vector<128x192xf32>
    tpu.vector_store %arg3[%c0_6, %c0_7], %21 {strides = array<i32>} : memref<128x192xf32, #tpu.memory_space<vmem>>, vector<128x192xf32>,
    return
  }
  func.func @transform_0(%arg0: i32) -> (i32, i32) {
    %c0_i32 = arith.constant 0 : i32
    %c0_i32_0 = arith.constant 0 : i32
    %c0_i32_1 = arith.constant 0 : i32
    return %c0_i32, %c0_i32_0 : i32, i32
  }
  func.func @transform_1(%arg0: i32) -> (i32, i32) {
    %c0_i32 = arith.constant 0 : i32
    %c0_i32_0 = arith.constant 0 : i32
    return %arg0, %c0_i32 : i32, i32
  }
  func.func @transform_2(%arg0: i32) -> (i32, i32) {
    %c0_i32 = arith.constant 0 : i32
    %c0_i32_0 = arith.constant 0 : i32
    return %arg0, %c0_i32 : i32, i32
  }
}

</mosaic_0001>

<bundles_post_ra>
// kernel: tpu_custom_call.1
= control target key start
LH: loop header
LB: loop body
LE: loop exit
PB: predicated region body
PF: predicated region fallthrough
CT: control target
= control target key end

     0   :  { %s4490_s9 = smov 0   ;;  %s7486_s0 = inlined_call_operand.vmem [shape: f32[4,192], index: 0, kind: input, shape index: {}]   ;;  %s7487_s1 = inlined_call_operand.vmem [shape: f32[512,3], index: 1, kind: input, shape index: {}]   ;;  %s7488_s2 = inlined_call_operand.vmem [shape: f32[512,192], index: 2, kind: output, shape index: {}]  }
   0x1 LB: > { %s4035_s10 = sadd.s32 4294967295, %s4464_s9   ;;  %p4039_p0 = scmp.ge.s32.totalorder %s4464_s9, 1  ;;  %s4464_s9 = sphi %s4490_s9, %s12_s9  }
   0x2   : > { %p113_p1 = scmp.lt.s32.totalorder %s4464_s9, 5 }
   0x4   : > { %p114_p2 = pnand %p4039_p0, %p113_p1 }
   0x6   : > { %117 = sbr.rel (%p114_p2) target bundleno = 1066 (0x42a), region = 28 }
   0xd   : > { %s4040_s11 = sshll.u32 %s4035_s10, 4  ;;  %v4466_v0 = vmov 0   ;;  %v4467_v17 = vmov 1   ;;  %v4468_v18 = vmov 2   ;;  %v253_v19 = vlaneseq }
   0xe   : > { %4325 = vset.pattern.permute.xlu1 %v4466_v0  ;;  %4324 = vset.pattern.permute.xlu0 %v4466_v0  ;;  %p137_p3 = scmp.lt.s32.totalorder %s4040_s11, 63  ;;  %v165_v23 = vld [vmem:[%s7486_s0] ss:$4 sm:$0x3] }
   0xf   : > { %v254_v20 = vshrl.u32 %v253_v19, 7  ;;  %v4045_v0 = vld [vmem:[%s7486_s0 + $0x1] ss:$4 sm:$0x3] }
  0x10   : > { %s7607_s11 = smov (!%p137_p3, %s4040_s11), 63 }
  0x11   : > { %s4041_s12 = sshll.u32 %s7607_s11, 3  ;;  %v4504_v21 = vsub.s32 0, %v254_v20  ;;  %v4506_v22 = vsub.s32 1, %v254_v20  ;;  %s4178_s24 = sshll.u32 %s7607_s11, 4 }
  0x12   : > { %s140_s15 = scalar_lea.vmem %s7487_s1, %s4041_s12  ;;  %s5029_s27 = scalar_lea.vmem %s7488_s2, %s4178_s24 }
  0x13   : > { %v151_v1 = vld [vmem:[%s140_s15 + $0x10] sm:$0xff]  ;;  %v149_v2 = vld [vmem:[%s140_s15] sm:$0xff]  ;;  %v152_v3 = vld [vmem:[%s140_s15 + $0x18] sm:$0xff]  ;;  %v4512_v24 = vrot.slane %v165_v23, %v4504_v21  ;;  %v4515_v25 = vrot.slane %v165_v23, %v4506_v22 }
  0x14   : > { %184 = vperm.xlu1 %4325, %v151_v1   ;;  %174 = vperm.xlu0 %4324, %v149_v2   ;;  %v150_v4 = vld [vmem:[%s140_s15 + $0x8] sm:$0xff]  ;;  %v153_v6 = vld [vmem:[%s140_s15 + $0x20] sm:$0xff]  ;;  %v156_v7 = vld [vmem:[%s140_s15 + $0x38] sm:$0xff] }
  0x15   : > { %v154_v5 = vld [vmem:[%s140_s15 + $0x28] sm:$0xff]  ;;  %v155_v8 = vld [vmem:[%s140_s15 + $0x30] sm:$0xff]  ;;  %v157_v10 = vld [vmem:[%s140_s15 + $0x40] sm:$0xff] }
  0x16   : > { %v158_v9 = vld [vmem:[%s140_s15 + $0x48] sm:$0xff]  ;;  %v160_v11 = vld [vmem:[%s140_s15 + $0x58] sm:$0xff]  ;;  %v159_v12 = vld [vmem:[%s140_s15 + $0x50] sm:$0xff] }
  0x17   : > { %v162_v13 = vld [vmem:[%s140_s15 + $0x68] sm:$0xff]  ;;  %v161_v14 = vld [vmem:[%s140_s15 + $0x60] sm:$0xff]  ;;  %v164_v15 = vld [vmem:[%s140_s15 + $0x78] sm:$0xff] }
  0x18   : > { %189 = vperm.xlu1 %4325, %v152_v3   ;;  %179 = vperm.xlu0 %4324, %v150_v4   ;;  %v163_v16 = vld [vmem:[%s140_s15 + $0x70] sm:$0xff] }
  0x1c   : > { %199 = vperm.xlu1 %4325, %v154_v5   ;;  %194 = vperm.xlu0 %4324, %v153_v6  }
  0x20   : > { %209 = vperm.xlu1 %4325, %v156_v7   ;;  %204 = vperm.xlu0 %4324, %v155_v8  }
  0x24   : > { %219 = vperm.xlu1 %4325, %v158_v9   ;;  %214 = vperm.xlu0 %4324, %v157_v10  }
  0x28   : > { %229 = vperm.xlu1 %4325, %v160_v11   ;;  %224 = vperm.xlu0 %4324, %v159_v12  }
  0x2c   : > { %239 = vperm.xlu1 %4325, %v162_v13   ;;  %234 = vperm.xlu0 %4324, %v161_v14  }
  0x30   : > { %249 = vperm.xlu1 %4325, %v164_v15   ;;  %244 = vperm.xlu0 %4324, %v163_v16  }
  0x34   : > { %4327 = vset.pattern.permute.xlu1 %v4467_v17  ;;  %4326 = vset.pattern.permute.xlu0 %v4467_v17 }
  0x35   : > { %300 = vperm.xlu1 %4327, %v150_v4   ;;  %296 = vperm.xlu0 %4326, %v149_v2  }
  0x39   : > { %304 = vperm.xlu1 %4327, %v151_v1   ;;  %308 = vperm.xlu0 %4326, %v152_v3  }
  0x3d   : > { %312 = vperm.xlu1 %4327, %v153_v6   ;;  %316 = vperm.xlu0 %4326, %v154_v5  }
  0x41   : > { %320 = vperm.xlu1 %4327, %v155_v8   ;;  %324 = vperm.xlu0 %4326, %v156_v7  }
  0x45   : > { %328 = vperm.xlu1 %4327, %v157_v10   ;;  %332 = vperm.xlu0 %4326, %v158_v9  }
  0x49   : > { %336 = vperm.xlu1 %4327, %v159_v12   ;;  %340 = vperm.xlu0 %4326, %v160_v11  }
  0x4d   : > { %344 = vperm.xlu1 %4327, %v161_v14   ;;  %348 = vperm.xlu0 %4326, %v162_v13  }
  0x51   : > { %352 = vperm.xlu1 %4327, %v163_v16   ;;  %356 = vperm.xlu0 %4326, %v164_v15  }
  0x55   : > { %4328 = vset.pattern.permute.xlu1 %v4468_v18  ;;  %4329 = vset.pattern.permute.xlu0 %v4468_v18 }
  0x56   : > { %435 = vperm.xlu1 %4328, %v149_v2   ;;  %439 = vperm.xlu0 %4329, %v150_v4  }
  0x5a   : > { %443 = vperm.xlu1 %4328, %v151_v1   ;;  %451 = vperm.xlu0 %4329, %v153_v6  }
  0x5e   : > { %447 = vperm.xlu1 %4328, %v152_v3   ;;  %459 = vperm.xlu0 %4329, %v155_v8  }
  0x62   : > { %455 = vperm.xlu1 %4328, %v154_v5   ;;  %467 = vperm.xlu0 %4329, %v157_v10  }
  0x66   : > { %463 = vperm.xlu1 %4328, %v156_v7   ;;  %475 = vperm.xlu0 %4329, %v159_v12   ;;  %v4589_v7 = vrot.slane %v4045_v0, %v4506_v22  ;;  %v4600_v12 = vrot.slane %v4045_v0, %v4504_v21 }
  0x6a   : > { %471 = vperm.xlu1 %4328, %v158_v9   ;;  %483 = vperm.xlu0 %4329, %v161_v14  }
  0x6e   : > { %479 = vperm.xlu1 %4328, %v160_v11   ;;  %491 = vperm.xlu0 %4329, %v163_v16  }
  0x72   : > { %487 = vperm.xlu1 %4328, %v162_v13  }
  0x76   : > { %495 = vperm.xlu1 %4328, %v164_v15  }
  0x93   : > { %v185_v26 = vpop.permute.xlu1 %184  ;;  %v4517_v27 = vpop.permute.xlu0 %174 }
  0x94   : > { %v267_v28 = vmul.f32 %v4512_v24, %v185_v26  ;;  %v268_v29 = vmul.f32 %v4515_v25, %v185_v26 }
  0x97   : > { %v190_v30 = vpop.permute.xlu1 %189  ;;  %v4521_v31 = vpop.permute.xlu0 %179 }
  0x98   : > { %v269_v32 = vmul.f32 %v4512_v24, %v190_v30  ;;  %v270_v33 = vmul.f32 %v4515_v25, %v190_v30  ;;  %v266_v10 = vmul.f32 %v4515_v25, %v4521_v31 }
  0x9b   : > { %v200_v34 = vpop.permute.xlu1 %199  ;;  %v195_v35 = vpop.permute.xlu0 %194 }
  0x9c   : > { %v273_v36 = vmul.f32 %v4512_v24, %v200_v34  ;;  %v274_v37 = vmul.f32 %v4515_v25, %v200_v34  ;;  %v271_v38 = vmul.f32 %v4512_v24, %v195_v35  ;;  %v272_v39 = vmul.f32 %v4515_v25, %v195_v35 }
  0x9f   : > { %v210_v40 = vpop.permute.xlu1 %209  ;;  %v205_v41 = vpop.permute.xlu0 %204 }
  0xa0   : > { %v4530_v42 = vmul.f32 %v4512_v24, %v210_v40  ;;  %v4533_v43 = vmul.f32 %v4515_v25, %v210_v40  ;;  %v275_v44 = vmul.f32 %v4512_v24, %v205_v41  ;;  %v276_v45 = vmul.f32 %v4515_v25, %v205_v41 }
  0xa3   : > { %v220_v46 = vpop.permute.xlu1 %219  ;;  %v215_v47 = vpop.permute.xlu0 %214 }
  0xa4   : > { %v4538_v48 = vmul.f32 %v4512_v24, %v220_v46  ;;  %v4541_v49 = vmul.f32 %v4515_v25, %v220_v46  ;;  %v4544_v50 = vmul.f32 %v4512_v24, %v215_v47  ;;  %v4547_v51 = vmul.f32 %v4515_v25, %v215_v47 }
  0xa7   : > { %v230_v52 = vpop.permute.xlu1 %229  ;;  %v225_v53 = vpop.permute.xlu0 %224 }
  0xa8   : > { %v4550_v54 = vmul.f32 %v4512_v24, %v230_v52  ;;  %v4553_v55 = vmul.f32 %v4515_v25, %v230_v52  ;;  %v4556_v56 = vmul.f32 %v4512_v24, %v225_v53  ;;  %v4559_v57 = vmul.f32 %v4515_v25, %v225_v53 }
  0xab   : > { %v240_v58 = vpop.permute.xlu1 %239  ;;  %v235_v59 = vpop.permute.xlu0 %234 }
  0xac   : > { %v4562_v60 = vmul.f32 %v4512_v24, %v240_v58  ;;  %v4565_v61 = vmul.f32 %v4515_v25, %v240_v58  ;;  %v4568_v62 = vmul.f32 %v4512_v24, %v235_v59  ;;  %v4571_v63 = vmul.f32 %v4515_v25, %v235_v59 }
  0xaf   : > { %v250_v1 = vpop.permute.xlu1 %249  ;;  %v245_v2 = vpop.permute.xlu0 %244 }
  0xb0   : > { %v4577_v3 = vmul.f32 %v4512_v24, %v250_v1  ;;  %v4580_v4 = vmul.f32 %v4515_v25, %v250_v1  ;;  %v4583_v5 = vmul.f32 %v4512_v24, %v245_v2  ;;  %v4586_v6 = vmul.f32 %v4515_v25, %v245_v2 }
  0xb4   : > { %v4591_v8 = vpop.permute.xlu1 %300  ;;  %v4593_v9 = vpop.permute.xlu0 %296 }
  0xb5   : > { %v373_v11 = vmul.f32 %v4589_v7, %v4591_v8 }
  0xb7   : > { %v4602_v13 = vadd.f32 %v373_v11, %v266_v10 }
  0xb8   : > { %v305_v14 = vpop.permute.xlu1 %304  ;;  %v309_v15 = vpop.permute.xlu0 %308 }
  0xb9   : > { %v374_v16 = vmul.f32 %v4600_v12, %v305_v14  ;;  %v375_v17 = vmul.f32 %v4589_v7, %v305_v14  ;;  %v376_v18 = vmul.f32 %v4600_v12, %v309_v15  ;;  %v377_v19 = vmul.f32 %v4589_v7, %v309_v15 }
  0xbb   : > { %v4608_v20 = vadd.f32 %v374_v16, %v267_v28  ;;  %v4610_v23 = vadd.f32 %v375_v17, %v268_v29  ;;  %v4612_v26 = vadd.f32 %v376_v18, %v269_v32  ;;  %v4614_v30 = vadd.f32 %v377_v19, %v270_v33 }
  0xbc   : > { %v313_v34 = vpop.permute.xlu1 %312  ;;  %v317_v35 = vpop.permute.xlu0 %316 }
  0xbd   : > { %v378_v40 = vmul.f32 %v4600_v12, %v313_v34  ;;  %v379_v41 = vmul.f32 %v4589_v7, %v313_v34  ;;  %v380_v46 = vmul.f32 %v4600_v12, %v317_v35  ;;  %v381_v47 = vmul.f32 %v4589_v7, %v317_v35 }
  0xbf   : > { %v4620_v52 = vadd.f32 %v378_v40, %v271_v38  ;;  %v4622_v28 = vadd.f32 %v379_v41, %v272_v39  ;;  %v4624_v29 = vadd.f32 %v380_v46, %v273_v36  ;;  %v4626_v32 = vadd.f32 %v381_v47, %v274_v37 }
  0xc0   : > { %v321_v33 = vpop.permute.xlu1 %320  ;;  %v325_v53 = vpop.permute.xlu0 %324 }
  0xc1   : > { %v382_v58 = vmul.f32 %v4600_v12, %v321_v33  ;;  %v383_v59 = vmul.f32 %v4589_v7, %v321_v33  ;;  %v384_v0 = vmul.f32 %v4600_v12, %v325_v53  ;;  %v385_v1 = vmul.f32 %v4589_v7, %v325_v53 }
  0xc3   : > { %v4632_v2 = vadd.f32 %v382_v58, %v275_v44  ;;  %v4634_v38 = vadd.f32 %v383_v59, %v276_v45  ;;  %v4637_v39 = vadd.f32 %v384_v0, %v4530_v42  ;;  %v4640_v36 = vadd.f32 %v385_v1, %v4533_v43 }
  0xc4   : > { %v329_v37 = vpop.permute.xlu1 %328  ;;  %v333_v10 = vpop.permute.xlu0 %332  ;;  %v372_v0 = vmul.f32 %v4600_v12, %v4591_v8  ;;  %v370_v1 = vmul.f32 %v4600_v12, %v4593_v9  ;;  %v265_v8 = vmul.f32 %v4512_v24, %v4521_v31  ;;  %v264_v31 = vmul.f32 %v4515_v25, %v4517_v27 }
  0xc5   : > { %7505 = vst [vmem:[#allocation2_spill] sm:$0xff] %v4640_v36  ;;  %v386_v11 = vmul.f32 %v4600_v12, %v329_v37  ;;  %v387_v14 = vmul.f32 %v4589_v7, %v329_v37  ;;  %v388_v15 = vmul.f32 %v4600_v12, %v333_v10  ;;  %v389_v16 = vmul.f32 %v4589_v7, %v333_v10 }
  0xc7   : > { %v4647_v44 = vadd.f32 %v386_v11, %v4544_v50  ;;  %v4650_v45 = vadd.f32 %v387_v14, %v4547_v51  ;;  %v4653_v42 = vadd.f32 %v388_v15, %v4538_v48  ;;  %v4656_v43 = vadd.f32 %v389_v16, %v4541_v49  ;;  %v4047_v16 = vld [vmem:[%s7486_s0 + $0x3] ss:$4 sm:$0x3] }
  0xc8   : > { %v337_v17 = vpop.permute.xlu1 %336  ;;  %v341_v18 = vpop.permute.xlu0 %340  ;;  %v263_v14 = vmul.f32 %v4512_v24, %v4517_v27  ;;  %v371_v15 = vmul.f32 %v4589_v7, %v4593_v9 }
  0xc9   : > { %7506 = vst [vmem:[#allocation3_spill] sm:$0xff] %v4653_v42  ;;  %7507 = vst [vmem:[#allocation4_spill] sm:$0xff] %v4656_v43  ;;  %v390_v19 = vmul.f32 %v4600_v12, %v337_v17  ;;  %v391_v34 = vmul.f32 %v4589_v7, %v337_v17  ;;  %v392_v35 = vmul.f32 %v4600_v12, %v341_v18 }
  0xca   : > { %v393_v50 = vmul.f32 %v4589_v7, %v341_v18  ;;  %v402_v9 = vadd.f32 %v370_v1, %v263_v14 }
  0xcb   : > { %v4663_v40 = vadd.f32 %v390_v19, %v4556_v56  ;;  %v4666_v51 = vadd.f32 %v391_v34, %v4559_v57  ;;  %v4669_v48 = vadd.f32 %v392_v35, %v4550_v54  ;;  %v4046_v57 = vld [vmem:[%s7486_s0 + $0x2] ss:$4 sm:$0x3]  ;;  %v4731_v34 = vrot.slane %v4047_v16, %v4504_v21 }
  0xcc   : > { %v4672_v49 = vadd.f32 %v393_v50, %v4553_v55  ;;  %v345_v41 = vpop.permute.xlu1 %344  ;;  %v349_v46 = vpop.permute.xlu0 %348  ;;  %v4714_v17 = vrot.slane %v4046_v57, %v4506_v22  ;;  %v403_v50 = vadd.f32 %v371_v15, %v264_v31 }
  0xcd   : > { %7508 = vst [vmem:[#allocation5_spill] sm:$0xff] %v4663_v40  ;;  %7509 = vst [vmem:[#allocation6_spill] sm:$0xff] %v4666_v51  ;;  %v394_v47 = vmul.f32 %v4600_v12, %v345_v41  ;;  %v395_v33 = vmul.f32 %v4589_v7, %v345_v41  ;;  %v396_v53 = vmul.f32 %v4600_v12, %v349_v46 }
  0xce   : > { %7510 = vst [vmem:[#allocation7_spill] sm:$0xff] %v4669_v48  ;;  %7511 = vst [vmem:[#allocation8_spill] sm:$0xff] %v4672_v49  ;;  %v397_v56 = vmul.f32 %v4589_v7, %v349_v46 }
  0xcf   : > { %v4682_v54 = vadd.f32 %v394_v47, %v4568_v62  ;;  %v4685_v55 = vadd.f32 %v395_v33, %v4571_v63  ;;  %v4688_v58 = vadd.f32 %v396_v53, %v4562_v60  ;;  %v4698_v62 = vrot.slane %v4046_v57, %v4504_v21 }
  0xd0   : > { %v4691_v59 = vadd.f32 %v397_v56, %v4565_v61  ;;  %v353_v37 = vpop.permute.xlu1 %352  ;;  %v357_v10 = vpop.permute.xlu0 %356 }
  0xd1   : > { %7512 = vst [vmem:[#allocation9_spill] sm:$0xff] %v4682_v54  ;;  %7513 = vst [vmem:[#allocation10_spill] sm:$0xff] %v4685_v55  ;;  %v398_v63 = vmul.f32 %v4600_v12, %v353_v37  ;;  %v399_v11 = vmul.f32 %v4589_v7, %v353_v37  ;;  %v400_v60 = vmul.f32 %v4600_v12, %v357_v10 }
  0xd2   : > { %7514 = vst [vmem:[#allocation11_spill] sm:$0xff] %v4688_v58  ;;  %7515 = vst [vmem:[#allocation12_spill] sm:$0xff] %v4691_v59  ;;  %v401_v61 = vmul.f32 %v4589_v7, %v357_v10  ;;  %v404_v7 = vadd.f32 %v372_v0, %v265_v8 }
  0xd3   : > { %v4717_v12 = vadd.f32 %v398_v63, %v4583_v5  ;;  %v4720_v18 = vadd.f32 %v399_v11, %v4586_v6  ;;  %v4723_v19 = vadd.f32 %v400_v60, %v4577_v3  ;;  %v4734_v5 = vrot.slane %v4047_v16, %v4506_v22 }
  0xd4   : > { %v4726_v24 = vadd.f32 %v401_v61, %v4580_v4 }
  0xd5   : > { %7516 = vst [vmem:[#allocation13_spill] sm:$0xff] %v4717_v12  ;;  %7517 = vst [vmem:[#allocation14_spill] sm:$0xff] %v4720_v18  ;;  %v436_v35 = vpop.permute.xlu1 %435  ;;  %v440_v6 = vpop.permute.xlu0 %439 }
  0xd6   : > { %7518 = vst [vmem:[#allocation15_spill] sm:$0xff] %v4723_v19  ;;  %7519 = vst [vmem:[#allocation16_spill] sm:$0xff] %v4726_v24  ;;  %v509_v3 = vmul.f32 %v4698_v62, %v436_v35  ;;  %v510_v41 = vmul.f32 %v4714_v17, %v436_v35  ;;  %v511_v4 = vmul.f32 %v4698_v62, %v440_v6 }
  0xd7   : > { %v512_v37 = vmul.f32 %v4714_v17, %v440_v6 }
  0xd8   : > { %v541_v46 = vadd.f32 %v509_v3, %v402_v9  ;;  %v542_v47 = vadd.f32 %v510_v41, %v403_v50  ;;  %v543_v25 = vadd.f32 %v511_v4, %v404_v7 }
  0xd9   : > { %v544_v16 = vadd.f32 %v512_v37, %v4602_v13 }
  0xda   : > { %v4740_v27 = vadd.f32 %v4731_v34, %v541_v46  ;;  %v4743_v21 = vadd.f32 %v4734_v5, %v542_v47  ;;  %v4746_v22 = vadd.f32 %v4731_v34, %v543_v25 }
  0xdb   : > { %v4761_v4 = vadd.f32 %v4734_v5, %v544_v16 }
  0xdc   : > { %v7491_v33 = vand.u32 2147483647, %v4740_v27  ;;  %v619_v53 = vand.u32 2139095040, %v4740_v27  ;;  %v7490_v56 = vand.u32 2147483647, %v4743_v21  ;;  %v723_v57 = vand.u32 2139095040, %v4743_v21 }
  0xdd   : > { %v827_v11 = vand.u32 2139095040, %v4746_v22  ;;  %v7489_v9 = vand.u32 2147483647, %v4746_v22  ;;  %vm618_vm13 = vcmp.lt.s32.totalorder %v4740_v27, 0 }
  0xde   : > { %v620_v0 = vshrl.u32 %v619_v53, 23  ;;  %v623_v1 = vand.u32 8388607, %v7491_v33  ;;  %v724_v10 = vshrl.u32 %v723_v57, 23  ;;  %v727_v63 = vand.u32 8388607, %v7490_v56 }
  0xdf   : > { %v828_v14 = vshrl.u32 %v827_v11, 23  ;;  %v4769_v13 = vand.u32 8388607, %v7489_v9  ;;  %v7498_v57 = vmov 683565275  }
  0xe0   : > { %v4048_v60 = vadd.s32 4294967169, %v620_v0  ;;  %v4052_v61 = vadd.s32 4294967169, %v724_v10  ;;  %v624_v8 = vor.u32 8388608, %v623_v1  ;;  %v728_v31 = vor.u32 8388608, %v727_v63 }
  0xe1   : > { %v4056_v35 = vadd.s32 4294967169, %v828_v14  ;;  %v7496_v10 = vmov 2475754826   ;;  %v7492_v11 = vmov 2131351028  }
  0xe2   : > { %v626_v15 = vadd.s32 1, %v4048_v60  ;;  %v730_v7 = vadd.s32 1, %v4052_v61  ;;  %v4763_v46 = vshll.u32 %v624_v8, 8  ;;  %v4765_v47 = vshll.u32 %v728_v31, 8 }
  0xe3   : > { %v4771_v25 = vadd.s32 1, %v4056_v35  ;;  %v7494_v61 = vmov 2102212464   ;;  %v7500_v8 = vmov 920167782  }
  0xe4   : > { %vm627_vm0 = vcmp.gt.s32.totalorder %v626_v15, 0  ;;  %vm731_vm1 = vcmp.gt.s32.totalorder %v730_v7, 0 }
  0xe5   : > { %v628_v6 = vsel %vm627_vm0, %v626_v15, 0  ;;  %v732_v41 = vsel %vm731_vm1, %v730_v7, 0  ;;  %vm835_vm6 = vcmp.gt.s32.totalorder %v4771_v25, 0 }
  0xe6   : > { %v629_v50 = vshrl.u32 %v628_v6, 5  ;;  %v630_v3 = vand.u32 31, %v628_v6  ;;  %v4774_v1 = vshrl.u32 %v732_v41, 5  ;;  %v734_v37 = vand.u32 31, %v732_v41 }
  0xe7   : > { %v7502_v41 = vmov 1326507024  }
  0xe8   : > { %v631_v53 = vsub.s32 32, %v630_v3  ;;  %v633_v0 = vshll.u32 %v7498_v57, %v630_v3  ;;  %v636_v63 = vshll.u32 %v7496_v10, %v630_v3  ;;  %v639_v60 = vshll.u32 %v7492_v11, %v630_v3 }
  0xe9   : > { %v642_v14 = vshll.u32 %v7494_v61, %v630_v3  ;;  %v645_v15 = vshll.u32 %v7500_v8, %v630_v3  ;;  %vm648_vm2 = vcmp.lt.s32.totalorder %v629_v50, 1  ;;  %vm649_vm3 = vcmp.lt.s32.totalorder %v629_v50, 2 }
  0xea   : > { %v634_v16 = vshrl.u32 %v7496_v10, %v631_v53  ;;  %v637_v31 = vshrl.u32 %v7492_v11, %v631_v53  ;;  %v640_v7 = vshrl.u32 %v7494_v61, %v631_v53  ;;  %v632_v35 = vshrl.u32 %v7498_v57, %v631_v53 }
  0xeb   : > { %v643_v6 = vshrl.u32 %v7500_v8, %v631_v53  ;;  %v646_v9 = vshrl.u32 %v7502_v41, %v631_v53  ;;  %v735_v19 = vsub.s32 32, %v734_v37  ;;  %vm650_vm4 = vcmp.lt.s32.totalorder %v629_v50, 3 }
  0xec   : > { %v635_v56 = vor.u32 %v634_v16, %v633_v0  ;;  %v638_v33 = vor.u32 %v637_v31, %v636_v63  ;;  %v641_v24 = vor.u32 %v640_v7, %v639_v60  ;;  %vm651_vm5 = vcmp.lt.s32.totalorder %v629_v50, 4 }
  0xed   : > { %v644_v3 = vor.u32 %v643_v6, %v642_v14  ;;  %v647_v59 = vor.u32 %v646_v9, %v645_v15  ;;  %v7520_v53 = vmov 683565275   ;;  %v7521_v60 = vmov 2475754826  }
  0xee   : > { %v652_v11 = vsel %vm648_vm2, %v632_v35, %v635_v56  ;;  %v653_v61 = vsel %vm651_vm5, %v641_v24, 2102212464  ;;  %v656_v10 = vsel %vm648_vm2, %v635_v56, %v638_v33  ;;  %v660_v57 = vsel %vm648_vm2, %v638_v33, %v641_v24 }
  0xef   : > { %v654_v8 = vsel %vm650_vm4, %v638_v33, %v653_v61  ;;  %v657_v58 = vsel %vm651_vm5, %v644_v3, 920167782  ;;  %v661_v18 = vsel %vm651_vm5, %v647_v59, 1326507024  ;;  %v737_v41 = vshll.u32 %v7520_v53, %v734_v37 }
  0xf0   : > { %v658_v0 = vsel %vm650_vm4, %v641_v24, %v657_v58  ;;  %v662_v63 = vsel %vm650_vm4, %v644_v3, %v661_v18  ;;  %v738_v9 = vshrl.u32 %v7521_v60, %v735_v19  ;;  %v740_v14 = vshll.u32 %v7521_v60, %v734_v37 }
  0xf1   : > { %v655_v15 = vsel %vm649_vm3, %v652_v11, %v654_v8  ;;  %v659_v16 = vsel %vm649_vm3, %v656_v10, %v658_v0  ;;  %v663_v56 = vsel %vm649_vm3, %v660_v57, %v662_v63  ;;  %v7522_v31 = vmov 2131351028  }
  0xf2   : > { %v741_v33 = vshrl.u32 %v7522_v31, %v735_v19  ;;  %v4798_v59 = vmul.u32.u64.low %v4763_v46, %v663_v56  ;;  %v4799_v61 = vmul.u32.u64.high %v4763_v46, %v663_v56, %v4798_v59  ;;  %v739_v18 = vor.u32 %v738_v9, %v737_v41 }
  0xf3   : > { %v4802_v7 = vmul.u32.u64.low %v4763_v46, %v659_v16  ;;  %v4803_v58 = vmul.u32.u64.high %v4763_v46, %v659_v16, %v4802_v7  ;;  %v743_v35 = vshll.u32 %v7522_v31, %v734_v37  ;;  %v7523_v6 = vmov 2102212464  }
  0xf4   : > { %v742_v24 = vor.u32 %v741_v33, %v740_v14  ;;  %v744_v11 = vshrl.u32 %v7523_v6, %v735_v19  ;;  %v736_v10 = vshrl.u32 %v7520_v53, %v735_v19  ;;  %v746_v50 = vshll.u32 %v7523_v6, %v734_v37 }
  0xf5   : > { %v7524_v57 = vmov 920167782   ;;  %v7525_v3 = vmov 1326507024   ;;  %v671_v63 = vmul.u32 %v4763_v46, %v655_v15  ;;  %vm752_vm7 = vcmp.lt.s32.totalorder %v4774_v1, 1 }
  0xf6   : > { %v747_v8 = vshrl.u32 %v7524_v57, %v735_v19  ;;  %v750_v0 = vshrl.u32 %v7525_v3, %v735_v19  ;;  %v745_v56 = vor.u32 %v744_v11, %v743_v35  ;;  %v749_v16 = vshll.u32 %v7524_v57, %v734_v37 }
  0xf7   : > { %vm673_vm8 = vc.u32 %v4799_v61, %v4802_v7  ;;  %v674_v41 = vadd.s32 1, %v4803_v58  ;;  %vm753_vm9 = vcmp.lt.s32.totalorder %v4774_v1, 2  ;;  %vm754_vm10 = vcmp.lt.s32.totalorder %v4774_v1, 3 }
  0xf8   : > { %v748_v9 = vor.u32 %v747_v8, %v746_v50  ;;  %v751_v14 = vor.u32 %v750_v0, %v749_v16  ;;  %vm755_vm11 = vcmp.lt.s32.totalorder %v4774_v1, 4  ;;  %v760_v19 = vsel %vm752_vm7, %v739_v18, %v742_v24 }
  0xf9   : > { %v675_v46 = vsel %vm673_vm8, %v674_v41, %v4803_v58  ;;  %v757_v15 = vsel %vm755_vm11, %v745_v56, 2102212464  ;;  %v764_v37 = vsel %vm752_vm7, %v742_v24, %v745_v56  ;;  %v756_v35 = vsel %vm752_vm7, %v736_v10, %v739_v18 }
  0xfa   : > { %v761_v33 = vsel %vm755_vm11, %v748_v9, 920167782  ;;  %v676_v59 = vadd.s32 %v675_v46, %v671_v63  ;;  %v765_v12 = vsel %vm755_vm11, %v751_v14, 1326507024  ;;  %v758_v49 = vsel %vm754_vm10, %v742_v24, %v757_v15 }
  0xfb   : > { %v762_v11 = vsel %vm754_vm10, %v745_v56, %v761_v33  ;;  %v766_v8 = vsel %vm754_vm10, %v748_v9, %v765_v12  ;;  %v836_v0 = vsel %vm835_vm6, %v4771_v25, 0  ;;  %v931_v10 = vand.u32 2139095040, %v4761_v4 }
  0xfc   : > { %v763_v50 = vsel %vm753_vm9, %v760_v19, %v762_v11  ;;  %v677_v16 = vadd.s32 536870912, %v676_v59  ;;  %v767_v58 = vsel %vm753_vm9, %v764_v37, %v766_v8  ;;  %v759_v63 = vsel %vm753_vm9, %v756_v35, %v758_v49 }
  0xfd   : > { %v4828_v41 = vmul.u32.u64.low %v4765_v47, %v763_v50  ;;  %v4829_v48 = vmul.u32.u64.high %v4765_v47, %v763_v50, %v4828_v41  ;;  %v4833_v18 = vmul.u32.u64.low %v4765_v47, %v767_v58  ;;  %v4834_v24 = vmul.u32.u64.high %v4765_v47, %v767_v58, %v4833_v18 }
  0xfe   : > { %v678_v12 = vshrl.u32 %v677_v16, 30  ;;  %v838_v25 = vand.u32 31, %v836_v0  ;;  %v7504_v56 = vand.u32 2147483647, %v4761_v4  ;;  %v832_v9 = vor.u32 8388608, %v4769_v13 }
  0xff   : > { %v778_v19 = vadd.s32 1, %v4829_v48  ;;  %v775_v15 = vmul.u32 %v4765_v47, %v759_v63  ;;  %vm777_vm12 = vc.u32 %v4834_v24, %v4828_v41  ;;  %v932_v33 = vshrl.u32 %v931_v10, 23 }
 0x100   : > { %v679_v14 = vshll.u32 %v678_v12, 30  ;;  %v839_v46 = vsub.s32 32, %v838_v25  ;;  %v4851_v1 = vand.u32 8388607, %v7504_v56  ;;  %v672_v13 = vadd.s32 %v4802_v7, %v4799_v61 }
 0x101   : > { %v779_v49 = vsel %vm777_vm12, %v778_v19, %v4829_v48  ;;  %v4855_v47 = vshll.u32 %v832_v9, 8  ;;  %v4858_v8 = vshrl.u32 %v836_v0, 5  ;;  %v702_v48 = vsub.s32 4, %v678_v12 }
 0x102   : > { %v4846_v37 = vsub.s32 %v676_v59, %v679_v14  ;;  %v780_v35 = vadd.s32 %v779_v49, %v775_v15  ;;  %v842_v11 = vshrl.u32 %v7521_v60, %v839_v46  ;;  %v845_v59 = vshrl.u32 %v7522_v31, %v839_v46 }
 0x103   : > { %v848_v16 = vshrl.u32 %v7523_v6, %v839_v46  ;;  %v841_v18 = vshll.u32 %v7520_v53, %v838_v25  ;;  %v4060_v10 = vadd.s32 4294967169, %v932_v33  ;;  %v844_v7 = vshll.u32 %v7521_v60, %v838_v25 }
 0x104   : > { %v682_v50 = vsub.s32 0, %v4846_v37  ;;  %v781_v58 = vadd.s32 536870912, %v780_v35  ;;  %v847_v63 = vshll.u32 %v7522_v31, %v838_v25  ;;  %v851_v9 = vshrl.u32 %v7524_v57, %v839_v46 }
 0x105   : > { %v843_v0 = vor.u32 %v842_v11, %v841_v18  ;;  %v850_v19 = vshll.u32 %v7523_v6, %v838_v25  ;;  %v854_v15 = vshrl.u32 %v7525_v3, %v839_v46  ;;  %v7526_v49 = vand.u32 2147483647, %v4740_v27 }
 0x106   : > { %v4049_v61 = vmin.u32 %v682_v50, %v4846_v37  ;;  %v782_v14 = vshrl.u32 %v781_v58, 30  ;;  %v846_v50 = vor.u32 %v845_v59, %v844_v7  ;;  %v849_v55 = vor.u32 %v848_v16, %v847_v63 }
 0x107   : > { %vm4871_vm14 = vcmp.le.f32.partialorder %v7526_v49, 0.7853982  ;;  %v853_v54 = vshll.u32 %v7524_v57, %v838_v25  ;;  %v852_v42 = vor.u32 %v851_v9, %v850_v19  ;;  %vm856_vm15 = vcmp.lt.s32.totalorder %v4858_v8, 1 }
 0x108   : > { %v684_v33 = vclz %v4049_v61  ;;  %v783_v43 = vshll.u32 %v782_v14, 30  ;;  %vm857_vm0 = vcmp.lt.s32.totalorder %v4858_v8, 2  ;;  %vm859_vm1 = vcmp.lt.s32.totalorder %v4858_v8, 4 }
 0x109   : > { %v855_v18 = vor.u32 %v854_v15, %v853_v54  ;;  %v703_v49 = vsel %vm618_vm13, %v702_v48, %v678_v12  ;;  %vm722_vm2 = vcmp.lt.s32.totalorder %v4743_v21, 0  ;;  %vm858_vm3 = vcmp.lt.s32.totalorder %v4858_v8, 3 }
 0x10a   : > { %v4050_v58 = vadd.s32 4294967294, %v684_v33  ;;  %v4883_v59 = vsub.s32 %v780_v35, %v783_v43  ;;  %v865_v25 = vsel %vm859_vm1, %v852_v42, 920167782  ;;  %v840_v16 = vshrl.u32 %v7520_v53, %v839_v46 }
 0x10b   : > { %v864_v54 = vsel %vm856_vm15, %v843_v0, %v846_v50  ;;  %v866_v61 = vsel %vm858_vm3, %v849_v55, %v865_v25  ;;  %v806_v48 = vsub.s32 4, %v782_v14  ;;  %v868_v43 = vsel %vm856_vm15, %v846_v50, %v849_v55 }
 0x10c   : > { %vm4051_vm4 = vcmp.lt.s32.totalorder %v4050_v58, 0  ;;  %v786_v12 = vsub.s32 0, %v4883_v59  ;;  %v7529_v9 = vand.u32 2147483647, %v4743_v21  ;;  %v861_v46 = vsel %vm859_vm1, %v849_v55, 2102212464 }
 0x10d   : > { %v687_v7 = vsel %vm4051_vm4, 0, %v4050_v58  ;;  %v869_v15 = vsel %vm859_vm1, %v855_v18, 1326507024  ;;  %v867_v25 = vsel %vm857_vm0, %v864_v54, %v866_v61  ;;  %v938_v36 = vadd.s32 1, %v4060_v10 }
 0x10e   : > { %v688_v35 = vsub.s32 32, %v687_v7  ;;  %v692_v63 = vsub.s32 4294967266, %v687_v7  ;;  %vm4898_vm5 = vcmp.le.f32.partialorder %v7529_v9, 0.7853982  ;;  %v689_v33 = vshll.u32 %v4846_v37, %v687_v7 }
 0x10f   : > { %v4053_v58 = vmin.u32 %v786_v12, %v4883_v59  ;;  %v870_v11 = vsel %vm858_vm3, %v852_v42, %v869_v15  ;;  %v705_v55 = vsel %vm4871_vm14, 0, %v703_v49  ;;  %v860_v37 = vsel %vm856_vm15, %v840_v16, %v843_v0 }
 0x110   : > { %v690_v9 = vshrl.u32 %v672_v13, %v688_v35  ;;  %v693_v51 = vadd.s32 127, %v692_v63  ;;  %v871_v40 = vsel %vm857_vm0, %v868_v43, %v870_v11  ;;  %v862_v7 = vsel %vm858_vm3, %v846_v50, %v861_v46 }
 0x111   : > { %v788_v18 = vclz %v4053_v58  ;;  %v4921_v42 = vmul.u32.u64.low %v4855_v47, %v871_v40  ;;  %v4922_v13 = vmul.u32.u64.high %v4855_v47, %v871_v40, %v4921_v42  ;;  %vm939_vm6 = vcmp.gt.s32.totalorder %v938_v36, 0 }
 0x112   : > { %v691_v54 = vor.u32 %v690_v9, %v689_v33  ;;  %v694_v61 = vshll.u32 %v693_v51, 23  ;;  %v4925_v11 = vmul.u32.u64.low %v4855_v47, %v867_v25  ;;  %v4926_v10 = vmul.u32.u64.high %v4855_v47, %v867_v25, %v4925_v11 }
 0x113   : > { %v4054_v12 = vadd.s32 4294967294, %v788_v18  ;;  %v776_v0 = vadd.s32 %v4828_v41, %v4834_v24  ;;  %v807_v50 = vsel %vm722_vm2, %v806_v48, %v782_v14  ;;  %v940_v16 = vsel %vm939_vm6, %v938_v36, 0 }
 0x114   : > { %v695_v49 = vor.u32 4788187, %v694_v61  ;;  %v709_v51 = vadd.s32 3, %v705_v55  ;;  %v863_v40 = vsel %vm857_vm0, %v860_v37, %v862_v7  ;;  %v942_v43 = vand.u32 31, %v940_v16 }
 0x115   : > { %vm4055_vm7 = vcmp.lt.s32.totalorder %v4054_v12, 0  ;;  %v698_v63 = vcvt.s32.f32 %v691_v54  ;;  %vm881_vm8 = vc.u32 %v4922_v13, %v4925_v11  ;;  %v809_v41 = vsel %vm4898_vm5, 0, %v807_v50 }
 0x116   : > { %v696_v35 = vand.u32 2147483647, %v695_v49  ;;  %v791_v46 = vsel %vm4055_vm7, 0, %v4054_v12  ;;  %v882_v24 = vadd.s32 1, %v4926_v10  ;;  %v879_v14 = vmul.u32 %v4855_v47, %v863_v40 }
 0x117   : > { %v792_v15 = vsub.s32 32, %v791_v46  ;;  %v796_v33 = vsub.s32 4294967266, %v791_v46  ;;  %v4941_v48 = vshrl.u32 %v940_v16, 5  ;;  %v943_v8 = vsub.s32 32, %v942_v43 }
 0x118   : > { %v699_v36 = vmul.f32 %v698_v63, %v696_v35  ;;  %v793_v58 = vshll.u32 %v4883_v59, %v791_v46  ;;  %v883_v55 = vsel %vm881_vm8, %v882_v24, %v4926_v10  ;;  %v945_v7 = vshll.u32 %v7520_v53, %v942_v43  ;;  %v444_v63 = vpop.permute.xlu1 %443 }
 0x119   : > { %v794_v25 = vshrl.u32 %v776_v0, %v792_v15  ;;  %v797_v9 = vadd.s32 127, %v796_v33  ;;  %v884_v37 = vadd.s32 %v883_v55, %v879_v14  ;;  %v946_v54 = vshrl.u32 %v7521_v60, %v943_v8 }
 0x11a   : > { %v700_v18 = vxor.u32 2147483648, %v699_v36  ;;  %v948_v12 = vshll.u32 %v7521_v60, %v942_v43  ;;  %v949_v47 = vshrl.u32 %v7522_v31, %v943_v8  ;;  %v951_v0 = vshll.u32 %v7522_v31, %v942_v43 }
 0x11b   : > { %v795_v61 = vor.u32 %v794_v25, %v793_v58  ;;  %v798_v42 = vshll.u32 %v797_v9, 23  ;;  %v885_v59 = vadd.s32 536870912, %v884_v37  ;;  %v952_v10 = vshrl.u32 %v7523_v6, %v943_v8 }
 0x11c   : > { %v701_v49 = vsel %vm618_vm13, %v700_v18, %v699_v36  ;;  %v947_v40 = vor.u32 %v946_v54, %v945_v7  ;;  %v954_v35 = vshll.u32 %v7523_v6, %v942_v43  ;;  %v955_v33 = vshrl.u32 %v7524_v57, %v943_v8 }
 0x11d   : > { %v704_v50 = vsel %vm4871_vm14, %v4740_v27, %v701_v49  ;;  %v799_v16 = vor.u32 4788187, %v798_v42  ;;  %v802_v46 = vcvt.s32.f32 %v795_v61  ;;  %v4957_v15 = vshrl.u32 %v885_v59, 30 }
 0x11e   : > { %4330 = vcosq.f32 %v704_v50  ;;  %v950_v36 = vor.u32 %v949_v47, %v948_v12  ;;  %v958_v14 = vshrl.u32 %v7525_v3, %v943_v8  ;;  %v710_v58 = vand.u32 3, %v709_v51 }
 0x11f   : > { %4332 = vsinq.f32 %v704_v50  ;;  %v800_v24 = vand.u32 2147483647, %v799_v16  ;;  %v887_v56 = vshll.u32 %v4957_v15, 30  ;;  %v956_v25 = vor.u32 %v955_v33, %v954_v35 }
 0x120   : > { %v513_v9 = vmul.f32 %v4698_v62, %v444_v63  ;;  %v953_v18 = vor.u32 %v952_v10, %v951_v0  ;;  %v957_v7 = vshll.u32 %v7524_v57, %v942_v43  ;;  %v4965_v54 = vmul.f32 %v4714_v17, %v444_v63 }
 0x121   : > { %v803_v55 = vmul.f32 %v802_v46, %v800_v24  ;;  %v813_v61 = vadd.s32 3, %v809_v41  ;;  %v4967_v42 = vsub.s32 %v884_v37, %v887_v56  ;;  %vm960_vm9 = vcmp.lt.s32.totalorder %v4941_v48, 1 }
 0x122   : > { %v7532_v12 = vor.u32 8388608, %v4851_v1  ;;  %v959_v49 = vor.u32 %v958_v14, %v957_v7  ;;  %vm963_vm10 = vcmp.lt.s32.totalorder %v4941_v48, 4  ;;  %v968_v59 = vsel %vm960_vm9, %v947_v40, %v950_v36 }
 0x123   : > { %v804_v47 = vxor.u32 2147483648, %v803_v55  ;;  %vm711_vm11 = vcmp.lt.s32.totalorder %v710_v58, 2  ;;  %v890_v43 = vsub.s32 0, %v4967_v42  ;;  %v944_v41 = vshrl.u32 %v7520_v53, %v943_v8 }
 0x124   : > { %v4972_v51 = vshll.u32 %v7532_v12, 8  ;;  %vm962_vm12 = vcmp.lt.s32.totalorder %v4941_v48, 3  ;;  %v969_v37 = vsel %vm963_vm10, %v956_v25, 920167782  ;;  %vm708_vm13 = vweird.f32 %v4740_v27 }
 0x125   : > { %v805_v1 = vsel %vm722_vm2, %v804_v47, %v803_v55  ;;  %vm961_vm14 = vcmp.lt.s32.totalorder %v4941_v48, 2  ;;  %v965_v0 = vsel %vm963_vm10, %v953_v18, 2102212464  ;;  %v970_v10 = vsel %vm962_vm12, %v953_v18, %v969_v37 }
 0x126   : > { %v808_v8 = vsel %vm4898_vm5, %v4743_v21, %v805_v1  ;;  %v4057_v50 = vmin.u32 %v890_v43, %v4967_v42  ;;  %v971_v16 = vsel %vm961_vm14, %v968_v59, %v970_v10  ;;  %v972_v35 = vsel %vm960_vm9, %v950_v36, %v953_v18 }
 0x127   : > { %4334 = vcosq.f32 %v808_v8  ;;  %v973_v63 = vsel %vm963_vm10, %v959_v49, 1326507024  ;;  %v5001_v46 = vmul.u32.u64.low %v4972_v51, %v971_v16  ;;  %v5002_v33 = vmul.u32.u64.high %v4972_v51, %v971_v16, %v5001_v46 }
 0x128   : > { %v4331_v24 = vpop.eup %4330  ;;  %vm712_vm15 = vcmp.eq.s32.totalorder %v710_v58, 0  ;;  %vm715_vm0 = vcmp.eq.s32.totalorder %v710_v58, 2  ;;  %4336 = vsinq.f32 %v808_v8  ;;  %vm826_vm1 = vcmp.lt.s32.totalorder %v4746_v22, 0 }
 0x129   : > { %v892_v19 = vclz %v4057_v50  ;;  %v4333_v14 = vpop.eup %4332  ;;  %v716_v56 = vxor.u32 2147483648, %v4331_v24  ;;  %v964_v55 = vsel %vm960_vm9, %v944_v41, %v947_v40  ;;  %v966_v18 = vsel %vm962_vm12, %v950_v36, %v965_v0 }
 0x12a   : > { %v974_v7 = vsel %vm962_vm12, %v956_v25, %v973_v63  ;;  %v713_v12 = vxor.u32 2147483648, %v4333_v14  ;;  %v545_v59 = vadd.f32 %v513_v9, %v4608_v20  ;;  %v814_v37 = vand.u32 3, %v813_v61 }
 0x12b   : > { %v4058_v47 = vadd.s32 4294967294, %v892_v19  ;;  %v975_v49 = vsel %vm961_vm14, %v972_v35, %v974_v7  ;;  %v717_v43 = vsel %vm715_vm0, %v716_v56, %v4333_v14  ;;  %v7533_v1 = vand.u32 2147483647, %v4746_v22 }
 0x12c   : > { %v5023_v40 = vmul.u32.u64.low %v4972_v51, %v975_v49  ;;  %v5024_v36 = vmul.u32.u64.high %v4972_v51, %v975_v49, %v5023_v40  ;;  %v714_v20 = vsel %vm712_vm15, %v4331_v24, %v713_v12  ;;  %v967_v25 = vsel %vm961_vm14, %v964_v55, %v966_v18 }
 0x12d   : > { %vm5018_vm2 = vcmp.le.f32.partialorder %v7533_v1, 0.7853982  ;;  %vm4059_vm3 = vcmp.lt.s32.totalorder %v4058_v47, 0  ;;  %v986_v9 = vadd.s32 1, %v5002_v33  ;;  %vm3945_vm4 = vcmask 523264  }
 0x12e   : > { %v718_v61 = vsel %vm711_vm11, %v714_v20, %v717_v43  ;;  %v895_v41 = vsel %vm4059_vm3, 0, %v4058_v47  ;;  %v910_v0 = vsub.s32 4, %v4957_v15  ;;  %v5038_v8 = vadd.f32 %v4731_v34, %v545_v59 }
 0x12f   : > { %v719_v50 = vsel %vm708_vm13, nan, %v718_v61  ;;  %v880_v16 = vadd.s32 %v4925_v11, %v4922_v13  ;;  %v896_v35 = vsub.s32 32, %v895_v41  ;;  %v900_v48 = vsub.s32 4294967266, %v895_v41 }
 0x130   : > { %vm815_vm5 = vcmp.lt.s32.totalorder %v814_v37, 2  ;;  %3944 = vst [vmem:[%s5029_s27] sm:$0xff] %v719_v50  ;;  %v983_v63 = vmul.u32 %v4972_v51, %v967_v25  ;;  %vm985_vm6 = vc.u32 %v5024_v36, %v5001_v46  ;;  %v546_v58 = vadd.f32 %v4965_v54, %v4610_v23  ;;  %v452_v25 = vpop.permute.xlu0 %451 }
 0x131   : > { %v897_v24 = vshll.u32 %v4967_v42, %v895_v41  ;;  %v898_v19 = vshrl.u32 %v880_v16, %v896_v35  ;;  %v901_v27 = vadd.s32 127, %v900_v48  ;;  %v987_v14 = vsel %vm985_vm6, %v986_v9, %v5002_v33  ;;  %v4335_v56 = vpop.eup %4334 }
 0x132   : > { %v911_v13 = vsel %vm826_vm1, %v910_v0, %v4957_v15  ;;  %v988_v11 = vadd.s32 %v987_v14, %v983_v63  ;;  %v1032_v51 = vand.u32 2147483647, %v5038_v8  ;;  %v1035_v55 = vand.u32 2139095040, %v5038_v8  ;;  %v4337_v18 = vpop.eup %4336 }
 0x133   : > { %vm816_vm7 = vcmp.eq.s32.totalorder %v814_v37, 0  ;;  %v820_v7 = vxor.u32 2147483648, %v4335_v56  ;;  %v899_v23 = vor.u32 %v898_v19, %v897_v24  ;;  %v902_v54 = vshll.u32 %v901_v27, 23 }
 0x134   : > { %v817_v42 = vxor.u32 2147483648, %v4337_v18  ;;  %vm819_vm8 = vcmp.eq.s32.totalorder %v814_v37, 2  ;;  %v989_v12 = vadd.s32 536870912, %v988_v11  ;;  %v1036_v47 = vshrl.u32 %v1035_v55, 23 }
 0x135   : > { %v821_v33 = vsel %vm819_vm8, %v820_v7, %v4337_v18  ;;  %v903_v49 = vor.u32 4788187, %v902_v54  ;;  %v913_v15 = vsel %vm5018_vm2, 0, %v911_v13  ;;  %v5060_v59 = vadd.f32 %v4734_v5, %v546_v58 }
 0x136   : > { %v818_v43 = vsel %vm816_vm7, %v4335_v56, %v817_v42  ;;  %v5062_v1 = vshrl.u32 %v989_v12, 30  ;;  %v4064_v40 = vadd.s32 4294967169, %v1036_v47  ;;  %v1039_v20 = vand.u32 8388607, %v1032_v51 }
 0x137   : > { %vm812_vm9 = vweird.f32 %v4743_v21  ;;  %v822_v9 = vsel %vm815_vm5, %v818_v43, %v821_v33  ;;  %v904_v61 = vand.u32 2147483647, %v903_v49  ;;  %v906_v41 = vcvt.s32.f32 %v899_v23 }
 0x138   : > { %v823_v0 = vsel %vm812_vm9, nan, %v822_v9  ;;  %v991_v50 = vshll.u32 %v5062_v1, 30  ;;  %v1042_v16 = vadd.s32 1, %v4064_v40  ;;  %v917_v48 = vadd.s32 3, %v913_v15 }
 0x139   : > { %3946 = vst.msk [vmem:[%s5029_s27 + $0x8] sm:$0xff] %vm3945_vm4, %v823_v0  ;;  %v907_v35 = vmul.f32 %v906_v41, %v904_v61  ;;  %v1139_v63 = vand.u32 2139095040, %v5060_v59  ;;  %v517_v58 = vmul.f32 %v4698_v62, %v452_v25  ;;  %v1040_v19 = vor.u32 8388608, %v1039_v20 }
 0x13a   : > { %v5073_v24 = vsub.s32 %v988_v11, %v991_v50  ;;  %vm1043_vm10 = vcmp.gt.s32.totalorder %v1042_v16, 0  ;;  %v1136_v27 = vand.u32 2147483647, %v5060_v59  ;;  %v5078_v55 = vmul.f32 %v4714_v17, %v452_v25 }
 0x13b   : > { %v908_v21 = vxor.u32 2147483648, %v907_v35  ;;  %v1044_v37 = vsel %vm1043_vm10, %v1042_v16, 0  ;;  %v1140_v13 = vshrl.u32 %v1139_v63, 23  ;;  %v5082_v7 = vand.u32 3, %v917_v48 }
 0x13c   : > { %v994_v14 = vsub.s32 0, %v5073_v24  ;;  %v1046_v56 = vand.u32 31, %v1044_v37  ;;  %v984_v11 = vadd.s32 %v5001_v46, %v5024_v36  ;;  %v5087_v23 = vadd.f32 %v517_v58, %v4620_v52 }
 0x13d   : > { %v909_v18 = vsel %vm826_vm1, %v908_v21, %v907_v35  ;;  %v5093_v47 = vshll.u32 %v1040_v19, 8  ;;  %v1014_v33 = vsub.s32 4, %v5062_v1  ;;  %v5096_v49 = vshrl.u32 %v1044_v37, 5 }
 0x13e   : > { %v912_v54 = vsel %vm5018_vm2, %v4746_v22, %v909_v18  ;;  %v4061_v42 = vmin.u32 %v994_v14, %v5073_v24  ;;  %v1047_v12 = vsub.s32 32, %v1046_v56  ;;  %v5100_v46 = vand.u32 8388607, %v1136_v27 }
 0x13f   : > { %4338 = vcosq.f32 %v912_v54  ;;  %v1049_v36 = vshll.u32 %v7520_v53, %v1046_v56  ;;  %v4068_v10 = vadd.s32 4294967169, %v1140_v13  ;;  %v1052_v43 = vshll.u32 %v7521_v60, %v1046_v56 }
 0x140   : > { %4340 = vsinq.f32 %v912_v54  ;;  %v996_v52 = vclz %v4061_v42  ;;  %v1050_v15 = vshrl.u32 %v7521_v60, %v1047_v12  ;;  %v1053_v40 = vshrl.u32 %v7522_v31, %v1047_v12 }
 0x141   : > { %v1055_v20 = vshll.u32 %v7522_v31, %v1046_v56  ;;  %v1056_v9 = vshrl.u32 %v7523_v6, %v1047_v12  ;;  %v1058_v61 = vshll.u32 %v7523_v6, %v1046_v56  ;;  %v1059_v41 = vshrl.u32 %v7524_v57, %v1047_v12 }
 0x142   : > { %v4062_v25 = vadd.s32 4294967294, %v996_v52  ;;  %vm923_vm11 = vcmp.eq.s32.totalorder %v5082_v7, 2  ;;  %vm930_vm12 = vcmp.lt.s32.totalorder %v4761_v4, 0  ;;  %v1051_v0 = vor.u32 %v1050_v15, %v1049_v36 }
 0x143   : > { %v1054_v50 = vor.u32 %v1053_v40, %v1052_v43  ;;  %v1061_v16 = vshll.u32 %v7524_v57, %v1046_v56  ;;  %v1062_v35 = vshrl.u32 %v7525_v3, %v1047_v12  ;;  %vm920_vm13 = vcmp.eq.s32.totalorder %v5082_v7, 0 }
 0x144   : > { %vm4063_vm14 = vcmp.lt.s32.totalorder %v4062_v25, 0  ;;  %v1048_v48 = vshrl.u32 %v7520_v53, %v1047_v12  ;;  %v1057_v63 = vor.u32 %v1056_v9, %v1055_v20  ;;  %v1060_v58 = vor.u32 %v1059_v41, %v1058_v61 }
 0x145   : > { %vm919_vm15 = vcmp.lt.s32.totalorder %v5082_v7, 2  ;;  %v999_v19 = vsel %vm4063_vm14, 0, %v4062_v25  ;;  %v1063_v21 = vor.u32 %v1062_v35, %v1061_v16  ;;  %vm1064_vm0 = vcmp.lt.s32.totalorder %v5096_v49, 1 }
 0x146   : > { %vm1065_vm1 = vcmp.lt.s32.totalorder %v5096_v49, 2  ;;  %vm916_vm2 = vweird.f32 %v4746_v22  ;;  %v7536_v37 = vand.u32 2147483647, %v4761_v4  ;;  %v1000_v56 = vsub.s32 32, %v999_v19 }
 0x147   : > { %v1004_v13 = vsub.s32 4294967266, %v999_v19  ;;  %vm1066_vm5 = vcmp.lt.s32.totalorder %v5096_v49, 3  ;;  %vm1067_vm6 = vcmp.lt.s32.totalorder %v5096_v49, 4  ;;  %v1001_v18 = vshll.u32 %v5073_v24, %v999_v19 }
 0x148   : > { %vm5122_vm3 = vcmp.le.f32.partialorder %v7536_v37, 0.7853982  ;;  %v1069_v54 = vsel %vm1067_vm6, %v1057_v63, 2102212464  ;;  %v1072_v42 = vsel %vm1064_vm0, %v1051_v0, %v1054_v50  ;;  %v1073_v12 = vsel %vm1067_vm6, %v1060_v58, 920167782 }
 0x149   : > { %v1002_v52 = vshrl.u32 %v984_v11, %v1000_v56  ;;  %v1005_v36 = vadd.s32 127, %v1004_v13  ;;  %v1068_v15 = vsel %vm1064_vm0, %v1048_v48, %v1051_v0  ;;  %v1074_v43 = vsel %vm1066_vm5, %v1057_v63, %v1073_v12  ;;  %v4339_v40 = vpop.eup %4338 }
 0x14a   : > { %v1070_v20 = vsel %vm1066_vm5, %v1054_v50, %v1069_v54  ;;  %v1075_v24 = vsel %vm1065_vm1, %v1072_v42, %v1074_v43  ;;  %v1076_v25 = vsel %vm1064_vm0, %v1054_v50, %v1057_v63  ;;  %v1077_v9 = vsel %vm1067_vm6, %v1063_v21, 1326507024  ;;  %v4341_v61 = vpop.eup %4340 }
 0x14b   : > { %v924_v11 = vxor.u32 2147483648, %v4339_v40  ;;  %v1003_v41 = vor.u32 %v1002_v52, %v1001_v18  ;;  %v1006_v16 = vshll.u32 %v1005_v36, 23  ;;  %v1078_v0 = vsel %vm1066_vm5, %v1060_v58, %v1077_v9 }
 0x14c   : > { %v921_v35 = vxor.u32 2147483648, %v4341_v61  ;;  %v1079_v48 = vsel %vm1065_vm1, %v1076_v25, %v1078_v0  ;;  %v5146_v19 = vmul.u32.u64.low %v5093_v47, %v1075_v24  ;;  %v5147_v37 = vmul.u32.u64.high %v5093_v47, %v1075_v24, %v5146_v19 }
 0x14d   : > { %v925_v50 = vsel %vm923_vm11, %v924_v11, %v4341_v61  ;;  %v1007_v63 = vor.u32 4788187, %v1006_v16  ;;  %v1015_v21 = vsel %vm930_vm12, %v1014_v33, %v5062_v1  ;;  %v5157_v58 = vadd.f32 %v4731_v34, %v5087_v23 }
 0x14e   : > { %v922_v56 = vsel %vm920_vm13, %v4339_v40, %v921_v35  ;;  %v5162_v13 = vmul.u32.u64.low %v5093_v47, %v1079_v48  ;;  %v5163_v18 = vmul.u32.u64.high %v5093_v47, %v1079_v48, %v5162_v13  ;;  %v1146_v54 = vadd.s32 1, %v4068_v10 }
 0x14f   : > { %v926_v42 = vsel %vm919_vm15, %v922_v56, %v925_v50  ;;  %v1008_v12 = vand.u32 2147483647, %v1007_v63  ;;  %v1010_v52 = vcvt.s32.f32 %v1003_v41  ;;  %v1071_v1 = vsel %vm1065_vm1, %v1068_v15, %v1070_v20 }
 0x150   : > { %v927_v23 = vsel %vm916_vm2, nan, %v926_v42  ;;  %v1017_v33 = vsel %vm5122_vm3, 0, %v1015_v21  ;;  %v1090_v36 = vadd.s32 1, %v5147_v37  ;;  %vm1147_vm7 = vcmp.gt.s32.totalorder %v1146_v54, 0 }
 0x151   : > { %v1011_v43 = vmul.f32 %v1010_v52, %v1008_v12  ;;  %3947 = vst [vmem:[%s5029_s27 + $0x10] sm:$0xff] %v927_v23  ;;  %v1148_v10 = vsel %vm1147_vm7, %v1146_v54, 0  ;;  %v1087_v7 = vmul.u32 %v5093_v47, %v1071_v1  ;;  %vm1089_vm8 = vc.u32 %v5163_v18, %v5146_v19 }
 0x152   : > { %v1150_v40 = vand.u32 31, %v1148_v10  ;;  %v5180_v49 = vadd.f32 %v5078_v55, %v4622_v28  ;;  %v1021_v15 = vadd.s32 3, %v1017_v33  ;;  %v1091_v20 = vsel %vm1089_vm8, %v1090_v36, %v5147_v37 }
 0x153   : > { %v1012_v22 = vxor.u32 2147483648, %v1011_v43  ;;  %v1144_v24 = vor.u32 8388608, %v5100_v46  ;;  %v1092_v25 = vadd.s32 %v1091_v20, %v1087_v7  ;;  %v5184_v9 = vshrl.u32 %v1148_v10, 5 }
 0x154   : > { %v1151_v61 = vsub.s32 32, %v1150_v40  ;;  %v1451_v47 = vand.u32 2139095040, %v5157_v58  ;;  %v1153_v41 = vshll.u32 %v7520_v53, %v1150_v40  ;;  %v1156_v28 = vshll.u32 %v7521_v60, %v1150_v40 }
 0x155   : > { %v1013_v11 = vsel %vm930_vm12, %v1012_v22, %v1011_v43  ;;  %v1159_v55 = vshll.u32 %v7522_v31, %v1150_v40  ;;  %v1093_v46 = vadd.s32 536870912, %v1092_v25  ;;  %v1162_v35 = vshll.u32 %v7523_v6, %v1150_v40 }
 0x156   : > { %v1016_v16 = vsel %vm5122_vm3, %v4761_v4, %v1013_v11  ;;  %v1154_v0 = vshrl.u32 %v7521_v60, %v1151_v61  ;;  %v1157_v48 = vshrl.u32 %v7522_v31, %v1151_v61  ;;  %v1160_v37 = vshrl.u32 %v7523_v6, %v1151_v61 }
 0x157   : > { %4342 = vcosq.f32 %v1016_v16  ;;  %v1163_v50 = vshrl.u32 %v7524_v57, %v1151_v61  ;;  %v1094_v63 = vshrl.u32 %v1093_v46, 30  ;;  %v1166_v56 = vshrl.u32 %v7525_v3, %v1151_v61 }
 0x158   : > { %4344 = vsinq.f32 %v1016_v16  ;;  %v1155_v21 = vor.u32 %v1154_v0, %v1153_v41  ;;  %v1158_v13 = vor.u32 %v1157_v48, %v1156_v28  ;;  %v1161_v14 = vor.u32 %v1160_v37, %v1159_v55 }
 0x159   : > { %v1164_v54 = vor.u32 %v1163_v50, %v1162_v35  ;;  %v1165_v42 = vshll.u32 %v7524_v57, %v1150_v40  ;;  %v1022_v12 = vand.u32 3, %v1021_v15  ;;  %vm1034_vm9 = vcmp.lt.s32.totalorder %v5038_v8, 0 }
 0x15a   : > { %v1095_v52 = vshll.u32 %v1094_v63, 30  ;;  %vm1168_vm10 = vcmp.lt.s32.totalorder %v5184_v9, 1  ;;  %vm1171_vm11 = vcmp.lt.s32.totalorder %v5184_v9, 4  ;;  %v1184_v33 = vshll.u32 %v1144_v24, 8 }
 0x15b   : > { %v1167_v1 = vor.u32 %v1166_v56, %v1165_v42  ;;  %v1176_v23 = vsel %vm1168_vm10, %v1155_v21, %v1158_v13  ;;  %vm1170_vm12 = vcmp.lt.s32.totalorder %v5184_v9, 3  ;;  %v1177_v43 = vsel %vm1171_vm11, %v1164_v54, 920167782 }
 0x15c   : > { %v5207_v36 = vsub.s32 %v1092_v25, %v1095_v52  ;;  %v1452_v10 = vshrl.u32 %v1451_v47, 23  ;;  %v1152_v7 = vshrl.u32 %v7520_v53, %v1151_v61  ;;  %vm1169_vm13 = vcmp.lt.s32.totalorder %v5184_v9, 2 }
 0x15d   : > { %v1173_v40 = vsel %vm1171_vm11, %v1161_v14, 2102212464  ;;  %v1178_v22 = vsel %vm1170_vm12, %v1161_v14, %v1177_v43  ;;  %vm1020_vm14 = vweird.f32 %v4761_v4  ;;  %v1118_v20 = vsub.s32 4, %v1094_v63 }
 0x15e   : > { %v1098_v15 = vsub.s32 0, %v5207_v36  ;;  %v1179_v24 = vsel %vm1169_vm13, %v1176_v23, %v1178_v22  ;;  %v1180_v25 = vsel %vm1168_vm10, %v1158_v13, %v1161_v14  ;;  %v1172_v61 = vsel %vm1168_vm10, %v1152_v7, %v1155_v21 }
 0x15f   : > { %v1181_v47 = vsel %vm1171_vm11, %v1167_v1, 1326507024  ;;  %v5228_v11 = vmul.u32.u64.low %v1184_v33, %v1179_v24  ;;  %v5229_v41 = vmul.u32.u64.high %v1184_v33, %v1179_v24, %v5228_v11  ;;  %v1174_v55 = vsel %vm1170_vm12, %v1158_v13, %v1173_v40 }
 0x160   : > { %v4065_v28 = vmin.u32 %v1098_v15, %v5207_v36  ;;  %v1182_v16 = vsel %vm1170_vm12, %v1164_v54, %v1181_v47  ;;  %v4080_v46 = vadd.s32 4294967169, %v1452_v10  ;;  %vm1024_vm15 = vcmp.eq.s32.totalorder %v1022_v12, 0 }
 0x161   : > { %v4343_v0 = vpop.eup %4342  ;;  %vm5239_vm0 = vcmp.le.f32.partialorder %v1032_v51, 0.7853982  ;;  %v1183_v48 = vsel %vm1169_vm13, %v1180_v25, %v1182_v16  ;;  %v5247_v37 = vadd.f32 %v4734_v5, %v5180_v49  ;;  %vm1027_vm1 = vcmp.eq.s32.totalorder %v1022_v12, 2 }
 0x162   : > { %v4345_v50 = vpop.eup %4344  ;;  %v1028_v21 = vxor.u32 2147483648, %v4343_v0  ;;  %v1100_v56 = vclz %v4065_v28  ;;  %v1119_v13 = vsel %vm1034_vm9, %v1118_v20, %v1094_v63  ;;  %v1175_v51 = vsel %vm1169_vm13, %v1172_v61, %v1174_v55 }
 0x163   : > { %v1025_v14 = vxor.u32 2147483648, %v4345_v50  ;;  %v5253_v54 = vmul.u32.u64.low %v1184_v33, %v1183_v48  ;;  %v5254_v42 = vmul.u32.u64.high %v1184_v33, %v1183_v48, %v5253_v54  ;;  %v1194_v49 = vadd.s32 1, %v5229_v41 }
 0x164   : > { %v1029_v52 = vsel %vm1027_vm1, %v1028_v21, %v4345_v50  ;;  %v4066_v1 = vadd.s32 4294967294, %v1100_v56  ;;  %v1458_v23 = vadd.s32 1, %v4080_v46  ;;  %vm1023_vm2 = vcmp.lt.s32.totalorder %v1022_v12, 2 }
 0x165   : > { %v1026_v43 = vsel %vm1024_vm15, %v4343_v0, %v1025_v14  ;;  %v1121_v10 = vsel %vm5239_vm0, 0, %v1119_v13  ;;  %v1448_v63 = vand.u32 2147483647, %v5157_v58  ;;  %v1088_v9 = vadd.s32 %v5146_v19, %v5163_v18 }
 0x166   : > { %v1030_v7 = vsel %vm1023_vm2, %v1026_v43, %v1029_v52  ;;  %vm4067_vm3 = vcmp.lt.s32.totalorder %v4066_v1, 0  ;;  %vm1459_vm5 = vcmp.gt.s32.totalorder %v1458_v23, 0  ;;  %v1191_v15 = vmul.u32 %v1184_v33, %v1175_v51 }
 0x167   : > { %v1031_v40 = vsel %vm1020_vm14, nan, %v1030_v7  ;;  %v1103_v22 = vsel %vm4067_vm3, 0, %v4066_v1  ;;  %vm1193_vm6 = vc.u32 %v5254_v42, %v5228_v11  ;;  %v1125_v24 = vadd.s32 3, %v1121_v10 }
 0x168   : > { %3948 = vst.msk [vmem:[%s5029_s27 + $0x18] sm:$0xff] %vm3945_vm4, %v1031_v40  ;;  %v1104_v12 = vsub.s32 32, %v1103_v22  ;;  %v1108_v20 = vsub.s32 4294967266, %v1103_v22  ;;  %v1195_v25 = vsel %vm1193_vm6, %v1194_v49, %v5229_v41  ;;  %v1455_v19 = vand.u32 8388607, %v1448_v63 }
 0x169   : > { %v1196_v61 = vadd.s32 %v1195_v25, %v1191_v15  ;;  %v1460_v18 = vsel %vm1459_vm5, %v1458_v23, 0  ;;  %v1555_v4 = vand.u32 2139095040, %v5247_v37  ;;  %v1105_v47 = vshll.u32 %v5207_v36, %v1103_v22 }
 0x16a   : > { %v1106_v33 = vshrl.u32 %v1088_v9, %v1104_v12  ;;  %v1109_v28 = vadd.s32 127, %v1108_v20  ;;  %v1462_v55 = vand.u32 31, %v1460_v18  ;;  %vm1138_vm7 = vcmp.lt.s32.totalorder %v5060_v59, 0 }
 0x16b   : > { %v1197_v16 = vadd.s32 536870912, %v1196_v61  ;;  %v5275_v48 = vand.u32 3, %v1125_v24  ;;  %vm5279_vm8 = vcmp.le.f32.partialorder %v1136_v27, 0.7853982  ;;  %v1456_v56 = vor.u32 8388608, %v1455_v19 }
 0x16c   : > { %v1107_v46 = vor.u32 %v1106_v33, %v1105_v47  ;;  %v1110_v0 = vshll.u32 %v1109_v28, 23  ;;  %v1463_v50 = vsub.s32 32, %v1462_v55  ;;  %v5283_v36 = vshrl.u32 %v1460_v18, 5 }
 0x16d   : > { %v1198_v21 = vshrl.u32 %v1197_v16, 30  ;;  %v1556_v13 = vshrl.u32 %v1555_v4, 23  ;;  %v1465_v51 = vshll.u32 %v7520_v53, %v1462_v55  ;;  %v1468_v52 = vshll.u32 %v7521_v60, %v1462_v55 }
 0x16e   : > { %v1111_v14 = vor.u32 4788187, %v1110_v0  ;;  %v1466_v54 = vshrl.u32 %v7521_v60, %v1463_v50  ;;  %v1469_v27 = vshrl.u32 %v7522_v31, %v1463_v50  ;;  %v1472_v23 = vshrl.u32 %v7523_v6, %v1463_v50 }
 0x16f   : > { %v1199_v1 = vshll.u32 %v1198_v21, 30  ;;  %v1222_v49 = vsub.s32 4, %v1198_v21  ;;  %v1114_v10 = vcvt.s32.f32 %v1107_v46  ;;  %v1474_v7 = vshll.u32 %v7523_v6, %v1462_v55 }
 0x170   : > { %v1112_v43 = vand.u32 2147483647, %v1111_v14  ;;  %v1475_v9 = vshrl.u32 %v7524_v57, %v1463_v50  ;;  %v1467_v15 = vor.u32 %v1466_v54, %v1465_v51  ;;  %v1471_v12 = vshll.u32 %v7522_v31, %v1462_v55 }
 0x171   : > { %v5292_v40 = vsub.s32 %v1196_v61, %v1199_v1  ;;  %v1223_v22 = vsel %vm1138_vm7, %v1222_v49, %v1198_v21  ;;  %v1470_v24 = vor.u32 %v1469_v27, %v1468_v52  ;;  %v1478_v19 = vshrl.u32 %v7525_v3, %v1463_v50 }
 0x172   : > { %v1115_v20 = vmul.f32 %v1114_v10, %v1112_v43  ;;  %v1476_v25 = vor.u32 %v1475_v9, %v1474_v7  ;;  %v1473_v4 = vor.u32 %v1472_v23, %v1471_v12  ;;  %v5299_v47 = vshll.u32 %v1456_v56, 8 }
 0x173   : > { %v1202_v18 = vsub.s32 0, %v5292_v40  ;;  %v1552_v33 = vand.u32 2147483647, %v5247_v37  ;;  %v1464_v28 = vshrl.u32 %v7520_v53, %v1463_v50  ;;  %v1477_v16 = vshll.u32 %v7524_v57, %v1462_v55 }
 0x174   : > { %v1116_v61 = vxor.u32 2147483648, %v1115_v20  ;;  %v4084_v46 = vadd.s32 4294967169, %v1556_v13  ;;  %v1225_v21 = vsel %vm5279_vm8, 0, %v1223_v22  ;;  %vm1480_vm10 = vcmp.lt.s32.totalorder %v5283_v36, 1 }
 0x175   : > { %v4069_v0 = vmin.u32 %v1202_v18, %v5292_v40  ;;  %vm1483_vm11 = vcmp.lt.s32.totalorder %v5283_v36, 4  ;;  %v1479_v14 = vor.u32 %v1478_v19, %v1477_v16  ;;  %v1488_v51 = vsel %vm1480_vm10, %v1467_v15, %v1470_v24 }
 0x176   : > { %v1117_v56 = vsel %vm1034_vm9, %v1116_v61, %v1115_v20  ;;  %v1489_v55 = vsel %vm1483_vm11, %v1476_v25, 920167782  ;;  %vm1482_vm12 = vcmp.lt.s32.totalorder %v5283_v36, 3  ;;  %v1485_v54 = vsel %vm1483_vm11, %v1473_v4, 2102212464 }
 0x177   : > { %v1120_v50 = vsel %vm5239_vm0, %v5038_v8, %v1117_v56  ;;  %v1204_v13 = vclz %v4069_v0  ;;  %vm1481_vm9 = vcmp.lt.s32.totalorder %v5283_v36, 2  ;;  %v1484_v52 = vsel %vm1480_vm10, %v1464_v28, %v1467_v15  ;;  %v448_v56 = vpop.permute.xlu1 %447 }
 0x178   : > { %4346 = vcosq.f32 %v1120_v50  ;;  %v1490_v1 = vsel %vm1482_vm12, %v1473_v4, %v1489_v55  ;;  %v1492_v35 = vsel %vm1480_vm10, %v1470_v24, %v1473_v4  ;;  %v1486_v23 = vsel %vm1482_vm12, %v1470_v24, %v1485_v54 }
 0x179   : > { %4348 = vsinq.f32 %v1120_v50  ;;  %v4070_v49 = vadd.s32 4294967294, %v1204_v13  ;;  %v1491_v27 = vsel %vm1481_vm9, %v1488_v51, %v1490_v1  ;;  %v1493_v43 = vsel %vm1483_vm11, %v1479_v14, 1326507024 }
 0x17a   : > { %v5331_v10 = vmul.u32.u64.low %v5299_v47, %v1491_v27  ;;  %v5332_v7 = vmul.u32.u64.high %v5299_v47, %v1491_v27, %v5331_v10  ;;  %v1192_v9 = vadd.s32 %v5228_v11, %v5254_v42  ;;  %v1494_v22 = vsel %vm1482_vm12, %v1476_v25, %v1493_v43 }
 0x17b   : > { %vm4071_vm13 = vcmp.lt.s32.totalorder %v4070_v49, 0  ;;  %v1562_v15 = vadd.s32 1, %v4084_v46  ;;  %v1229_v20 = vadd.s32 3, %v1225_v21  ;;  %v1495_v19 = vsel %vm1481_vm9, %v1492_v35, %v1494_v22 }
 0x17c   : > { %v1207_v12 = vsel %vm4071_vm13, 0, %v4070_v49  ;;  %v5341_v24 = vand.u32 8388607, %v1552_v33  ;;  %v1487_v61 = vsel %vm1481_vm9, %v1484_v52, %v1486_v23  ;;  %v1506_v0 = vadd.s32 1, %v5332_v7 }
 0x17d   : > { %v1208_v18 = vsub.s32 32, %v1207_v12  ;;  %v1212_v4 = vsub.s32 4294967266, %v1207_v12  ;;  %vm1563_vm14 = vcmp.gt.s32.totalorder %v1562_v15, 0  ;;  %v1209_v11 = vshll.u32 %v5292_v40, %v1207_v12 }
 0x17e   : > { %v5347_v42 = vmul.u32.u64.low %v5299_v47, %v1495_v19  ;;  %v5348_v25 = vmul.u32.u64.high %v5299_v47, %v1495_v19, %v5347_v42  ;;  %v1564_v28 = vsel %vm1563_vm14, %v1562_v15, 0  ;;  %vm1124_vm15 = vweird.f32 %v5038_v8 }
 0x17f   : > { %v1210_v16 = vshrl.u32 %v1192_v9, %v1208_v18  ;;  %v1213_v46 = vadd.s32 127, %v1212_v4  ;;  %v1566_v21 = vand.u32 31, %v1564_v28  ;;  %vm1127_vm0 = vcmp.lt.s32.totalorder %v5275_v48, 2 }
 0x180   : > { %vm1128_vm1 = vcmp.eq.s32.totalorder %v5275_v48, 0  ;;  %vm1131_vm2 = vcmp.eq.s32.totalorder %v5275_v48, 2  ;;  %v1560_v14 = vor.u32 8388608, %v5341_v24  ;;  %v5356_v50 = vand.u32 3, %v1229_v20 }
 0x181   : > { %v1211_v36 = vor.u32 %v1210_v16, %v1209_v11  ;;  %v1214_v40 = vshll.u32 %v1213_v46, 23  ;;  %v1567_v51 = vsub.s32 32, %v1566_v21  ;;  %v1503_v13 = vmul.u32 %v5299_v47, %v1487_v61 }
 0x182   : > { %v4347_v55 = vpop.eup %4346  ;;  %vm1505_vm3 = vc.u32 %v5348_v25, %v5331_v10  ;;  %v515_v54 = vmul.f32 %v4698_v62, %v448_v56  ;;  %v5364_v35 = vmul.f32 %v4714_v17, %v448_v56  ;;  %v1565_v9 = vshrl.u32 %v1564_v28, 5 }
 0x183   : > { %v4349_v52 = vpop.eup %4348  ;;  %v1132_v1 = vxor.u32 2147483648, %v4347_v55  ;;  %v1215_v49 = vor.u32 4788187, %v1214_v40  ;;  %v1507_v27 = vsel %vm1505_vm3, %v1506_v0, %v5332_v7  ;;  %v1575_v22 = vshll.u32 %v7522_v31, %v1566_v21 }
 0x184   : > { %v1129_v23 = vxor.u32 2147483648, %v4349_v52  ;;  %v1508_v43 = vadd.s32 %v1507_v27, %v1503_v13  ;;  %v1218_v12 = vcvt.s32.f32 %v1211_v36  ;;  %v1576_v20 = vshrl.u32 %v7523_v6, %v1567_v51 }
 0x185   : > { %v1133_v47 = vsel %vm1131_vm2, %v1132_v1, %v4349_v52  ;;  %v1216_v15 = vand.u32 2147483647, %v1215_v49  ;;  %v1570_v18 = vshrl.u32 %v7521_v60, %v1567_v51  ;;  %v1573_v4 = vshrl.u32 %v7522_v31, %v1567_v51 }
 0x186   : > { %v1130_v19 = vsel %vm1128_vm1, %v4347_v55, %v1129_v23  ;;  %v1509_v7 = vadd.s32 536870912, %v1508_v43  ;;  %v1569_v42 = vshll.u32 %v7520_v53, %v1566_v21  ;;  %v1572_v28 = vshll.u32 %v7521_v60, %v1566_v21 }
 0x187   : > { %v1134_v61 = vsel %vm1127_vm0, %v1130_v19, %v1133_v47  ;;  %v1219_v11 = vmul.f32 %v1218_v12, %v1216_v15  ;;  %v1577_v0 = vor.u32 %v1576_v20, %v1575_v22  ;;  %v1579_v56 = vshrl.u32 %v7524_v57, %v1567_v51 }
 0x188   : > { %v1135_v16 = vsel %vm1124_vm15, nan, %v1134_v61  ;;  %v1510_v46 = vshrl.u32 %v1509_v7, 30  ;;  %vm1450_vm5 = vcmp.lt.s32.totalorder %v5157_v58, 0  ;;  %v1578_v40 = vshll.u32 %v7523_v6, %v1566_v21 }
 0x189   : > { %v1220_v36 = vxor.u32 2147483648, %v1219_v11  ;;  %3949 = vst [vmem:[%s5029_s27 + $0x20] sm:$0xff] %v1135_v16  ;;  %v1581_v48 = vshll.u32 %v7524_v57, %v1566_v21  ;;  %v1582_v55 = vshrl.u32 %v7525_v3, %v1567_v51  ;;  %v1571_v52 = vor.u32 %v1570_v18, %v1569_v42 }
 0x18a   : > { %v1511_v13 = vshll.u32 %v1510_v46, 30  ;;  %v1574_v1 = vor.u32 %v1573_v4, %v1572_v28  ;;  %v547_v8 = vadd.f32 %v515_v54, %v4612_v26  ;;  %v1580_v27 = vor.u32 %v1579_v56, %v1578_v40 }
 0x18b   : > { %v1221_v49 = vsel %vm1138_vm7, %v1220_v36, %v1219_v11  ;;  %v1583_v23 = vor.u32 %v1582_v55, %v1581_v48  ;;  %vm1587_vm6 = vcmp.lt.s32.totalorder %v1565_v9, 4  ;;  %v1568_v21 = vshrl.u32 %v7520_v53, %v1567_v51 }
 0x18c   : > { %v1224_v22 = vsel %vm5279_vm8, %v5060_v59, %v1221_v49  ;;  %v5392_v47 = vsub.s32 %v1508_v43, %v1511_v13  ;;  %v1589_v15 = vsel %vm1587_vm6, %v1577_v0, 2102212464  ;;  %v1534_v12 = vsub.s32 4, %v1510_v46 }
 0x18d   : > { %4350 = vcosq.f32 %v1224_v22  ;;  %vm1584_vm10 = vcmp.lt.s32.totalorder %v1565_v9, 1  ;;  %vm1586_vm11 = vcmp.lt.s32.totalorder %v1565_v9, 3  ;;  %v1593_v7 = vsel %vm1587_vm6, %v1580_v27, 920167782 }
 0x18e   : > { %4352 = vsinq.f32 %v1224_v22  ;;  %v1514_v26 = vsub.s32 0, %v5392_v47  ;;  %v1588_v54 = vsel %vm1584_vm10, %v1568_v21, %v1571_v52  ;;  %v1592_v20 = vsel %vm1584_vm10, %v1571_v52, %v1574_v1 }
 0x18f   : > { %v1590_v19 = vsel %vm1586_vm11, %v1574_v1, %v1589_v15  ;;  %v1596_v41 = vsel %vm1584_vm10, %v1574_v1, %v1577_v0  ;;  %v1597_v43 = vsel %vm1587_vm6, %v1583_v23, 1326507024  ;;  %vm1585_vm7 = vcmp.lt.s32.totalorder %v1565_v9, 2 }
 0x190   : > { %v4081_v18 = vmin.u32 %v1514_v26, %v5392_v47  ;;  %v1594_v51 = vsel %vm1586_vm11, %v1577_v0, %v1593_v7  ;;  %v1598_v4 = vsel %vm1586_vm11, %v1580_v27, %v1597_v43  ;;  %v1600_v42 = vshll.u32 %v1560_v14, 8 }
 0x191   : > { %v1595_v61 = vsel %vm1585_vm7, %v1592_v20, %v1594_v51  ;;  %v1599_v11 = vsel %vm1585_vm7, %v1596_v41, %v1598_v4  ;;  %v5403_v28 = vadd.f32 %v4731_v34, %v547_v8  ;;  %v1535_v56 = vsel %vm1450_vm5, %v1534_v12, %v1510_v46 }
 0x192   : > { %v1516_v16 = vclz %v4081_v18  ;;  %v1591_v36 = vsel %vm1585_vm7, %v1588_v54, %v1590_v19  ;;  %v548_v40 = vadd.f32 %v5364_v35, %v4614_v30  ;;  %vm1228_vm8 = vweird.f32 %v5060_v59 }
 0x193   : > { %v5409_v48 = vmul.u32.u64.low %v1600_v42, %v1599_v11  ;;  %v5410_v9 = vmul.u32.u64.high %v1600_v42, %v1599_v11, %v5409_v48  ;;  %v5412_v0 = vmul.u32.u64.low %v1600_v42, %v1595_v61  ;;  %v5413_v55 = vmul.u32.u64.high %v1600_v42, %v1595_v61, %v5412_v0  ;;  %v5442_v11 = vpop.permute.xlu0 %459 }
 0x194   : > { %v4082_v24 = vadd.s32 4294967294, %v1516_v16  ;;  %v1243_v14 = vand.u32 2139095040, %v5403_v28  ;;  %vm1232_vm12 = vcmp.eq.s32.totalorder %v5356_v50, 0  ;;  %vm1235_vm9 = vcmp.eq.s32.totalorder %v5356_v50, 2 }
 0x195   : > { %vm5421_vm13 = vcmp.le.f32.partialorder %v1448_v63, 0.7853982  ;;  %v1504_v30 = vadd.s32 %v5331_v10, %v5348_v25  ;;  %v1607_v13 = vmul.u32 %v1600_v42, %v1591_v36  ;;  %vm1609_vm15 = vc.u32 %v5410_v9, %v5412_v0 }
 0x196   : > { %vm4083_vm14 = vcmp.lt.s32.totalorder %v4082_v24, 0  ;;  %v1537_v35 = vsel %vm5421_vm13, 0, %v1535_v56  ;;  %v1244_v52 = vshrl.u32 %v1243_v14, 23  ;;  %v1610_v49 = vadd.s32 1, %v5413_v55 }
 0x197   : > { %v4351_v1 = vpop.eup %4350  ;;  %v1519_v8 = vsel %vm4083_vm14, 0, %v4082_v24  ;;  %v5432_v63 = vadd.f32 %v4734_v5, %v548_v40  ;;  %v1240_v10 = vand.u32 2147483647, %v5403_v28  ;;  %vm1231_vm0 = vcmp.lt.s32.totalorder %v5356_v50, 2 }
 0x198   : > { %v4353_v27 = vpop.eup %4352  ;;  %v1236_v23 = vxor.u32 2147483648, %v4351_v1  ;;  %v1520_v22 = vsub.s32 32, %v1519_v8  ;;  %v1524_v21 = vsub.s32 4294967266, %v1519_v8  ;;  %v1521_v15 = vshll.u32 %v5392_v47, %v1519_v8 }
 0x199   : > { %v1233_v25 = vxor.u32 2147483648, %v4353_v27  ;;  %v1611_v12 = vsel %vm1609_vm15, %v1610_v49, %v5413_v55  ;;  %v4072_v26 = vadd.s32 4294967169, %v1244_v52  ;;  %v1541_v43 = vadd.s32 3, %v1537_v35 }
 0x19a   : > { %v1237_v54 = vsel %vm1235_vm9, %v1236_v23, %v4353_v27  ;;  %v1522_v20 = vshrl.u32 %v1504_v30, %v1520_v22  ;;  %v1525_v19 = vadd.s32 127, %v1524_v21  ;;  %v1612_v7 = vadd.s32 %v1611_v12, %v1607_v13 }
 0x19b   : > { %v1234_v41 = vsel %vm1232_vm12, %v4351_v1, %v1233_v25  ;;  %v1250_v18 = vadd.s32 1, %v4072_v26  ;;  %v1247_v16 = vand.u32 8388607, %v1240_v10  ;;  %v1347_v40 = vand.u32 2139095040, %v5432_v63 }
 0x19c   : > { %v1238_v51 = vsel %vm1231_vm0, %v1234_v41, %v1237_v54  ;;  %v1523_v4 = vor.u32 %v1522_v20, %v1521_v15  ;;  %v1526_v47 = vshll.u32 %v1525_v19, 23  ;;  %v1613_v61 = vadd.s32 536870912, %v1612_v7 }
 0x19d   : > { %v1239_v42 = vsel %vm1228_vm8, nan, %v1238_v51  ;;  %vm1251_vm1 = vcmp.gt.s32.totalorder %v1250_v18, 0  ;;  %v5453_v55 = vmul.f32 %v4698_v62, %v5442_v11  ;;  %v5455_v59 = vand.u32 3, %v1541_v43 }
 0x19e   : > { %3950 = vst.msk [vmem:[%s5029_s27 + $0x28] sm:$0xff] %vm3945_vm4, %v1239_v42  ;;  %v1527_v56 = vor.u32 4788187, %v1526_v47  ;;  %v1614_v50 = vshrl.u32 %v1613_v61, 30  ;;  %v1252_v36 = vsel %vm1251_vm1, %v1250_v18, 0  ;;  %v1530_v14 = vcvt.s32.f32 %v1523_v4 }
 0x19f   : > { %v1254_v48 = vand.u32 31, %v1252_v36  ;;  %vm1554_vm2 = vcmp.lt.s32.totalorder %v5247_v37, 0  ;;  %v1608_v35 = vadd.s32 %v5412_v0, %v5410_v9  ;;  %v1248_v13 = vor.u32 8388608, %v1247_v16 }
 0x1a0   : > { %v1528_v24 = vand.u32 2147483647, %v1527_v56  ;;  %v1615_v30 = vshll.u32 %v1614_v50, 30  ;;  %v1344_v1 = vand.u32 2147483647, %v5432_v63  ;;  %v1253_v27 = vshrl.u32 %v1252_v36, 5 }
 0x1a1   : > { %v1255_v52 = vsub.s32 32, %v1254_v48  ;;  %v1348_v23 = vshrl.u32 %v1347_v40, 23  ;;  %v1638_v22 = vsub.s32 4, %v1614_v50  ;;  %v1257_v21 = vshll.u32 %v7520_v53, %v1254_v48 }
 0x1a2   : > { %v1531_v8 = vmul.f32 %v1530_v14, %v1528_v24  ;;  %v5460_v49 = vsub.s32 %v1612_v7, %v1615_v30  ;;  %v1260_v9 = vshll.u32 %v7521_v60, %v1254_v48  ;;  %v1263_v20 = vshll.u32 %v7522_v31, %v1254_v48 }
 0x1a3   : > { %v1258_v25 = vshrl.u32 %v7521_v60, %v1255_v52  ;;  %v1261_v15 = vshrl.u32 %v7522_v31, %v1255_v52  ;;  %v1264_v0 = vshrl.u32 %v7523_v6, %v1255_v52  ;;  %v1266_v19 = vshll.u32 %v7523_v6, %v1254_v48 }
 0x1a4   : > { %v1532_v12 = vxor.u32 2147483648, %v1531_v8  ;;  %v1618_v26 = vsub.s32 0, %v5460_v49  ;;  %v1267_v7 = vshrl.u32 %v7524_v57, %v1255_v52  ;;  %v1269_v51 = vshll.u32 %v7524_v57, %v1254_v48 }
 0x1a5   : > { %v1259_v54 = vor.u32 %v1258_v25, %v1257_v21  ;;  %v1262_v18 = vor.u32 %v1261_v15, %v1260_v9  ;;  %v1265_v47 = vor.u32 %v1264_v0, %v1263_v20  ;;  %v1270_v42 = vshrl.u32 %v7525_v3, %v1255_v52 }
 0x1a6   : > { %v1533_v41 = vsel %vm1450_vm5, %v1532_v12, %v1531_v8  ;;  %v4085_v43 = vmin.u32 %v1618_v26, %v5460_v49  ;;  %v1268_v61 = vor.u32 %v1267_v7, %v1266_v19  ;;  %v1288_v56 = vshll.u32 %v1248_v13, 8 }
 0x1a7   : > { %v1536_v4 = vsel %vm5421_vm13, %v5157_v58, %v1533_v41  ;;  %v4076_v36 = vadd.s32 4294967169, %v1348_v23  ;;  %v1639_v40 = vsel %vm1554_vm2, %v1638_v22, %v1614_v50  ;;  %v1256_v24 = vshrl.u32 %v7520_v53, %v1255_v52 }
 0x1a8   : > { %4354 = vcosq.f32 %v1536_v4  ;;  %v1620_v16 = vclz %v4085_v43  ;;  %v1271_v14 = vor.u32 %v1270_v42, %v1269_v51  ;;  %vm5484_vm3 = vcmp.le.f32.partialorder %v1552_v33, 0.7853982 }
 0x1a9   : > { %4356 = vsinq.f32 %v1536_v4  ;;  %vm1272_vm5 = vcmp.lt.s32.totalorder %v1253_v27, 1  ;;  %vm1274_vm6 = vcmp.lt.s32.totalorder %v1253_v27, 3  ;;  %vm1275_vm10 = vcmp.lt.s32.totalorder %v1253_v27, 4 }
 0x1aa   : > { %v4086_v48 = vadd.s32 4294967294, %v1620_v16  ;;  %v1277_v30 = vsel %vm1275_vm10, %v1265_v47, 2102212464  ;;  %v1280_v13 = vsel %vm1272_vm5, %v1259_v54, %v1262_v18  ;;  %v1281_v8 = vsel %vm1275_vm10, %v1268_v61, 920167782 }
 0x1ab   : > { %v1284_v23 = vsel %vm1272_vm5, %v1262_v18, %v1265_v47  ;;  %vm1273_vm7 = vcmp.lt.s32.totalorder %v1253_v27, 2  ;;  %v1282_v50 = vsel %vm1274_vm6, %v1265_v47, %v1281_v8  ;;  %v1285_v52 = vsel %vm1275_vm10, %v1271_v14, 1326507024 }
 0x1ac   : > { %vm4087_vm11 = vcmp.lt.s32.totalorder %v4086_v48, 0  ;;  %v1276_v21 = vsel %vm1272_vm5, %v1256_v24, %v1259_v54  ;;  %v1283_v33 = vsel %vm1273_vm7, %v1280_v13, %v1282_v50  ;;  %v1286_v25 = vsel %vm1274_vm6, %v1268_v61, %v1285_v52 }
 0x1ad   : > { %v1623_v22 = vsel %vm4087_vm11, 0, %v4086_v48  ;;  %v1278_v26 = vsel %vm1274_vm6, %v1262_v18, %v1277_v30  ;;  %v1287_v9 = vsel %vm1273_vm7, %v1284_v23, %v1286_v25  ;;  %vm1540_vm8 = vweird.f32 %v5157_v58 }
 0x1ae   : > { %v1624_v15 = vsub.s32 32, %v1623_v22  ;;  %v1628_v12 = vsub.s32 4294967266, %v1623_v22  ;;  %v5494_v0 = vmul.u32.u64.low %v1288_v56, %v1287_v9  ;;  %v5495_v20 = vmul.u32.u64.high %v1288_v56, %v1287_v9, %v5494_v0 }
 0x1af   : > { %v5497_v19 = vmul.u32.u64.low %v1288_v56, %v1283_v33  ;;  %v5498_v7 = vmul.u32.u64.high %v1288_v56, %v1283_v33, %v5497_v19  ;;  %v1625_v54 = vshll.u32 %v5460_v49, %v1623_v22  ;;  %v1354_v51 = vadd.s32 1, %v4076_v36 }
 0x1b0   : > { %v1626_v41 = vshrl.u32 %v1608_v35, %v1624_v15  ;;  %v1629_v43 = vadd.s32 127, %v1628_v12  ;;  %vm1543_vm12 = vcmp.lt.s32.totalorder %v5455_v59, 2  ;;  %vm1547_vm9 = vcmp.eq.s32.totalorder %v5455_v59, 2 }
 0x1b1   : > { %v1279_v18 = vsel %vm1273_vm7, %v1276_v21, %v1278_v26  ;;  %v5507_v4 = vmul.f32 %v4714_v17, %v5442_v11  ;;  %v1351_v16 = vand.u32 8388607, %v1344_v1  ;;  %vm1355_vm13 = vcmp.gt.s32.totalorder %v1354_v51, 0 }
 0x1b2   : > { %v4355_v47 = vpop.eup %4354  ;;  %v1627_v61 = vor.u32 %v1626_v41, %v1625_v54  ;;  %v1630_v42 = vshll.u32 %v1629_v43, 23  ;;  %v1641_v36 = vsel %vm5484_vm3, 0, %v1639_v40  ;;  %vm1297_vm14 = vc.u32 %v5495_v20, %v5497_v19 }
 0x1b3   : > { %v4357_v35 = vpop.eup %4356  ;;  %v1548_v49 = vxor.u32 2147483648, %v4355_v47  ;;  %v1298_v27 = vadd.s32 1, %v5498_v7  ;;  %v1295_v14 = vmul.u32 %v1288_v56, %v1279_v18  ;;  %v1356_v48 = vsel %vm1355_vm13, %v1354_v51, 0 }
 0x1b4   : > { %v1545_v24 = vxor.u32 2147483648, %v4357_v35  ;;  %v1631_v11 = vor.u32 4788187, %v1630_v42  ;;  %vm1544_vm15 = vcmp.eq.s32.totalorder %v5455_v59, 0  ;;  %v1358_v8 = vand.u32 31, %v1356_v48 }
 0x1b5   : > { %v1549_v30 = vsel %vm1547_vm9, %v1548_v49, %v4357_v35  ;;  %v1299_v13 = vsel %vm1297_vm14, %v1298_v27, %v5498_v7  ;;  %v1634_v50 = vcvt.s32.f32 %v1627_v61  ;;  %v1645_v21 = vadd.s32 3, %v1641_v36 }
 0x1b6   : > { %v1546_v23 = vsel %vm1544_vm15, %v4355_v47, %v1545_v24  ;;  %v1632_v40 = vand.u32 2147483647, %v1631_v11  ;;  %v1300_v52 = vadd.s32 %v1299_v13, %v1295_v14  ;;  %v1352_v33 = vor.u32 8388608, %v1351_v16 }
 0x1b7   : > { %v1550_v22 = vsel %vm1543_vm12, %v1546_v23, %v1549_v30  ;;  %v1359_v56 = vsub.s32 32, %v1358_v8  ;;  %v1361_v26 = vshll.u32 %v7520_v53, %v1358_v8  ;;  %v1364_v0 = vshll.u32 %v7521_v60, %v1358_v8 }
 0x1b8   : > { %v1551_v25 = vsel %vm1540_vm8, nan, %v1550_v22  ;;  %v1635_v15 = vmul.f32 %v1634_v50, %v1632_v40  ;;  %v1301_v12 = vadd.s32 536870912, %v1300_v52  ;;  %v1367_v43 = vshll.u32 %v7522_v31, %v1358_v8 }
 0x1b9   : > { %3953 = vst [vmem:[%s5029_s27 + $0x40] sm:$0xff] %v1551_v25  ;;  %v1362_v9 = vshrl.u32 %v7521_v60, %v1359_v56  ;;  %v1365_v7 = vshrl.u32 %v7522_v31, %v1359_v56  ;;  %v1368_v59 = vshrl.u32 %v7523_v6, %v1359_v56  ;;  %v1371_v58 = vshrl.u32 %v7524_v57, %v1359_v56 }
 0x1ba   : > { %v1636_v54 = vxor.u32 2147483648, %v1635_v15  ;;  %v1302_v41 = vshrl.u32 %v1301_v12, 30  ;;  %v1357_v51 = vshrl.u32 %v1356_v48, 5  ;;  %v1370_v47 = vshll.u32 %v7523_v6, %v1358_v8 }
 0x1bb   : > { %v1363_v18 = vor.u32 %v1362_v9, %v1361_v26  ;;  %v553_v61 = vadd.f32 %v5453_v55, %v4632_v2  ;;  %vm1242_vm0 = vcmp.lt.s32.totalorder %v5403_v28, 0  ;;  %v1366_v35 = vor.u32 %v1365_v7, %v1364_v0 }
 0x1bc   : > { %v1637_v42 = vsel %vm1554_vm2, %v1636_v54, %v1635_v15  ;;  %v1303_v16 = vshll.u32 %v1302_v41, 30  ;;  %v1369_v49 = vor.u32 %v1368_v59, %v1367_v43  ;;  %v1372_v27 = vor.u32 %v1371_v58, %v1370_v47 }
 0x1bd   : > { %v1640_v36 = vsel %vm5484_vm3, %v5247_v37, %v1637_v42  ;;  %v1373_v24 = vshll.u32 %v7524_v57, %v1358_v8  ;;  %v1374_v11 = vshrl.u32 %v7525_v3, %v1359_v56  ;;  %v5543_v14 = vand.u32 3, %v1645_v21 }
 0x1be   : > { %4358 = vcosq.f32 %v1640_v36  ;;  %v5545_v2 = vsub.s32 %v1300_v52, %v1303_v16  ;;  %v1392_v55 = vshll.u32 %v1352_v33, 8  ;;  %vm1379_vm1 = vcmp.lt.s32.totalorder %v1357_v51, 4 }
 0x1bf   : > { %4360 = vsinq.f32 %v1640_v36  ;;  %v1375_v48 = vor.u32 %v1374_v11, %v1373_v24  ;;  %v5548_v30 = vadd.f32 %v4731_v34, %v553_v61  ;;  %v1360_v13 = vshrl.u32 %v7520_v53, %v1359_v56 }
 0x1c0   : > { %v1306_v46 = vsub.s32 0, %v5545_v2  ;;  %vm1376_vm2 = vcmp.lt.s32.totalorder %v1357_v51, 1  ;;  %v1381_v8 = vsel %vm1379_vm1, %v1369_v49, 2102212464  ;;  %v1326_v23 = vsub.s32 4, %v1302_v41 }
 0x1c1   : > { %vm1378_vm3 = vcmp.lt.s32.totalorder %v1357_v51, 3  ;;  %v1384_v40 = vsel %vm1376_vm2, %v1363_v18, %v1366_v35  ;;  %v1385_v50 = vsel %vm1379_vm1, %v1372_v27, 920167782  ;;  %vm1377_vm5 = vcmp.lt.s32.totalorder %v1357_v51, 2 }
 0x1c2   : > { %v4073_v52 = vmin.u32 %v1306_v46, %v5545_v2  ;;  %v1380_v22 = vsel %vm1376_vm2, %v1360_v13, %v1363_v18  ;;  %v1386_v21 = vsel %vm1378_vm3, %v1369_v49, %v1385_v50  ;;  %v1382_v33 = vsel %vm1378_vm3, %v1366_v35, %v1381_v8 }
 0x1c3   : > { %v1387_v25 = vsel %vm1377_vm5, %v1384_v40, %v1386_v21  ;;  %v1388_v15 = vsel %vm1376_vm2, %v1366_v35, %v1369_v49  ;;  %v1389_v56 = vsel %vm1379_vm1, %v1375_v48, 1326507024  ;;  %vm1647_vm6 = vcmp.lt.s32.totalorder %v5543_v14, 2 }
 0x1c4   : > { %vm1648_vm10 = vcmp.eq.s32.totalorder %v5543_v14, 0  ;;  %vm5563_vm11 = vcmp.le.f32.partialorder %v1240_v10, 0.7853982  ;;  %v1308_v26 = vclz %v4073_v52  ;;  %v1327_v9 = vsel %vm1242_vm0, %v1326_v23, %v1302_v41 }
 0x1c5   : > { %v1390_v0 = vsel %vm1378_vm3, %v1372_v27, %v1389_v56  ;;  %v5570_v7 = vmul.u32.u64.low %v1392_v55, %v1387_v25  ;;  %v5571_v59 = vmul.u32.u64.high %v1392_v55, %v1387_v25, %v5570_v7  ;;  %v1383_v43 = vsel %vm1377_vm5, %v1380_v22, %v1382_v33 }
 0x1c6   : > { %v4074_v54 = vadd.s32 4294967294, %v1308_v26  ;;  %v1391_v58 = vsel %vm1377_vm5, %v1388_v15, %v1390_v0  ;;  %v1867_v18 = vand.u32 2139095040, %v5548_v30  ;;  %vm1651_vm7 = vcmp.eq.s32.totalorder %v5543_v14, 2  ;;  %v456_v15 = vpop.permute.xlu1 %455 }
 0x1c7   : > { %v5577_v10 = vmul.u32.u64.low %v1392_v55, %v1391_v58  ;;  %v5578_v47 = vmul.u32.u64.high %v1392_v55, %v1391_v58, %v5577_v10  ;;  %v554_v41 = vadd.f32 %v5507_v4, %v4634_v38  ;;  %v1296_v42 = vadd.s32 %v5497_v19, %v5495_v20 }
 0x1c8   : > { %v4359_v61 = vpop.eup %4358  ;;  %vm4075_vm8 = vcmp.lt.s32.totalorder %v4074_v54, 0  ;;  %v1329_v16 = vsel %vm5563_vm11, 0, %v1327_v9  ;;  %v1868_v51 = vshrl.u32 %v1867_v18, 23  ;;  %v1399_v27 = vmul.u32 %v1392_v55, %v1383_v43 }
 0x1c9   : > { %v4361_v35 = vpop.eup %4360  ;;  %v1652_v49 = vxor.u32 2147483648, %v4359_v61  ;;  %v1311_v36 = vsel %vm4075_vm8, 0, %v4074_v54  ;;  %v1402_v24 = vadd.s32 1, %v5571_v59  ;;  %v1864_v38 = vand.u32 2147483647, %v5548_v30 }
 0x1ca   : > { %v1649_v11 = vxor.u32 2147483648, %v4361_v35  ;;  %v1312_v48 = vsub.s32 32, %v1311_v36  ;;  %v1316_v46 = vsub.s32 4294967266, %v1311_v36  ;;  %v1313_v19 = vshll.u32 %v5545_v2, %v1311_v36 }
 0x1cb   : > { %v1653_v20 = vsel %vm1651_vm7, %v1652_v49, %v4361_v35  ;;  %vm1401_vm12 = vc.u32 %v5578_v47, %v5570_v7  ;;  %v4096_v4 = vadd.s32 4294967169, %v1868_v51  ;;  %vm1644_vm9 = vweird.f32 %v5247_v37 }
 0x1cc   : > { %v1650_v13 = vsel %vm1648_vm10, %v4359_v61, %v1649_v11  ;;  %v1314_v55 = vshrl.u32 %v1296_v42, %v1312_v48  ;;  %v1317_v8 = vadd.s32 127, %v1316_v46  ;;  %v1403_v23 = vsel %vm1401_vm12, %v1402_v24, %v5571_v59 }
 0x1cd   : > { %v1654_v40 = vsel %vm1647_vm6, %v1650_v13, %v1653_v20  ;;  %v1404_v50 = vadd.s32 %v1403_v23, %v1399_v27  ;;  %v1874_v52 = vadd.s32 1, %v4096_v4  ;;  %v1333_v33 = vadd.s32 3, %v1329_v16 }
 0x1ce   : > { %v1655_v22 = vsel %vm1644_vm9, nan, %v1654_v40  ;;  %v1315_v21 = vor.u32 %v1314_v55, %v1313_v19  ;;  %v1318_v2 = vshll.u32 %v1317_v8, 23  ;;  %v5601_v26 = vadd.f32 %v4734_v5, %v554_v41 }
 0x1cf   : > { %3954 = vst.msk [vmem:[%s5029_s27 + $0x48] sm:$0xff] %vm3945_vm4, %v1655_v22  ;;  %v1405_v25 = vadd.s32 536870912, %v1404_v50  ;;  %vm1875_vm13 = vcmp.gt.s32.totalorder %v1874_v52, 0  ;;  %v1871_v37 = vand.u32 8388607, %v1864_v38  ;;  %v5606_v43 = vmul.f32 %v4698_v62, %v456_v15 }
 0x1d0   : > { %v1319_v56 = vor.u32 4788187, %v1318_v2  ;;  %v1876_v14 = vsel %vm1875_vm13, %v1874_v52, 0  ;;  %v1322_v54 = vcvt.s32.f32 %v1315_v21  ;;  %v5608_v58 = vand.u32 3, %v1333_v33 }
 0x1d1   : > { %v1406_v9 = vshrl.u32 %v1405_v25, 30  ;;  %v1878_v0 = vand.u32 31, %v1876_v14  ;;  %vm1346_vm14 = vcmp.lt.s32.totalorder %v5432_v63, 0  ;;  %v5612_v41 = vmul.f32 %v4714_v17, %v456_v15 }
 0x1d2   : > { %v1320_v59 = vand.u32 2147483647, %v1319_v56  ;;  %v1400_v42 = vadd.s32 %v5570_v7, %v5578_v47  ;;  %v1872_v16 = vor.u32 8388608, %v1871_v37  ;;  %v1968_v51 = vand.u32 2147483647, %v5601_v26 }
 0x1d3   : > { %v1407_v18 = vshll.u32 %v1406_v9, 30  ;;  %v1879_v10 = vsub.s32 32, %v1878_v0  ;;  %v5618_v49 = vshrl.u32 %v1876_v14, 5  ;;  %v1971_v27 = vand.u32 2139095040, %v5601_v26 }
 0x1d4   : > { %v1323_v61 = vmul.f32 %v1322_v54, %v1320_v59  ;;  %v1881_v11 = vshll.u32 %v7520_v53, %v1878_v0  ;;  %v1884_v47 = vshll.u32 %v7521_v60, %v1878_v0  ;;  %v1887_v20 = vshll.u32 %v7522_v31, %v1878_v0 }
 0x1d5   : > { %v5616_v35 = vsub.s32 %v1404_v50, %v1407_v18  ;;  %v1882_v36 = vshrl.u32 %v7521_v60, %v1879_v10  ;;  %v1885_v48 = vshrl.u32 %v7522_v31, %v1879_v10  ;;  %v1888_v46 = vshrl.u32 %v7523_v6, %v1879_v10 }
 0x1d6   : > { %v1324_v24 = vxor.u32 2147483648, %v1323_v61  ;;  %v1891_v19 = vshrl.u32 %v7524_v57, %v1879_v10  ;;  %v1430_v13 = vsub.s32 4, %v1406_v9  ;;  %v1890_v8 = vshll.u32 %v7523_v6, %v1878_v0 }
 0x1d7   : > { %v1410_v7 = vsub.s32 0, %v5616_v35  ;;  %v1883_v55 = vor.u32 %v1882_v36, %v1881_v11  ;;  %v1886_v50 = vor.u32 %v1885_v48, %v1884_v47  ;;  %v1889_v52 = vor.u32 %v1888_v46, %v1887_v20 }
 0x1d8   : > { %v1325_v4 = vsel %vm1242_vm0, %v1324_v24, %v1323_v61  ;;  %v1892_v22 = vor.u32 %v1891_v19, %v1890_v8  ;;  %v1893_v21 = vshll.u32 %v7524_v57, %v1878_v0  ;;  %v1894_v2 = vshrl.u32 %v7525_v3, %v1879_v10 }
 0x1d9   : > { %v1328_v23 = vsel %vm5563_vm11, %v5403_v28, %v1325_v4  ;;  %v4077_v40 = vmin.u32 %v1410_v7, %v5616_v35  ;;  %v5638_v25 = vshll.u32 %v1872_v16, 8  ;;  %v1972_v15 = vshrl.u32 %v1971_v27, 23 }
 0x1da   : > { %4362 = vcosq.f32 %v1328_v23  ;;  %v1431_v56 = vsel %vm1346_vm14, %v1430_v13, %v1406_v9  ;;  %v1880_v12 = vshrl.u32 %v7520_v53, %v1879_v10  ;;  %v1895_v37 = vor.u32 %v1894_v2, %v1893_v21 }
 0x1db   : > { %4364 = vsinq.f32 %v1328_v23  ;;  %v1412_v33 = vclz %v4077_v40  ;;  %vm1896_vm15 = vcmp.lt.s32.totalorder %v5618_v49, 1  ;;  %vm5646_vm0 = vcmp.le.f32.partialorder %v1344_v1, 0.7853982 }
 0x1dc   : > { %vm1898_vm1 = vcmp.lt.s32.totalorder %v5618_v49, 3  ;;  %vm1899_vm2 = vcmp.lt.s32.totalorder %v5618_v49, 4  ;;  %v1904_v59 = vsel %vm1896_vm15, %v1883_v55, %v1886_v50  ;;  %v1908_v18 = vsel %vm1896_vm15, %v1886_v50, %v1889_v52 }
 0x1dd   : > { %v4078_v0 = vadd.s32 4294967294, %v1412_v33  ;;  %v1901_v9 = vsel %vm1899_vm2, %v1889_v52, 2102212464  ;;  %v1905_v54 = vsel %vm1899_vm2, %v1892_v22, 920167782  ;;  %vm1897_vm5 = vcmp.lt.s32.totalorder %v5618_v49, 2 }
 0x1de   : > { %v1909_v10 = vsel %vm1899_vm2, %v1895_v37, 1326507024  ;;  %v1906_v1 = vsel %vm1898_vm1, %v1889_v52, %v1905_v54  ;;  %vm1335_vm6 = vcmp.lt.s32.totalorder %v5608_v58, 2  ;;  %v1900_v36 = vsel %vm1896_vm15, %v1880_v12, %v1883_v55 }
 0x1df   : > { %vm4079_vm3 = vcmp.lt.s32.totalorder %v4078_v0, 0  ;;  %v1910_v61 = vsel %vm1898_vm1, %v1892_v22, %v1909_v10  ;;  %v1907_v27 = vsel %vm1897_vm5, %v1904_v59, %v1906_v1  ;;  %vm1332_vm10 = vweird.f32 %v5403_v28 }
 0x1e0   : > { %v1415_v16 = vsel %vm4079_vm3, 0, %v4078_v0  ;;  %v1911_v24 = vsel %vm1897_vm5, %v1908_v18, %v1910_v61  ;;  %v1902_v46 = vsel %vm1898_vm1, %v1886_v50, %v1901_v9  ;;  %v4100_v7 = vadd.s32 4294967169, %v1972_v15 }
 0x1e1   : > { %v1416_v11 = vsub.s32 32, %v1415_v16  ;;  %v1420_v48 = vsub.s32 4294967266, %v1415_v16  ;;  %v5672_v47 = vmul.u32.u64.low %v5638_v25, %v1911_v24  ;;  %v5673_v20 = vmul.u32.u64.high %v5638_v25, %v1911_v24, %v5672_v47 }
 0x1e2   : > { %v5676_v19 = vmul.u32.u64.low %v5638_v25, %v1907_v27  ;;  %v5677_v4 = vmul.u32.u64.high %v5638_v25, %v1907_v27, %v5676_v19  ;;  %v1417_v13 = vshll.u32 %v5616_v35, %v1415_v16  ;;  %v1978_v23 = vadd.s32 1, %v4100_v7 }
 0x1e3   : > { %v1418_v55 = vshrl.u32 %v1400_v42, %v1416_v11  ;;  %v1421_v8 = vadd.s32 127, %v1420_v48  ;;  %vm1336_vm11 = vcmp.eq.s32.totalorder %v5608_v58, 0  ;;  %vm1339_vm7 = vcmp.eq.s32.totalorder %v5608_v58, 2 }
 0x1e4   : > { %v4363_v40 = vpop.eup %4362  ;;  %v1903_v50 = vsel %vm1897_vm5, %v1900_v36, %v1902_v46  ;;  %v5687_v52 = vand.u32 8388607, %v1968_v51  ;;  %vm1979_vm8 = vcmp.gt.s32.totalorder %v1978_v23, 0  ;;  %v1433_v35 = vsel %vm5646_vm0, 0, %v1431_v56 }
 0x1e5   : > { %v4365_v22 = vpop.eup %4364  ;;  %v1340_v21 = vxor.u32 2147483648, %v4363_v40  ;;  %v1419_v2 = vor.u32 %v1418_v55, %v1417_v13  ;;  %v1422_v33 = vshll.u32 %v1421_v8, 23  ;;  %vm1921_vm12 = vc.u32 %v5673_v20, %v5676_v19 }
 0x1e6   : > { %v1337_v42 = vxor.u32 2147483648, %v4365_v22  ;;  %v1922_v15 = vadd.s32 1, %v5677_v4  ;;  %v1919_v37 = vmul.u32 %v5638_v25, %v1903_v50  ;;  %v1980_v0 = vsel %vm1979_vm8, %v1978_v23, 0 }
 0x1e7   : > { %v1341_v49 = vsel %vm1339_vm7, %v1340_v21, %v4365_v22  ;;  %v1423_v12 = vor.u32 4788187, %v1422_v33  ;;  %v1976_v54 = vor.u32 8388608, %v5687_v52  ;;  %v1982_v18 = vand.u32 31, %v1980_v0 }
 0x1e8   : > { %v1338_v59 = vsel %vm1336_vm11, %v4363_v40, %v1337_v42  ;;  %v1923_v9 = vsel %vm1921_vm12, %v1922_v15, %v5677_v4  ;;  %v1426_v1 = vcvt.s32.f32 %v1419_v2  ;;  %v1437_v36 = vadd.s32 3, %v1433_v35 }
 0x1e9   : > { %v1342_v56 = vsel %vm1335_vm6, %v1338_v59, %v1341_v49  ;;  %v1424_v10 = vand.u32 2147483647, %v1423_v12  ;;  %v1924_v61 = vadd.s32 %v1923_v9, %v1919_v37  ;;  %v1983_v25 = vsub.s32 32, %v1982_v18 }
 0x1ea   : > { %v1343_v16 = vsel %vm1332_vm10, nan, %v1342_v56  ;;  %v551_v27 = vadd.f32 %v5606_v43, %v4624_v29  ;;  %v1981_v48 = vshrl.u32 %v1980_v0, 5  ;;  %v1985_v46 = vshll.u32 %v7520_v53, %v1982_v18 }
 0x1eb   : > { %v1427_v24 = vmul.f32 %v1426_v1, %v1424_v10  ;;  %3951 = vst [vmem:[%s5029_s27 + $0x30] sm:$0xff] %v1343_v16  ;;  %v1925_v11 = vadd.s32 536870912, %v1924_v61  ;;  %v1986_v58 = vshrl.u32 %v7521_v60, %v1983_v25  ;;  %v1988_v7 = vshll.u32 %v7521_v60, %v1982_v18 }
 0x1ec   : > { %v1989_v47 = vshrl.u32 %v7522_v31, %v1983_v25  ;;  %v1992_v28 = vshrl.u32 %v7523_v6, %v1983_v25  ;;  %v1991_v55 = vshll.u32 %v7522_v31, %v1982_v18  ;;  %v1995_v29 = vshrl.u32 %v7524_v57, %v1983_v25 }
 0x1ed   : > { %v1428_v4 = vxor.u32 2147483648, %v1427_v24  ;;  %v1926_v13 = vshrl.u32 %v1925_v11, 30  ;;  %v1987_v43 = vor.u32 %v1986_v58, %v1985_v46  ;;  %v1994_v8 = vshll.u32 %v7523_v6, %v1982_v18 }
 0x1ee   : > { %v1997_v23 = vshll.u32 %v7524_v57, %v1982_v18  ;;  %v1998_v40 = vshrl.u32 %v7525_v3, %v1983_v25  ;;  %v1990_v22 = vor.u32 %v1989_v47, %v1988_v7  ;;  %v1993_v21 = vor.u32 %v1992_v28, %v1991_v55 }
 0x1ef   : > { %v1429_v50 = vsel %vm1346_vm14, %v1428_v4, %v1427_v24  ;;  %v1927_v52 = vshll.u32 %v1926_v13, 30  ;;  %v5721_v33 = vand.u32 3, %v1437_v36  ;;  %v1996_v42 = vor.u32 %v1995_v29, %v1994_v8 }
 0x1f0   : > { %v1432_v2 = vsel %vm5646_vm0, %v5432_v63, %v1429_v50  ;;  %v1999_v35 = vor.u32 %v1998_v40, %v1997_v23  ;;  %v1984_v49 = vshrl.u32 %v7520_v53, %v1983_v25  ;;  %v5727_v12 = vadd.f32 %v4731_v34, %v551_v27 }
 0x1f1   : > { %4366 = vcosq.f32 %v1432_v2  ;;  %v5723_v15 = vsub.s32 %v1924_v61, %v1927_v52  ;;  %v1950_v37 = vsub.s32 4, %v1926_v13  ;;  %vm2000_vm9 = vcmp.lt.s32.totalorder %v1981_v48, 1 }
 0x1f2   : > { %4368 = vsinq.f32 %v1432_v2  ;;  %vm2003_vm13 = vcmp.lt.s32.totalorder %v1981_v48, 4  ;;  %vm2001_vm14 = vcmp.lt.s32.totalorder %v1981_v48, 2  ;;  %v2008_v59 = vsel %vm2000_vm9, %v1987_v43, %v1990_v22 }
 0x1f3   : > { %v1930_v0 = vsub.s32 0, %v5723_v15  ;;  %v2005_v14 = vsel %vm2003_vm13, %v1993_v21, 2102212464  ;;  %vm2002_vm15 = vcmp.lt.s32.totalorder %v1981_v48, 3  ;;  %v2004_v9 = vsel %vm2000_vm9, %v1984_v49, %v1987_v43 }
 0x1f4   : > { %v2009_v18 = vsel %vm2003_vm13, %v1996_v42, 920167782  ;;  %v2013_v56 = vsel %vm2003_vm13, %v1999_v35, 1326507024  ;;  %v2006_v1 = vsel %vm2002_vm15, %v1990_v22, %v2005_v14  ;;  %v2012_v16 = vsel %vm2000_vm9, %v1990_v22, %v1993_v21 }
 0x1f5   : > { %v4097_v10 = vmin.u32 %v1930_v0, %v5723_v15  ;;  %v2010_v61 = vsel %vm2002_vm15, %v1993_v21, %v2009_v18  ;;  %vm1866_vm0 = vcmp.lt.s32.totalorder %v5548_v30, 0  ;;  %v2014_v25 = vsel %vm2002_vm15, %v1996_v42, %v2013_v56 }
 0x1f6   : > { %v2011_v36 = vsel %vm2001_vm14, %v2008_v59, %v2010_v61  ;;  %v2016_v27 = vshll.u32 %v1976_v54, 8  ;;  %vm1439_vm1 = vcmp.lt.s32.totalorder %v5721_v33, 2  ;;  %vm5736_vm2 = vcmp.le.f32.partialorder %v1864_v38, 0.7853982 }
 0x1f7   : > { %v1932_v11 = vclz %v4097_v10  ;;  %v1951_v46 = vsel %vm1866_vm0, %v1950_v37, %v1926_v13  ;;  %vm1436_vm3 = vweird.f32 %v5432_v63  ;;  %v2007_v58 = vsel %vm2001_vm14, %v2004_v9, %v2006_v1 }
 0x1f8   : > { %v2015_v7 = vsel %vm2001_vm14, %v2012_v16, %v2014_v25  ;;  %v5745_v47 = vmul.u32.u64.low %v2016_v27, %v2011_v36  ;;  %v5746_v54 = vmul.u32.u64.high %v2016_v27, %v2011_v36, %v5745_v47  ;;  %v1656_v38 = vand.u32 2147483647, %v5727_v12  ;;  %v468_v36 = vpop.permute.xlu0 %467 }
 0x1f9   : > { %v4098_v28 = vadd.s32 4294967294, %v1932_v11  ;;  %v5748_v4 = vmul.u32.u64.low %v2016_v27, %v2015_v7  ;;  %v5749_v55 = vmul.u32.u64.high %v2016_v27, %v2015_v7, %v5748_v4  ;;  %vm1440_vm5 = vcmp.eq.s32.totalorder %v5721_v33, 0 }
 0x1fa   : > { %vm1443_vm6 = vcmp.eq.s32.totalorder %v5721_v33, 2  ;;  %v552_v13 = vadd.f32 %v5612_v41, %v4626_v32  ;;  %v1659_v29 = vand.u32 2139095040, %v5727_v12  ;;  %v1920_v43 = vadd.s32 %v5676_v19, %v5673_v20 }
 0x1fb   : > { %v4367_v48 = vpop.eup %4366  ;;  %vm4099_vm10 = vcmp.lt.s32.totalorder %v4098_v28, 0  ;;  %v1953_v8 = vsel %vm5736_vm2, 0, %v1951_v46  ;;  %v2023_v23 = vmul.u32 %v2016_v27, %v2007_v58  ;;  %v2026_v22 = vadd.s32 1, %v5746_v54 }
 0x1fc   : > { %v4369_v40 = vpop.eup %4368  ;;  %v1444_v50 = vxor.u32 2147483648, %v4367_v48  ;;  %v1935_v52 = vsel %vm4099_vm10, 0, %v4098_v28  ;;  %v1660_v21 = vshrl.u32 %v1659_v29, 23  ;;  %v1663_v41 = vand.u32 8388607, %v1656_v38 }
 0x1fd   : > { %v1441_v2 = vxor.u32 2147483648, %v4369_v40  ;;  %v1936_v42 = vsub.s32 32, %v1935_v52  ;;  %v1940_v32 = vsub.s32 4294967266, %v1935_v52  ;;  %v1937_v19 = vshll.u32 %v5723_v15, %v1935_v52 }
 0x1fe   : > { %v1445_v20 = vsel %vm1443_vm6, %v1444_v50, %v4369_v40  ;;  %vm2025_vm11 = vc.u32 %v5749_v55, %v5745_v47  ;;  %v4088_v35 = vadd.s32 4294967169, %v1660_v21  ;;  %v5774_v18 = vadd.f32 %v4734_v5, %v552_v13 }
 0x1ff   : > { %v1442_v49 = vsel %vm1440_vm5, %v4367_v48, %v1441_v2  ;;  %v1938_v37 = vshrl.u32 %v1920_v43, %v1936_v42  ;;  %v1941_v0 = vadd.s32 127, %v1940_v32  ;;  %v2027_v14 = vsel %vm2025_vm11, %v2026_v22, %v5746_v54 }
 0x200   : > { %v1446_v59 = vsel %vm1439_vm1, %v1442_v49, %v1445_v20  ;;  %v2028_v9 = vadd.s32 %v2027_v14, %v2023_v23  ;;  %v1666_v56 = vadd.s32 1, %v4088_v35  ;;  %v1957_v61 = vadd.s32 3, %v1953_v8 }
 0x201   : > { %v1447_v15 = vsel %vm1436_vm3, nan, %v1446_v59  ;;  %v1939_v10 = vor.u32 %v1938_v37, %v1937_v19  ;;  %v1942_v1 = vshll.u32 %v1941_v0, 23  ;;  %v1664_v27 = vor.u32 8388608, %v1663_v41 }
 0x202   : > { %3952 = vst.msk [vmem:[%s5029_s27 + $0x38] sm:$0xff] %vm3945_vm4, %v1447_v15  ;;  %v2029_v16 = vadd.s32 536870912, %v2028_v9  ;;  %vm1667_vm7 = vcmp.gt.s32.totalorder %v1666_v56, 0  ;;  %vm1970_vm8 = vcmp.lt.s32.totalorder %v5601_v26, 0  ;;  %v1763_v58 = vand.u32 2139095040, %v5774_v18 }
 0x203   : > { %v1943_v25 = vor.u32 4788187, %v1942_v1  ;;  %v1668_v33 = vsel %vm1667_vm7, %v1666_v56, 0  ;;  %v1946_v63 = vcvt.s32.f32 %v1939_v10  ;;  %v5783_v54 = vmul.f32 %v4698_v62, %v468_v36 }
 0x204   : > { %v2030_v11 = vshrl.u32 %v2029_v16, 30  ;;  %v1670_v46 = vand.u32 31, %v1668_v33  ;;  %v5786_v28 = vmul.f32 %v4714_v17, %v468_v36  ;;  %v5788_v4 = vand.u32 3, %v1957_v61 }
 0x205   : > { %v1944_v7 = vand.u32 2147483647, %v1943_v25  ;;  %vm5792_vm12 = vcmp.le.f32.partialorder %v1968_v51, 0.7853982  ;;  %v1760_v43 = vand.u32 2147483647, %v5774_v18  ;;  %v2024_v23 = vadd.s32 %v5745_v47, %v5749_v55 }
 0x206   : > { %v2031_v29 = vshll.u32 %v2030_v11, 30  ;;  %v1671_v48 = vsub.s32 32, %v1670_v46  ;;  %v2054_v40 = vsub.s32 4, %v2030_v11  ;;  %v5798_v50 = vshll.u32 %v1664_v27, 8 }
 0x207   : > { %v1947_v8 = vmul.f32 %v1946_v63, %v1944_v7  ;;  %v5802_v22 = vshrl.u32 %v1668_v33, 5  ;;  %v1764_v51 = vshrl.u32 %v1763_v58, 23  ;;  %v1673_v42 = vshll.u32 %v7520_v53, %v1670_v46 }
 0x208   : > { %v5800_v52 = vsub.s32 %v2028_v9, %v2031_v29  ;;  %v1674_v21 = vshrl.u32 %v7521_v60, %v1671_v48  ;;  %v1677_v32 = vshrl.u32 %v7522_v31, %v1671_v48  ;;  %v1680_v41 = vshrl.u32 %v7523_v6, %v1671_v48 }
 0x209   : > { %v1948_v2 = vxor.u32 2147483648, %v1947_v8  ;;  %v1676_v47 = vshll.u32 %v7521_v60, %v1670_v46  ;;  %v1679_v55 = vshll.u32 %v7522_v31, %v1670_v46  ;;  %v1683_v19 = vshrl.u32 %v7524_v57, %v1671_v48 }
 0x20a   : > { %v2034_v20 = vsub.s32 0, %v5800_v52  ;;  %v2055_v49 = vsel %vm1970_vm8, %v2054_v40, %v2030_v11  ;;  %v1675_v37 = vor.u32 %v1674_v21, %v1673_v42  ;;  %v1682_v0 = vshll.u32 %v7523_v6, %v1670_v46 }
 0x20b   : > { %v1949_v35 = vsel %vm1866_vm0, %v1948_v2, %v1947_v8  ;;  %v1678_v9 = vor.u32 %v1677_v32, %v1676_v47  ;;  %v1681_v56 = vor.u32 %v1680_v41, %v1679_v55  ;;  %v1685_v10 = vshll.u32 %v7524_v57, %v1670_v46 }
 0x20c   : > { %v1952_v14 = vsel %vm5736_vm2, %v5548_v30, %v1949_v35  ;;  %v4101_v59 = vmin.u32 %v2034_v20, %v5800_v52  ;;  %v1684_v15 = vor.u32 %v1683_v19, %v1682_v0  ;;  %v1686_v1 = vshrl.u32 %v7525_v3, %v1671_v48 }
 0x20d   : > { %4370 = vcosq.f32 %v1952_v14  ;;  %v4092_v16 = vadd.s32 4294967169, %v1764_v51  ;;  %v5825_v36 = vand.u32 8388607, %v1760_v43  ;;  %v2057_v24 = vsel %vm5792_vm12, 0, %v2055_v49 }
 0x20e   : > { %4372 = vsinq.f32 %v1952_v14  ;;  %v2036_v61 = vclz %v4101_v59  ;;  %v1672_v25 = vshrl.u32 %v7520_v53, %v1671_v48  ;;  %v1687_v27 = vor.u32 %v1686_v1, %v1685_v10 }
 0x20f   : > { %vm1688_vm9 = vcmp.lt.s32.totalorder %v5802_v22, 1  ;;  %vm1690_vm13 = vcmp.lt.s32.totalorder %v5802_v22, 3  ;;  %vm1691_vm14 = vcmp.lt.s32.totalorder %v5802_v22, 4  ;;  %vm1960_vm15 = vcmp.eq.s32.totalorder %v5788_v4, 0 }
 0x210   : > { %v4102_v33 = vadd.s32 4294967294, %v2036_v61  ;;  %v1696_v11 = vsel %vm1688_vm9, %v1675_v37, %v1678_v9  ;;  %v1693_v46 = vsel %vm1691_vm14, %v1681_v56, 2102212464  ;;  %v1697_v58 = vsel %vm1691_vm14, %v1684_v15, 920167782 }
 0x211   : > { %v1700_v7 = vsel %vm1688_vm9, %v1678_v9, %v1681_v56  ;;  %v1701_v63 = vsel %vm1691_vm14, %v1687_v27, 1326507024  ;;  %vm1689_vm1 = vcmp.lt.s32.totalorder %v5802_v22, 2  ;;  %v1698_v29 = vsel %vm1690_vm13, %v1681_v56, %v1697_v58 }
 0x212   : > { %vm4103_vm0 = vcmp.lt.s32.totalorder %v4102_v33, 0  ;;  %v1702_v48 = vsel %vm1690_vm13, %v1684_v15, %v1701_v63  ;;  %vm1959_vm2 = vcmp.lt.s32.totalorder %v5788_v4, 2  ;;  %v1692_v40 = vsel %vm1688_vm9, %v1672_v25, %v1675_v37 }
 0x213   : > { %v2039_v8 = vsel %vm4103_vm0, 0, %v4102_v33  ;;  %v1699_v21 = vsel %vm1689_vm1, %v1696_v11, %v1698_v29  ;;  %v1703_v51 = vsel %vm1689_vm1, %v1700_v7, %v1702_v48  ;;  %vm1956_vm3 = vweird.f32 %v5548_v30 }
 0x214   : > { %v2040_v2 = vsub.s32 32, %v2039_v8  ;;  %v2044_v42 = vsub.s32 4294967266, %v2039_v8  ;;  %v1694_v32 = vsel %vm1690_vm13, %v1678_v9, %v1693_v46  ;;  %v1770_v41 = vadd.s32 1, %v4092_v16 }
 0x215   : > { %v5854_v20 = vmul.u32.u64.low %v5798_v50, %v1703_v51  ;;  %v5855_v47 = vmul.u32.u64.high %v5798_v50, %v1703_v51, %v5854_v20  ;;  %v5858_v55 = vmul.u32.u64.low %v5798_v50, %v1699_v21  ;;  %v5859_v19 = vmul.u32.u64.high %v5798_v50, %v1699_v21, %v5858_v55 }
 0x216   : > { %v2041_v35 = vshll.u32 %v5800_v52, %v2039_v8  ;;  %v2042_v49 = vshrl.u32 %v2024_v23, %v2040_v2  ;;  %v2045_v37 = vadd.s32 127, %v2044_v42  ;;  %vm1771_vm5 = vcmp.gt.s32.totalorder %v1770_v41, 0 }
 0x217   : > { %v4371_v0 = vpop.eup %4370  ;;  %vm1963_vm6 = vcmp.eq.s32.totalorder %v5788_v4, 2  ;;  %v1695_v14 = vsel %vm1689_vm1, %v1692_v40, %v1694_v32  ;;  %v1768_v59 = vor.u32 8388608, %v5825_v36  ;;  %v1772_v9 = vsel %vm1771_vm5, %v1770_v41, 0 }
 0x218   : > { %v4373_v56 = vpop.eup %4372  ;;  %v1964_v15 = vxor.u32 2147483648, %v4371_v0  ;;  %v2043_v10 = vor.u32 %v2042_v49, %v2041_v35  ;;  %v2046_v1 = vshll.u32 %v2045_v37, 23  ;;  %v557_v61 = vadd.f32 %v5783_v54, %v4647_v44 }
 0x219   : > { %v1961_v52 = vxor.u32 2147483648, %v4373_v56  ;;  %v2061_v23 = vadd.s32 3, %v2057_v24  ;;  %vm1713_vm10 = vc.u32 %v5855_v47, %v5858_v55  ;;  %v1714_v16 = vadd.s32 1, %v5859_v19 }
 0x21a   : > { %v1965_v25 = vsel %vm1963_vm6, %v1964_v15, %v4373_v56  ;;  %v2047_v22 = vor.u32 4788187, %v2046_v1  ;;  %v1711_v36 = vmul.u32 %v5798_v50, %v1695_v14  ;;  %v1774_v27 = vand.u32 31, %v1772_v9 }
 0x21b   : > { %v1962_v33 = vsel %vm1960_vm15, %v4371_v0, %v1961_v52  ;;  %v2050_v11 = vcvt.s32.f32 %v2043_v10  ;;  %v1715_v46 = vsel %vm1713_vm10, %v1714_v16, %v5859_v19  ;;  %v5878_v44 = vadd.f32 %v5786_v28, %v4650_v45 }
 0x21c   : > { %v1966_v54 = vsel %vm1959_vm2, %v1962_v33, %v1965_v25  ;;  %v2048_v24 = vand.u32 2147483647, %v2047_v22  ;;  %v1716_v58 = vadd.s32 %v1715_v46, %v1711_v36  ;;  %v1775_v7 = vsub.s32 32, %v1774_v27 }
 0x21d   : > { %v1967_v50 = vsel %vm1956_vm3, nan, %v1966_v54  ;;  %v5884_v63 = vand.u32 3, %v2061_v23  ;;  %v1773_v29 = vshrl.u32 %v1772_v9, 5  ;;  %v1777_v48 = vshll.u32 %v7520_v53, %v1774_v27 }
 0x21e   : > { %v2051_v8 = vmul.f32 %v2050_v11, %v2048_v24  ;;  %3957 = vst [vmem:[%s5029_s27 + $0x60] sm:$0xff] %v1967_v50  ;;  %v1717_v40 = vadd.s32 536870912, %v1716_v58  ;;  %v1778_v45 = vshrl.u32 %v7521_v60, %v1775_v7  ;;  %v1780_v28 = vshll.u32 %v7521_v60, %v1774_v27 }
 0x21f   : > { %v1781_v4 = vshrl.u32 %v7522_v31, %v1775_v7  ;;  %v1783_v21 = vshll.u32 %v7522_v31, %v1774_v27  ;;  %v1784_v51 = vshrl.u32 %v7523_v6, %v1775_v7  ;;  %v1787_v30 = vshrl.u32 %v7524_v57, %v1775_v7 }
 0x220   : > { %v2052_v2 = vxor.u32 2147483648, %v2051_v8  ;;  %v1718_v42 = vshrl.u32 %v1717_v40, 30  ;;  %v1779_v32 = vor.u32 %v1778_v45, %v1777_v48  ;;  %v1786_v41 = vshll.u32 %v7523_v6, %v1774_v27 }
 0x221   : > { %v1782_v20 = vor.u32 %v1781_v4, %v1780_v28  ;;  %v1785_v19 = vor.u32 %v1784_v51, %v1783_v21  ;;  %v1789_v35 = vshll.u32 %v7524_v57, %v1774_v27  ;;  %v1790_v49 = vshrl.u32 %v7525_v3, %v1775_v7 }
 0x222   : > { %v2053_v37 = vsel %vm1970_vm8, %v2052_v2, %v2051_v8  ;;  %v1719_v0 = vshll.u32 %v1718_v42, 30  ;;  %v1788_v14 = vor.u32 %v1787_v30, %v1786_v41  ;;  %v5899_v9 = vshll.u32 %v1768_v59, 8 }
 0x223   : > { %v2056_v56 = vsel %vm5792_vm12, %v5601_v26, %v2053_v37  ;;  %v1791_v15 = vor.u32 %v1790_v49, %v1789_v35  ;;  %vm1792_vm11 = vcmp.lt.s32.totalorder %v1773_v29, 1  ;;  %v5905_v10 = vadd.f32 %v4731_v34, %v557_v61 }
 0x224   : > { %4374 = vcosq.f32 %v2056_v56  ;;  %v5907_v1 = vsub.s32 %v1716_v58, %v1719_v0  ;;  %vm1793_vm7 = vcmp.lt.s32.totalorder %v1773_v29, 2  ;;  %vm1795_vm9 = vcmp.lt.s32.totalorder %v1773_v29, 4 }
 0x225   : > { %4376 = vsinq.f32 %v2056_v56  ;;  %v1776_v52 = vshrl.u32 %v7520_v53, %v1775_v7  ;;  %v1797_v23 = vsel %vm1795_vm9, %v1785_v19, 2102212464  ;;  %v1800_v59 = vsel %vm1792_vm11, %v1779_v32, %v1782_v20 }
 0x226   : > { %v1722_v16 = vsub.s32 0, %v5907_v1  ;;  %v1742_v13 = vsub.s32 4, %v1718_v42  ;;  %vm1794_vm8 = vcmp.lt.s32.totalorder %v1773_v29, 3  ;;  %v1801_v25 = vsel %vm1795_vm9, %v1788_v14, 920167782 }
 0x227   : > { %v1796_v22 = vsel %vm1792_vm11, %v1776_v52, %v1779_v32  ;;  %v1802_v61 = vsel %vm1794_vm8, %v1785_v19, %v1801_v25  ;;  %v1804_v36 = vsel %vm1792_vm11, %v1782_v20, %v1785_v19  ;;  %v1805_v27 = vsel %vm1795_vm9, %v1791_v15, 1326507024 }
 0x228   : > { %v4089_v33 = vmin.u32 %v1722_v16, %v5907_v1  ;;  %v1798_v11 = vsel %vm1794_vm8, %v1782_v20, %v1797_v23  ;;  %v1803_v46 = vsel %vm1793_vm7, %v1800_v59, %v1802_v61  ;;  %v1806_v54 = vsel %vm1794_vm8, %v1788_v14, %v1805_v27  ;;  %v5965_v27 = vpop.permute.xlu1 %463 }
 0x229   : > { %vm1658_vm12 = vcmp.lt.s32.totalorder %v5727_v12, 0  ;;  %v1807_v24 = vsel %vm1793_vm7, %v1804_v36, %v1806_v54  ;;  %v5919_v58 = vmul.u32.u64.low %v5899_v9, %v1803_v46  ;;  %v5920_v7 = vmul.u32.u64.high %v5899_v9, %v1803_v46, %v5919_v58 }
 0x22a   : > { %vm5925_vm13 = vcmp.le.f32.partialorder %v1656_v38, 0.7853982  ;;  %v1724_v48 = vclz %v4089_v33  ;;  %v1743_v8 = vsel %vm1658_vm12, %v1742_v13, %v1718_v42  ;;  %v1799_v40 = vsel %vm1793_vm7, %v1796_v22, %v1798_v11 }
 0x22b   : > { %v5933_v45 = vmul.u32.u64.low %v5899_v9, %v1807_v24  ;;  %v5934_v28 = vmul.u32.u64.high %v5899_v9, %v1807_v24, %v5933_v45  ;;  %v2280_v4 = vand.u32 2147483647, %v5905_v10  ;;  %vm2063_vm14 = vcmp.lt.s32.totalorder %v5884_v63, 2 }
 0x22c   : > { %v4090_v21 = vadd.s32 4294967294, %v1724_v48  ;;  %v5940_v38 = vadd.f32 %v4734_v5, %v5878_v44  ;;  %v2283_v51 = vand.u32 2139095040, %v5905_v10  ;;  %vm2064_vm15 = vcmp.eq.s32.totalorder %v5884_v63, 0 }
 0x22d   : > { %vm2067_vm0 = vcmp.eq.s32.totalorder %v5884_v63, 2  ;;  %v1712_v29 = vadd.s32 %v5858_v55, %v5855_v47  ;;  %v1818_v30 = vadd.s32 1, %v5920_v7  ;;  %v1745_v42 = vsel %vm5925_vm13, 0, %v1743_v8 }
 0x22e   : > { %v4375_v2 = vpop.eup %4374  ;;  %vm4091_vm1 = vcmp.lt.s32.totalorder %v4090_v21, 0  ;;  %v1815_v32 = vmul.u32 %v5899_v9, %v1799_v40  ;;  %v2284_v44 = vshrl.u32 %v2283_v51, 23  ;;  %vm1817_vm2 = vc.u32 %v5934_v28, %v5919_v58 }
 0x22f   : > { %v4377_v41 = vpop.eup %4376  ;;  %v2068_v20 = vxor.u32 2147483648, %v4375_v2  ;;  %v1727_v19 = vsel %vm4091_vm1, 0, %v4090_v21  ;;  %v2287_v35 = vand.u32 8388607, %v2280_v4  ;;  %v2387_v37 = vand.u32 2139095040, %v5940_v38 }
 0x230   : > { %v2065_v47 = vxor.u32 2147483648, %v4377_v41  ;;  %v1728_v55 = vsub.s32 32, %v1727_v19  ;;  %v1732_v49 = vsub.s32 4294967266, %v1727_v19  ;;  %v1729_v14 = vshll.u32 %v5907_v1, %v1727_v19 }
 0x231   : > { %v2069_v0 = vsel %vm2067_vm0, %v2068_v20, %v4377_v41  ;;  %v1819_v9 = vsel %vm1817_vm2, %v1818_v30, %v5920_v7  ;;  %v4112_v56 = vadd.s32 4294967169, %v2284_v44  ;;  %vm2060_vm3 = vweird.f32 %v5601_v26 }
 0x232   : > { %v2066_v15 = vsel %vm2064_vm15, %v4375_v2, %v2065_v47  ;;  %v1730_v52 = vshrl.u32 %v1712_v29, %v1728_v55  ;;  %v1733_v23 = vadd.s32 127, %v1732_v49  ;;  %v1820_v59 = vadd.s32 %v1819_v9, %v1815_v32 }
 0x233   : > { %v2070_v16 = vsel %vm2063_vm14, %v2066_v15, %v2069_v0  ;;  %v1749_v13 = vadd.s32 3, %v1745_v42  ;;  %v2290_v25 = vadd.s32 1, %v4112_v56  ;;  %v2288_v33 = vor.u32 8388608, %v2287_v35 }
 0x234   : > { %v2071_v22 = vsel %vm2060_vm3, nan, %v2070_v16  ;;  %v1731_v61 = vor.u32 %v1730_v52, %v1729_v14  ;;  %v1734_v1 = vshll.u32 %v1733_v23, 23  ;;  %v1821_v36 = vadd.s32 536870912, %v1820_v59 }
 0x235   : > { %3958 = vst.msk [vmem:[%s5029_s27 + $0x68] sm:$0xff] %vm3945_vm4, %v2071_v22  ;;  %vm2291_vm5 = vcmp.gt.s32.totalorder %v2290_v25, 0  ;;  %v2388_v24 = vshrl.u32 %v2387_v37, 23  ;;  %v5969_v26 = vand.u32 3, %v1749_v13  ;;  %vm1762_vm6 = vcmp.lt.s32.totalorder %v5774_v18, 0 }
 0x236   : > { %v1735_v11 = vor.u32 4788187, %v1734_v1  ;;  %v1822_v46 = vshrl.u32 %v1821_v36, 30  ;;  %v2292_v54 = vsel %vm2291_vm5, %v2290_v25, 0  ;;  %v5974_v7 = vmul.f32 %v4698_v62, %v5965_v27 }
 0x237   : > { %v2294_v63 = vand.u32 31, %v2292_v54  ;;  %v1738_v8 = vcvt.s32.f32 %v1731_v61  ;;  %vm5978_vm10 = vcmp.le.f32.partialorder %v1760_v43, 0.7853982  ;;  %v2384_v21 = vand.u32 2147483647, %v5940_v38 }
 0x238   : > { %v1736_v48 = vand.u32 2147483647, %v1735_v11  ;;  %v1823_v45 = vshll.u32 %v1822_v46, 30  ;;  %v5985_v51 = vadd.s32 %v5919_v58, %v5934_v28  ;;  %v1846_v29 = vsub.s32 4, %v1822_v46 }
 0x239   : > { %v2295_v30 = vsub.s32 32, %v2294_v63  ;;  %v5987_v2 = vshll.u32 %v2288_v33, 8  ;;  %v5991_v44 = vshrl.u32 %v2292_v54, 5  ;;  %v4116_v43 = vadd.s32 4294967169, %v2388_v24 }
 0x23a   : > { %v1739_v42 = vmul.f32 %v1738_v8, %v1736_v48  ;;  %v5989_v32 = vsub.s32 %v1820_v59, %v1823_v45  ;;  %v2297_v41 = vshll.u32 %v7520_v53, %v2294_v63  ;;  %v2300_v19 = vshll.u32 %v7521_v60, %v2294_v63 }
 0x23b   : > { %v2298_v20 = vshrl.u32 %v7521_v60, %v2295_v30  ;;  %v2301_v35 = vshrl.u32 %v7522_v31, %v2295_v30  ;;  %v2303_v47 = vshll.u32 %v7522_v31, %v2294_v63  ;;  %v2304_v55 = vshrl.u32 %v7523_v6, %v2295_v30 }
 0x23c   : > { %v1740_v58 = vxor.u32 2147483648, %v1739_v42  ;;  %v1826_v28 = vsub.s32 0, %v5989_v32  ;;  %v1847_v49 = vsel %vm1762_vm6, %v1846_v29, %v1822_v46  ;;  %v2306_v0 = vshll.u32 %v7523_v6, %v2294_v63 }
 0x23d   : > { %v2299_v37 = vor.u32 %v2298_v20, %v2297_v41  ;;  %v2307_v14 = vshrl.u32 %v7524_v57, %v2295_v30  ;;  %v2302_v15 = vor.u32 %v2301_v35, %v2300_v19  ;;  %v2309_v52 = vshll.u32 %v7524_v57, %v2294_v63 }
 0x23e   : > { %v1741_v9 = vsel %vm1658_vm12, %v1740_v58, %v1739_v42  ;;  %v4093_v56 = vmin.u32 %v1826_v28, %v5989_v32  ;;  %v2305_v59 = vor.u32 %v2304_v55, %v2303_v47  ;;  %v2310_v13 = vshrl.u32 %v7525_v3, %v2295_v30 }
 0x23f   : > { %v1744_v23 = vsel %vm5925_vm13, %v5727_v12, %v1741_v9  ;;  %v2308_v16 = vor.u32 %v2307_v14, %v2306_v0  ;;  %v2391_v22 = vand.u32 8388607, %v2384_v21  ;;  %v2394_v61 = vadd.s32 1, %v4116_v43 }
 0x240   : > { %4378 = vcosq.f32 %v1744_v23  ;;  %v1828_v25 = vclz %v4093_v56  ;;  %v1849_v1 = vsel %vm5978_vm10, 0, %v1847_v49  ;;  %v2296_v36 = vshrl.u32 %v7520_v53, %v2295_v30 }
 0x241   : > { %4380 = vsinq.f32 %v1744_v23  ;;  %v2311_v33 = vor.u32 %v2310_v13, %v2309_v52  ;;  %vm2312_vm11 = vcmp.lt.s32.totalorder %v5991_v44, 1  ;;  %vm2314_vm7 = vcmp.lt.s32.totalorder %v5991_v44, 3 }
 0x242   : > { %v4094_v11 = vadd.s32 4294967294, %v1828_v25  ;;  %vm2315_vm9 = vcmp.lt.s32.totalorder %v5991_v44, 4  ;;  %v2320_v46 = vsel %vm2312_vm11, %v2299_v37, %v2302_v15  ;;  %v2324_v24 = vsel %vm2312_vm11, %v2302_v15, %v2305_v59 }
 0x243   : > { %v2317_v50 = vsel %vm2315_vm9, %v2305_v59, 2102212464  ;;  %v2321_v54 = vsel %vm2315_vm9, %v2308_v16, 920167782  ;;  %vm1755_vm8 = vcmp.eq.s32.totalorder %v5969_v26, 2  ;;  %vm2313_vm13 = vcmp.lt.s32.totalorder %v5991_v44, 2 }
 0x244   : > { %vm4095_vm12 = vcmp.lt.s32.totalorder %v4094_v11, 0  ;;  %v2322_v63 = vsel %vm2314_vm7, %v2305_v59, %v2321_v54  ;;  %v2325_v48 = vsel %vm2315_vm9, %v2311_v33, 1326507024  ;;  %vm1752_vm14 = vcmp.eq.s32.totalorder %v5969_v26, 0 }
 0x245   : > { %v1831_v8 = vsel %vm4095_vm12, 0, %v4094_v11  ;;  %v2316_v45 = vsel %vm2312_vm11, %v2296_v36, %v2299_v37  ;;  %v2323_v29 = vsel %vm2313_vm13, %v2320_v46, %v2322_v63  ;;  %v2326_v30 = vsel %vm2314_vm7, %v2308_v16, %v2325_v48 }
 0x246   : > { %vm1751_vm15 = vcmp.lt.s32.totalorder %v5969_v26, 2  ;;  %v1832_v42 = vsub.s32 32, %v1831_v8  ;;  %v1836_v43 = vsub.s32 4294967266, %v1831_v8  ;;  %v2318_v41 = vsel %vm2314_vm7, %v2302_v15, %v2317_v50 }
 0x247   : > { %v2327_v20 = vsel %vm2313_vm13, %v2324_v24, %v2326_v30  ;;  %vm1748_vm0 = vweird.f32 %v5727_v12  ;;  %v6040_v58 = vmul.u32.u64.low %v5987_v2, %v2323_v29  ;;  %v6041_v28 = vmul.u32.u64.high %v5987_v2, %v2323_v29, %v6040_v58 }
 0x248   : > { %v6036_v19 = vmul.u32.u64.low %v5987_v2, %v2327_v20  ;;  %v6037_v35 = vmul.u32.u64.high %v5987_v2, %v2327_v20, %v6036_v19  ;;  %v1833_v47 = vshll.u32 %v5989_v32, %v1831_v8  ;;  %v1834_v55 = vshrl.u32 %v5985_v51, %v1832_v42 }
 0x249   : > { %v1837_v49 = vadd.s32 127, %v1836_v43  ;;  %vm2395_vm1 = vcmp.gt.s32.totalorder %v2394_v61, 0  ;;  %v1853_v37 = vadd.s32 3, %v1849_v1  ;;  %v2319_v0 = vsel %vm2313_vm13, %v2316_v45, %v2318_v41 }
 0x24a   : > { %v2392_v14 = vor.u32 8388608, %v2391_v22  ;;  %v2396_v9 = vsel %vm2395_vm1, %v2394_v61, 0  ;;  %v4379_v56 = vpop.eup %4378  ;;  %v1835_v15 = vor.u32 %v1834_v55, %v1833_v47  ;;  %v524_v59 = vmul.f32 %v4714_v17, %v5965_v27 }
 0x24b   : > { %v1838_v52 = vshll.u32 %v1837_v49, 23  ;;  %v2398_v23 = vand.u32 31, %v2396_v9  ;;  %v4381_v16 = vpop.eup %4380  ;;  %v1756_v13 = vxor.u32 2147483648, %v4379_v56  ;;  %vm2337_vm2 = vc.u32 %v6037_v35, %v6040_v58 }
 0x24c   : > { %v2338_v51 = vadd.s32 1, %v6041_v28  ;;  %v555_v32 = vadd.f32 %v5974_v7, %v4637_v39  ;;  %v1753_v44 = vxor.u32 2147483648, %v4381_v16  ;;  %v2335_v22 = vmul.u32 %v5987_v2, %v2319_v0 }
 0x24d   : > { %v1839_v25 = vor.u32 4788187, %v1838_v52  ;;  %v2399_v61 = vsub.s32 32, %v2398_v23  ;;  %v1757_v1 = vsel %vm1755_vm8, %v1756_v13, %v4381_v16  ;;  %v6058_v27 = vand.u32 3, %v1853_v37 }
 0x24e   : > { %v2339_v36 = vsel %vm2337_vm2, %v2338_v51, %v6041_v28  ;;  %v6061_v33 = vshll.u32 %v2392_v14, 8  ;;  %v1754_v11 = vsel %vm1752_vm14, %v4379_v56, %v1753_v44  ;;  %v1842_v39 = vcvt.s32.f32 %v1835_v15  ;;  %v7559_v14 = vld [vmem:[#allocation2_spill] sm:$0xff] }
 0x24f   : > { %v1840_v50 = vand.u32 2147483647, %v1839_v25  ;;  %v2340_v7 = vadd.s32 %v2339_v36, %v2335_v22  ;;  %v1758_v2 = vsel %vm1751_vm15, %v1754_v11, %v1757_v1  ;;  %v2401_v46 = vshll.u32 %v7520_v53, %v2398_v23 }
 0x250   : > { %v2402_v54 = vshrl.u32 %v7521_v60, %v2399_v61  ;;  %v2405_v24 = vshrl.u32 %v7522_v31, %v2399_v61  ;;  %v1759_v63 = vsel %vm1748_vm0, nan, %v1758_v2  ;;  %v2408_v45 = vshrl.u32 %v7523_v6, %v2399_v61 }
 0x251   : > { %v1843_v48 = vmul.f32 %v1842_v39, %v1840_v50  ;;  %v2341_v8 = vadd.s32 536870912, %v2340_v7  ;;  %3955 = vst [vmem:[%s5029_s27 + $0x50] sm:$0xff] %v1759_v63  ;;  %v2397_v29 = vshrl.u32 %v2396_v9, 5  ;;  %v2404_v30 = vshll.u32 %v7521_v60, %v2398_v23 }
 0x252   : > { %v2407_v26 = vshll.u32 %v7522_v31, %v2398_v23  ;;  %v2411_v42 = vshrl.u32 %v7524_v57, %v2399_v61  ;;  %v2403_v20 = vor.u32 %v2402_v54, %v2401_v46  ;;  %v2410_v19 = vshll.u32 %v7523_v6, %v2398_v23 }
 0x253   : > { %v1844_v43 = vxor.u32 2147483648, %v1843_v48  ;;  %v2342_v41 = vshrl.u32 %v2341_v8, 30  ;;  %v2406_v28 = vor.u32 %v2405_v24, %v2404_v30  ;;  %v2413_v47 = vshll.u32 %v7524_v57, %v2398_v23 }
 0x254   : > { %v2409_v12 = vor.u32 %v2408_v45, %v2407_v26  ;;  %v2414_v55 = vshrl.u32 %v7525_v3, %v2399_v61  ;;  %v2412_v0 = vor.u32 %v2411_v42, %v2410_v19  ;;  %v556_v9 = vadd.f32 %v524_v59, %v7559_v14 }
 0x255   : > { %v1845_v49 = vsel %vm1762_vm6, %v1844_v43, %v1843_v48  ;;  %v2343_v37 = vshll.u32 %v2342_v41, 30  ;;  %v2400_v15 = vshrl.u32 %v7520_v53, %v2399_v61  ;;  %v6088_v16 = vadd.f32 %v4731_v34, %v555_v32 }
 0x256   : > { %v1848_v56 = vsel %vm5978_vm10, %v5774_v18, %v1845_v49  ;;  %v2415_v52 = vor.u32 %v2414_v55, %v2413_v47  ;;  %vm2416_vm3 = vcmp.lt.s32.totalorder %v2397_v29, 1  ;;  %vm2419_vm5 = vcmp.lt.s32.totalorder %v2397_v29, 4 }
 0x257   : > { %4382 = vcosq.f32 %v1848_v56  ;;  %v6090_v23 = vsub.s32 %v2340_v7, %v2343_v37  ;;  %vm2417_vm6 = vcmp.lt.s32.totalorder %v2397_v29, 2  ;;  %v2421_v13 = vsel %vm2419_vm5, %v2409_v12, 2102212464 }
 0x258   : > { %4384 = vsinq.f32 %v1848_v56  ;;  %v2424_v51 = vsel %vm2416_vm3, %v2403_v20, %v2406_v28  ;;  %v2366_v44 = vsub.s32 4, %v2342_v41  ;;  %vm2418_vm11 = vcmp.lt.s32.totalorder %v2397_v29, 3 }
 0x259   : > { %v2346_v59 = vsub.s32 0, %v6090_v23  ;;  %v2425_v40 = vsel %vm2419_vm5, %v2412_v0, 920167782  ;;  %v2420_v25 = vsel %vm2416_vm3, %v2400_v15, %v2403_v20  ;;  %v2428_v61 = vsel %vm2416_vm3, %v2406_v28, %v2409_v12 }
 0x25a   : > { %v2426_v22 = vsel %vm2418_vm11, %v2409_v12, %v2425_v40  ;;  %v2429_v1 = vsel %vm2419_vm5, %v2415_v52, 1326507024  ;;  %v2422_v36 = vsel %vm2418_vm11, %v2406_v28, %v2421_v13  ;;  %vm2282_vm10 = vcmp.lt.s32.totalorder %v5905_v10, 0 }
 0x25b   : > { %v4113_v32 = vmin.u32 %v2346_v59, %v6090_v23  ;;  %v2427_v11 = vsel %vm2417_vm6, %v2424_v51, %v2426_v22  ;;  %v2430_v50 = vsel %vm2418_vm11, %v2412_v0, %v2429_v1  ;;  %vm6103_vm7 = vcmp.le.f32.partialorder %v2280_v4, 0.7853982 }
 0x25c   : > { %v2431_v39 = vsel %vm2417_vm6, %v2428_v61, %v2430_v50  ;;  %v6098_v7 = vmul.u32.u64.low %v6061_v33, %v2427_v11  ;;  %v6099_v2 = vmul.u32.u64.high %v6061_v33, %v2427_v11, %v6098_v7  ;;  %v2367_v24 = vsel %vm2282_vm10, %v2366_v44, %v2342_v41 }
 0x25d   : > { %v2348_v54 = vclz %v4113_v32  ;;  %v2423_v63 = vsel %vm2417_vm6, %v2420_v25, %v2422_v36  ;;  %v6111_v48 = vmul.u32.u64.low %v6061_v33, %v2431_v39  ;;  %v6112_v8 = vmul.u32.u64.high %v6061_v33, %v2431_v39, %v6111_v48 }
 0x25e   : > { %v2072_v45 = vand.u32 2147483647, %v6088_v16  ;;  %vm1855_vm9 = vcmp.lt.s32.totalorder %v6058_v27, 2  ;;  %v6117_v4 = vadd.f32 %v4734_v5, %v556_v9  ;;  %v2075_v26 = vand.u32 2139095040, %v6088_v16 }
 0x25f   : > { %v4114_v30 = vadd.s32 4294967294, %v2348_v54  ;;  %vm1856_vm8 = vcmp.eq.s32.totalorder %v6058_v27, 0  ;;  %vm1859_vm12 = vcmp.eq.s32.totalorder %v6058_v27, 2  ;;  %v2336_v29 = vadd.s32 %v6040_v58, %v6037_v35 }
 0x260   : > { %v2442_v42 = vadd.s32 1, %v6099_v2  ;;  %v2369_v41 = vsel %vm6103_vm7, 0, %v2367_v24  ;;  %v2439_v20 = vmul.u32 %v6061_v33, %v2423_v63  ;;  %v2076_v19 = vshrl.u32 %v2075_v26, 23 }
 0x261   : > { %v4383_v43 = vpop.eup %4382  ;;  %vm4115_vm13 = vcmp.lt.s32.totalorder %v4114_v30, 0  ;;  %vm2441_vm14 = vc.u32 %v6112_v8, %v6098_v7  ;;  %v2079_v55 = vand.u32 8388607, %v2072_v45  ;;  %v2179_v37 = vand.u32 2139095040, %v6117_v4 }
 0x262   : > { %v4385_v28 = vpop.eup %4384  ;;  %v1860_v12 = vxor.u32 2147483648, %v4383_v43  ;;  %v2351_v47 = vsel %vm4115_vm13, 0, %v4114_v30  ;;  %v2443_v14 = vsel %vm2441_vm14, %v2442_v42, %v6099_v2  ;;  %v4104_v9 = vadd.s32 4294967169, %v2076_v19 }
 0x263   : > { %v1857_v49 = vxor.u32 2147483648, %v4385_v28  ;;  %v2352_v35 = vsub.s32 32, %v2351_v47  ;;  %v2356_v58 = vsub.s32 4294967266, %v2351_v47  ;;  %v2353_v33 = vshll.u32 %v6090_v23, %v2351_v47 }
 0x264   : > { %v1861_v0 = vsel %vm1859_vm12, %v1860_v12, %v4385_v28  ;;  %v2444_v13 = vadd.s32 %v2443_v14, %v2439_v20  ;;  %vm1852_vm15 = vweird.f32 %v5774_v18  ;;  %v2373_v59 = vadd.s32 3, %v2369_v41 }
 0x265   : > { %v1858_v56 = vsel %vm1856_vm8, %v4383_v43, %v1857_v49  ;;  %v2354_v15 = vshrl.u32 %v2336_v29, %v2352_v35  ;;  %v2357_v52 = vadd.s32 127, %v2356_v58  ;;  %v2082_v44 = vadd.s32 1, %v4104_v9 }
 0x266   : > { %v1862_v51 = vsel %vm1855_vm9, %v1858_v56, %v1861_v0  ;;  %v2445_v23 = vadd.s32 536870912, %v2444_v13  ;;  %v2080_v61 = vor.u32 8388608, %v2079_v55  ;;  %v2180_v11 = vshrl.u32 %v2179_v37, 23 }
 0x267   : > { %v1863_v40 = vsel %vm1852_vm15, nan, %v1862_v51  ;;  %v2355_v25 = vor.u32 %v2354_v15, %v2353_v33  ;;  %v2358_v22 = vshll.u32 %v2357_v52, 23  ;;  %vm2083_vm0 = vcmp.gt.s32.totalorder %v2082_v44, 0 }
 0x268   : > { %3956 = vst.msk [vmem:[%s5029_s27 + $0x58] sm:$0xff] %vm3945_vm4, %v1863_v40  ;;  %v2446_v32 = vshrl.u32 %v2445_v23, 30  ;;  %v2084_v36 = vsel %vm2083_vm0, %v2082_v44, 0  ;;  %v6143_v50 = vand.u32 3, %v2373_v59  ;;  %vm2386_vm1 = vcmp.lt.s32.totalorder %v5940_v38, 0 }
 0x269   : > { %v2359_v1 = vor.u32 4788187, %v2358_v22  ;;  %v2086_v18 = vand.u32 31, %v2084_v36  ;;  %v2362_v39 = vcvt.s32.f32 %v2355_v25  ;;  %vm6148_vm2 = vcmp.le.f32.partialorder %v2384_v21, 0.7853982 }
 0x26a   : > { %v2447_v54 = vshll.u32 %v2446_v32, 30  ;;  %v2176_v24 = vand.u32 2147483647, %v6117_v4  ;;  %v2440_v63 = vadd.s32 %v6098_v7, %v6112_v8  ;;  %v2470_v48 = vsub.s32 4, %v2446_v32 }
 0x26b   : > { %v2360_v27 = vand.u32 2147483647, %v2359_v1  ;;  %v2087_v30 = vsub.s32 32, %v2086_v18  ;;  %v6154_v26 = vshll.u32 %v2080_v61, 8  ;;  %v2085_v43 = vshrl.u32 %v2084_v36, 5 }
 0x26c   : > { %v6156_v42 = vsub.s32 %v2444_v13, %v2447_v54  ;;  %v4108_v41 = vadd.s32 4294967169, %v2180_v11  ;;  %v2089_v20 = vshll.u32 %v7520_v53, %v2086_v18  ;;  %v2092_v19 = vshll.u32 %v7521_v60, %v2086_v18 }
 0x26d   : > { %v2363_v29 = vmul.f32 %v2362_v39, %v2360_v27  ;;  %v2090_v21 = vshrl.u32 %v7521_v60, %v2087_v30  ;;  %v2093_v28 = vshrl.u32 %v7522_v31, %v2087_v30  ;;  %v2095_v8 = vshll.u32 %v7522_v31, %v2086_v18 }
 0x26e   : > { %v2450_v7 = vsub.s32 0, %v6156_v42  ;;  %v2096_v47 = vshrl.u32 %v7523_v6, %v2087_v30  ;;  %v2471_v55 = vsel %vm2386_vm1, %v2470_v48, %v2446_v32  ;;  %v2098_v35 = vshll.u32 %v7523_v6, %v2086_v18 }
 0x26f   : > { %v2364_v12 = vxor.u32 2147483648, %v2363_v29  ;;  %v2091_v49 = vor.u32 %v2090_v21, %v2089_v20  ;;  %v2099_v58 = vshrl.u32 %v7524_v57, %v2087_v30  ;;  %v2094_v33 = vor.u32 %v2093_v28, %v2092_v19 }
 0x270   : > { %v4117_v0 = vmin.u32 %v2450_v7, %v6156_v42  ;;  %v2101_v14 = vshll.u32 %v7524_v57, %v2086_v18  ;;  %v2097_v56 = vor.u32 %v2096_v47, %v2095_v8  ;;  %v2102_v52 = vshrl.u32 %v7525_v3, %v2087_v30 }
 0x271   : > { %v2365_v37 = vsel %vm2282_vm10, %v2364_v12, %v2363_v29  ;;  %v2100_v15 = vor.u32 %v2099_v58, %v2098_v35  ;;  %v6179_v51 = vand.u32 8388607, %v2176_v24  ;;  %v2186_v59 = vadd.s32 1, %v4108_v41 }
 0x272   : > { %v2368_v9 = vsel %vm6103_vm7, %v5905_v10, %v2365_v37  ;;  %v2452_v13 = vclz %v4117_v0  ;;  %v2473_v44 = vsel %vm6148_vm2, 0, %v2471_v55  ;;  %v2088_v40 = vshrl.u32 %v7520_v53, %v2087_v30  ;;  %v476_v0 = vpop.permute.xlu0 %475 }
 0x273   : > { %4386 = vcosq.f32 %v2368_v9  ;;  %v2103_v25 = vor.u32 %v2102_v52, %v2101_v14  ;;  %vm2104_vm3 = vcmp.lt.s32.totalorder %v2085_v43, 1  ;;  %vm2106_vm5 = vcmp.lt.s32.totalorder %v2085_v43, 3 }
 0x274   : > { %4388 = vsinq.f32 %v2368_v9  ;;  %v4118_v46 = vadd.s32 4294967294, %v2452_v13  ;;  %vm2107_vm6 = vcmp.lt.s32.totalorder %v2085_v43, 4  ;;  %v2112_v23 = vsel %vm2104_vm3, %v2091_v49, %v2094_v33 }
 0x275   : > { %v2109_v22 = vsel %vm2107_vm6, %v2097_v56, 2102212464  ;;  %v2113_v61 = vsel %vm2107_vm6, %v2100_v15, 920167782  ;;  %v2116_v1 = vsel %vm2104_vm3, %v2094_v33, %v2097_v56  ;;  %vm2105_vm10 = vcmp.lt.s32.totalorder %v2085_v43, 2 }
 0x276   : > { %vm4119_vm11 = vcmp.lt.s32.totalorder %v4118_v46, 0  ;;  %v2114_v32 = vsel %vm2106_vm5, %v2097_v56, %v2113_v61  ;;  %v2117_v36 = vsel %vm2107_vm6, %v2103_v25, 1326507024  ;;  %v2108_v18 = vsel %vm2104_vm3, %v2088_v40, %v2091_v49 }
 0x277   : > { %v2455_v11 = vsel %vm4119_vm11, 0, %v4118_v46  ;;  %v2115_v27 = vsel %vm2105_vm10, %v2112_v23, %v2114_v32  ;;  %v2118_v39 = vsel %vm2106_vm5, %v2100_v15, %v2117_v36  ;;  %vm2375_vm7 = vcmp.lt.s32.totalorder %v6143_v50, 2 }
 0x278   : > { %v2456_v54 = vsub.s32 32, %v2455_v11  ;;  %v2460_v48 = vsub.s32 4294967266, %v2455_v11  ;;  %v2110_v30 = vsel %vm2106_vm5, %v2094_v33, %v2109_v22  ;;  %v2119_v29 = vsel %vm2105_vm10, %v2116_v1, %v2118_v39 }
 0x279   : > { %vm2372_vm9 = vweird.f32 %v5905_v10  ;;  %v6192_v41 = vmul.u32.u64.low %v6154_v26, %v2119_v29  ;;  %v6193_v20 = vmul.u32.u64.high %v6154_v26, %v2119_v29, %v6192_v41  ;;  %v2457_v28 = vshll.u32 %v6156_v42, %v2455_v11 }
 0x27a   : > { %v6196_v21 = vmul.u32.u64.low %v6154_v26, %v2115_v27  ;;  %v6197_v19 = vmul.u32.u64.high %v6154_v26, %v2115_v27, %v6196_v21  ;;  %v2458_v12 = vshrl.u32 %v2440_v63, %v2456_v54  ;;  %v2461_v7 = vadd.s32 127, %v2460_v48 }
 0x27b   : > { %vm2187_vm8 = vcmp.gt.s32.totalorder %v2186_v59, 0  ;;  %vm2376_vm12 = vcmp.eq.s32.totalorder %v6143_v50, 0  ;;  %v2477_v8 = vadd.s32 3, %v2473_v44  ;;  %v2111_v47 = vsel %vm2105_vm10, %v2108_v18, %v2110_v30 }
 0x27c   : > { %v2188_v55 = vsel %vm2187_vm8, %v2186_v59, 0  ;;  %vm2379_vm13 = vcmp.eq.s32.totalorder %v6143_v50, 2  ;;  %v2459_v35 = vor.u32 %v2458_v12, %v2457_v28  ;;  %v2462_v58 = vshll.u32 %v2461_v7, 23 }
 0x27d   : > { %v4387_v49 = vpop.eup %4386  ;;  %v2190_v37 = vand.u32 31, %v2188_v55  ;;  %vm2129_vm14 = vc.u32 %v6193_v20, %v6196_v21  ;;  %v2130_v63 = vadd.s32 1, %v6197_v19  ;;  %v2184_v42 = vor.u32 8388608, %v6179_v51 }
 0x27e   : > { %v4389_v33 = vpop.eup %4388  ;;  %v2380_v14 = vxor.u32 2147483648, %v4387_v49  ;;  %v2463_v43 = vor.u32 4788187, %v2462_v58  ;;  %v2127_v56 = vmul.u32 %v6154_v26, %v2111_v47  ;;  %v6209_v13 = vand.u32 3, %v2477_v8  ;;  %v7564_v58 = vld [vmem:[#allocation5_spill] sm:$0xff] }
 0x27f   : > { %v2377_v9 = vxor.u32 2147483648, %v4389_v33  ;;  %v2191_v15 = vsub.s32 32, %v2190_v37  ;;  %v2131_v59 = vsel %vm2129_vm14, %v2130_v63, %v6197_v19  ;;  %v529_v44 = vmul.f32 %v4698_v62, %v476_v0 }
 0x280   : > { %v2381_v52 = vsel %vm2379_vm13, %v2380_v14, %v4389_v33  ;;  %v2464_v25 = vand.u32 2147483647, %v2463_v43  ;;  %v2466_v46 = vcvt.s32.f32 %v2459_v35  ;;  %v2132_v22 = vadd.s32 %v2131_v59, %v2127_v56 }
 0x281   : > { %v2378_v40 = vsel %vm2376_vm12, %v4387_v49, %v2377_v9  ;;  %v2193_v26 = vshll.u32 %v7520_v53, %v2190_v37  ;;  %v2194_v23 = vshrl.u32 %v7521_v60, %v2191_v15  ;;  %v2197_v61 = vshrl.u32 %v7522_v31, %v2191_v15 }
 0x282   : > { %v2382_v51 = vsel %vm2375_vm7, %v2378_v40, %v2381_v52  ;;  %v2467_v32 = vmul.f32 %v2466_v46, %v2464_v25  ;;  %v2133_v36 = vadd.s32 536870912, %v2132_v22  ;;  %v2200_v11 = vshrl.u32 %v7523_v6, %v2191_v15 }
 0x283   : > { %v2383_v1 = vsel %vm2372_vm9, nan, %v2382_v51  ;;  %v2189_v18 = vshrl.u32 %v2188_v55, 5  ;;  %v2196_v27 = vshll.u32 %v7521_v60, %v2190_v37  ;;  %v2199_v50 = vshll.u32 %v7522_v31, %v2190_v37 }
 0x284   : > { %3961 = vst [vmem:[%s5029_s27 + $0x80] sm:$0xff] %v2383_v1  ;;  %v2203_v39 = vshrl.u32 %v7524_v57, %v2191_v15  ;;  %v2468_v54 = vxor.u32 2147483648, %v2467_v32  ;;  %v2134_v48 = vshrl.u32 %v2133_v36, 30  ;;  %v2195_v30 = vor.u32 %v2194_v23, %v2193_v26 }
 0x285   : > { %v2202_v29 = vshll.u32 %v7523_v6, %v2190_v37  ;;  %v2198_v41 = vor.u32 %v2197_v61, %v2196_v27  ;;  %v2201_v10 = vor.u32 %v2200_v11, %v2199_v50  ;;  %v2205_v19 = vshll.u32 %v7524_v57, %v2190_v37  ;;  %v7567_v27 = vld [vmem:[#allocation6_spill] sm:$0xff] }
 0x286   : > { %v2206_v28 = vshrl.u32 %v7525_v3, %v2191_v15  ;;  %v2469_v12 = vsel %vm2386_vm1, %v2468_v54, %v2467_v32  ;;  %v2135_v7 = vshll.u32 %v2134_v48, 30  ;;  %v6232_v47 = vshll.u32 %v2184_v42, 8 }
 0x287   : > { %v2204_v8 = vor.u32 %v2203_v39, %v2202_v29  ;;  %v2472_v55 = vsel %vm6148_vm2, %v5940_v38, %v2469_v12  ;;  %v530_v35 = vmul.f32 %v4714_v17, %v476_v0  ;;  %v561_v33 = vadd.f32 %v529_v44, %v7564_v58 }
 0x288   : > { %v2207_v49 = vor.u32 %v2206_v28, %v2205_v19  ;;  %4390 = vcosq.f32 %v2472_v55  ;;  %v6239_v37 = vsub.s32 %v2132_v22, %v2135_v7  ;;  %vm2208_vm15 = vcmp.lt.s32.totalorder %v2189_v18, 1 }
 0x289   : > { %vm2211_vm0 = vcmp.lt.s32.totalorder %v2189_v18, 4  ;;  %4392 = vsinq.f32 %v2472_v55  ;;  %v2192_v14 = vshrl.u32 %v7520_v53, %v2191_v15  ;;  %v2216_v42 = vsel %vm2208_vm15, %v2195_v30, %v2198_v41 }
 0x28a   : > { %v2213_v63 = vsel %vm2211_vm0, %v2201_v10, 2102212464  ;;  %v2138_v9 = vsub.s32 0, %v6239_v37  ;;  %vm2209_vm1 = vcmp.lt.s32.totalorder %v2189_v18, 2  ;;  %vm2210_vm3 = vcmp.lt.s32.totalorder %v2189_v18, 3 }
 0x28b   : > { %v2217_v2 = vsel %vm2211_vm0, %v2204_v8, 920167782  ;;  %v2212_v43 = vsel %vm2208_vm15, %v2192_v14, %v2195_v30  ;;  %v2220_v0 = vsel %vm2208_vm15, %v2198_v41, %v2201_v10  ;;  %v2221_v52 = vsel %vm2211_vm0, %v2207_v49, 1326507024 }
 0x28c   : > { %v2218_v56 = vsel %vm2210_vm3, %v2201_v10, %v2217_v2  ;;  %v4105_v59 = vmin.u32 %v2138_v9, %v6239_v37  ;;  %v2214_v44 = vsel %vm2210_vm3, %v2198_v41, %v2213_v63  ;;  %v2222_v25 = vsel %vm2210_vm3, %v2204_v8, %v2221_v52 }
 0x28d   : > { %v2219_v40 = vsel %vm2209_vm1, %v2216_v42, %v2218_v56  ;;  %v2223_v46 = vsel %vm2209_vm1, %v2220_v0, %v2222_v25  ;;  %vm2074_vm2 = vcmp.lt.s32.totalorder %v6088_v16, 0  ;;  %v2158_v26 = vsub.s32 4, %v2134_v48 }
 0x28e   : > { %v6247_v15 = vmul.u32.u64.low %v6232_v47, %v2219_v40  ;;  %v6248_v22 = vmul.u32.u64.high %v6232_v47, %v2219_v40, %v6247_v15  ;;  %v2140_v51 = vclz %v4105_v59  ;;  %vm2476_vm5 = vweird.f32 %v5940_v38 }
 0x28f   : > { %v2215_v23 = vsel %vm2209_vm1, %v2212_v43, %v2214_v44  ;;  %v6255_v61 = vmul.u32.u64.low %v6232_v47, %v2223_v46  ;;  %v6256_v1 = vmul.u32.u64.high %v6232_v47, %v2223_v46, %v6255_v61  ;;  %v6259_v32 = vadd.f32 %v4731_v34, %v561_v33  ;;  %v6302_v46 = vpop.permute.xlu1 %471 }
 0x290   : > { %vm2479_vm6 = vcmp.lt.s32.totalorder %v6209_v13, 2  ;;  %vm6264_vm11 = vcmp.le.f32.partialorder %v2072_v45, 0.7853982  ;;  %v4106_v11 = vadd.s32 4294967294, %v2140_v51  ;;  %v562_v50 = vadd.f32 %v530_v35, %v7567_v27 }
 0x291   : > { %vm2480_vm10 = vcmp.eq.s32.totalorder %v6209_v13, 0  ;;  %vm2483_vm7 = vcmp.eq.s32.totalorder %v6209_v13, 2  ;;  %v2234_v18 = vadd.s32 1, %v6248_v22  ;;  %v2699_v39 = vand.u32 2139095040, %v6259_v32 }
 0x292   : > { %v4391_v54 = vpop.eup %4390  ;;  %v2128_v30 = vadd.s32 %v6196_v21, %v6193_v20  ;;  %vm4107_vm9 = vcmp.lt.s32.totalorder %v4106_v11, 0  ;;  %v2159_v45 = vsel %vm2074_vm2, %v2158_v26, %v2134_v48  ;;  %v2231_v29 = vmul.u32 %v6232_v47, %v2215_v23 }
 0x293   : > { %v4393_v41 = vpop.eup %4392  ;;  %v2484_v10 = vxor.u32 2147483648, %v4391_v54  ;;  %v2143_v19 = vsel %vm4107_vm9, 0, %v4106_v11  ;;  %vm2233_vm8 = vc.u32 %v6256_v1, %v6247_v15  ;;  %v2696_v28 = vand.u32 2147483647, %v6259_v32 }
 0x294   : > { %v2481_v12 = vxor.u32 2147483648, %v4393_v41  ;;  %v2144_v7 = vsub.s32 32, %v2143_v19  ;;  %v2148_v8 = vsub.s32 4294967266, %v2143_v19  ;;  %v6282_v55 = vadd.f32 %v4734_v5, %v562_v50 }
 0x295   : > { %v2485_v20 = vsel %vm2483_vm7, %v2484_v10, %v4393_v41  ;;  %v2145_v21 = vshll.u32 %v6239_v37, %v2143_v19  ;;  %v2235_v48 = vsel %vm2233_vm8, %v2234_v18, %v6248_v22  ;;  %v2700_v47 = vshrl.u32 %v2699_v39, 23 }
 0x296   : > { %v2482_v49 = vsel %vm2480_vm10, %v4391_v54, %v2481_v12  ;;  %v2146_v35 = vshrl.u32 %v2128_v30, %v2144_v7  ;;  %v2149_v58 = vadd.s32 127, %v2148_v8  ;;  %v2236_v33 = vadd.s32 %v2235_v48, %v2231_v29 }
 0x297   : > { %v2486_v14 = vsel %vm2479_vm6, %v2482_v49, %v2485_v20  ;;  %v2161_v63 = vsel %vm6264_vm11, 0, %v2159_v45  ;;  %v4128_v42 = vadd.s32 4294967169, %v2700_v47  ;;  %v2703_v9 = vand.u32 8388607, %v2696_v28 }
 0x298   : > { %v2487_v37 = vsel %vm2476_vm5, nan, %v2486_v14  ;;  %v2147_v2 = vor.u32 %v2146_v35, %v2145_v21  ;;  %v2150_v43 = vshll.u32 %v2149_v58, 23  ;;  %v2237_v56 = vadd.s32 536870912, %v2236_v33 }
 0x299   : > { %3962 = vst.msk [vmem:[%s5029_s27 + $0x88] sm:$0xff] %vm3945_vm4, %v2487_v37  ;;  %v2706_v0 = vadd.s32 1, %v4128_v42  ;;  %v2803_v52 = vand.u32 2139095040, %v6282_v55  ;;  %v2165_v59 = vadd.s32 3, %v2161_v63  ;;  %v2704_v40 = vor.u32 8388608, %v2703_v9 }
 0x29a   : > { %v2151_v13 = vor.u32 4788187, %v2150_v43  ;;  %v2238_v44 = vshrl.u32 %v2237_v56, 30  ;;  %v2800_v25 = vand.u32 2147483647, %v6282_v55  ;;  %v2154_v38 = vcvt.s32.f32 %v2147_v2 }
 0x29b   : > { %vm2707_vm12 = vcmp.gt.s32.totalorder %v2706_v0, 0  ;;  %vm2178_vm13 = vcmp.lt.s32.totalorder %v6117_v4, 0  ;;  %v2804_v61 = vshrl.u32 %v2803_v52, 23  ;;  %v6305_v27 = vand.u32 3, %v2165_v59 }
 0x29c   : > { %v2152_v22 = vand.u32 2147483647, %v2151_v13  ;;  %v2239_v51 = vshll.u32 %v2238_v44, 30  ;;  %v2708_v26 = vsel %vm2707_vm12, %v2706_v0, 0  ;;  %v6311_v18 = vmul.f32 %v4698_v62, %v6302_v46 }
 0x29d   : > { %v2710_v23 = vand.u32 31, %v2708_v26  ;;  %v2232_v39 = vadd.s32 %v6247_v15, %v6256_v1  ;;  %v2262_v54 = vsub.s32 4, %v2238_v44  ;;  %v6317_v45 = vand.u32 8388607, %v2800_v25 }
 0x29e   : > { %v2155_v11 = vmul.f32 %v2154_v38, %v2152_v22  ;;  %v6307_v50 = vsub.s32 %v2236_v33, %v2239_v51  ;;  %v2709_v10 = vshrl.u32 %v2708_v26, 5  ;;  %v6320_v19 = vshll.u32 %v2704_v40, 8 }
 0x29f   : > { %v2711_v30 = vsub.s32 32, %v2710_v23  ;;  %v4132_v20 = vadd.s32 4294967169, %v2804_v61  ;;  %v2713_v21 = vshll.u32 %v7520_v53, %v2710_v23  ;;  %v2719_v48 = vshll.u32 %v7522_v31, %v2710_v23 }
 0x2a0   : > { %v2156_v29 = vxor.u32 2147483648, %v2155_v11  ;;  %v2242_v41 = vsub.s32 0, %v6307_v50  ;;  %v6335_v49 = vsel %vm2178_vm13, %v2262_v54, %v2238_v44  ;;  %v2716_v58 = vshll.u32 %v7521_v60, %v2710_v23 }
 0x2a1   : > { %v2714_v12 = vshrl.u32 %v7521_v60, %v2711_v30  ;;  %v2717_v7 = vshrl.u32 %v7522_v31, %v2711_v30  ;;  %v2720_v8 = vshrl.u32 %v7523_v6, %v2711_v30  ;;  %v2712_v35 = vshrl.u32 %v7520_v53, %v2711_v30 }
 0x2a2   : > { %v2157_v15 = vsel %vm2074_vm2, %v2156_v29, %v2155_v11  ;;  %v4109_v1 = vmin.u32 %v2242_v41, %v6307_v50  ;;  %v2722_v9 = vshll.u32 %v7523_v6, %v2710_v23  ;;  %v2723_v37 = vshrl.u32 %v7524_v57, %v2711_v30 }
 0x2a3   : > { %v2160_v47 = vsel %vm6264_vm11, %v6088_v16, %v2157_v15  ;;  %v2715_v14 = vor.u32 %v2714_v12, %v2713_v21  ;;  %v2721_v63 = vor.u32 %v2720_v8, %v2719_v48  ;;  %v2718_v42 = vor.u32 %v2717_v7, %v2716_v58 }
 0x2a4   : > { %4394 = vcosq.f32 %v2160_v47  ;;  %v2244_v33 = vclz %v4109_v1  ;;  %v2725_v2 = vshll.u32 %v7524_v57, %v2710_v23  ;;  %v2726_v43 = vshrl.u32 %v7525_v3, %v2711_v30 }
 0x2a5   : > { %4396 = vsinq.f32 %v2160_v47  ;;  %vm2728_vm14 = vcmp.lt.s32.totalorder %v2709_v10, 1  ;;  %vm6345_vm15 = vcmp.le.f32.partialorder %v2176_v24, 0.7853982  ;;  %v2724_v0 = vor.u32 %v2723_v37, %v2722_v9 }
 0x2a6   : > { %v4110_v36 = vadd.s32 4294967294, %v2244_v33  ;;  %vm2729_vm0 = vcmp.lt.s32.totalorder %v2709_v10, 2  ;;  %vm2730_vm1 = vcmp.lt.s32.totalorder %v2709_v10, 3  ;;  %vm2731_vm3 = vcmp.lt.s32.totalorder %v2709_v10, 4 }
 0x2a7   : > { %v2727_v52 = vor.u32 %v2726_v43, %v2725_v2  ;;  %v2732_v13 = vsel %vm2728_vm14, %v2712_v35, %v2715_v14  ;;  %v2733_v59 = vsel %vm2731_vm3, %v2721_v63, 2102212464  ;;  %vm2168_vm5 = vcmp.eq.s32.totalorder %v6305_v27, 0 }
 0x2a8   : > { %vm4111_vm2 = vcmp.lt.s32.totalorder %v4110_v36, 0  ;;  %v2734_v40 = vsel %vm2730_vm1, %v2718_v42, %v2733_v59  ;;  %v2736_v24 = vsel %vm2728_vm14, %v2715_v14, %v2718_v42  ;;  %v2737_v22 = vsel %vm2731_vm3, %v2724_v0, 920167782 }
 0x2a9   : > { %v2247_v44 = vsel %vm4111_vm2, 0, %v4110_v36  ;;  %vm2167_vm6 = vcmp.lt.s32.totalorder %v6305_v27, 2  ;;  %v2740_v23 = vsel %vm2728_vm14, %v2718_v42, %v2721_v63  ;;  %vm2164_vm11 = vweird.f32 %v6088_v16  ;;  %v7570_v42 = vld [vmem:[#allocation3_spill] sm:$0xff] }
 0x2aa   : > { %v2248_v38 = vsub.s32 32, %v2247_v44  ;;  %v2249_v51 = vshll.u32 %v6307_v50, %v2247_v44  ;;  %v2252_v26 = vsub.s32 4294967266, %v2247_v44  ;;  %v2735_v61 = vsel %vm2729_vm0, %v2732_v13, %v2734_v40 }
 0x2ab   : > { %v2738_v11 = vsel %vm2730_vm1, %v2721_v63, %v2737_v22  ;;  %v2741_v54 = vsel %vm2731_vm3, %v2727_v52, 1326507024  ;;  %v2810_v30 = vadd.s32 1, %v4132_v20  ;;  %vm2171_vm7 = vcmp.eq.s32.totalorder %v6305_v27, 2 }
 0x2ac   : > { %v2250_v29 = vshrl.u32 %v2232_v39, %v2248_v38  ;;  %v2253_v41 = vadd.s32 127, %v2252_v26  ;;  %v2739_v12 = vsel %vm2729_vm0, %v2736_v24, %v2738_v11  ;;  %v2742_v7 = vsel %vm2730_vm1, %v2724_v0, %v2741_v54 }
 0x2ad   : > { %v2743_v50 = vsel %vm2729_vm0, %v2740_v23, %v2742_v7  ;;  %v6366_v8 = vmul.u32.u64.low %v6320_v19, %v2739_v12  ;;  %v6367_v15 = vmul.u32.u64.high %v6320_v19, %v2739_v12, %v6366_v8  ;;  %vm2811_vm10 = vcmp.gt.s32.totalorder %v2810_v30, 0 }
 0x2ae   : > { %v4395_v1 = vpop.eup %4394  ;;  %v2251_v21 = vor.u32 %v2250_v29, %v2249_v51  ;;  %v2254_v48 = vshll.u32 %v2253_v41, 23  ;;  %v6371_v47 = vmul.u32.u64.low %v6320_v19, %v2743_v50  ;;  %v6372_v20 = vmul.u32.u64.high %v6320_v19, %v2743_v50, %v6371_v47 }
 0x2af   : > { %v4397_v39 = vpop.eup %4396  ;;  %v2172_v35 = vxor.u32 2147483648, %v4395_v1  ;;  %v2808_v10 = vor.u32 8388608, %v6317_v45  ;;  %v2812_v58 = vsel %vm2811_vm10, %v2810_v30, 0  ;;  %v2265_v63 = vsel %vm6345_vm15, 0, %v6335_v49 }
 0x2b0   : > { %v2169_v33 = vxor.u32 2147483648, %v4397_v39  ;;  %v2255_v14 = vor.u32 4788187, %v2254_v48  ;;  %v559_v9 = vadd.f32 %v6311_v18, %v7570_v42  ;;  %v2751_v36 = vmul.u32 %v6320_v19, %v2735_v61 }
 0x2b1   : > { %v2173_v37 = vsel %vm2171_vm7, %v2172_v35, %v4397_v39  ;;  %v2754_v2 = vadd.s32 1, %v6367_v15  ;;  %v2814_v43 = vand.u32 31, %v2812_v58  ;;  %v2258_v52 = vcvt.s32.f32 %v2251_v21 }
 0x2b2   : > { %v2170_v45 = vsel %vm2168_vm5, %v4395_v1, %v2169_v33  ;;  %v2256_v0 = vand.u32 2147483647, %v2255_v14  ;;  %vm2753_vm9 = vc.u32 %v6372_v20, %v6366_v8  ;;  %v2269_v13 = vadd.s32 3, %v2265_v63 }
 0x2b3   : > { %v2174_v49 = vsel %vm2167_vm6, %v2170_v45, %v2173_v37  ;;  %v2755_v18 = vsel %vm2753_vm9, %v2754_v2, %v6367_v15  ;;  %v2815_v59 = vsub.s32 32, %v2814_v43  ;;  %v2813_v24 = vshrl.u32 %v2812_v58, 5 }
 0x2b4   : > { %v2175_v19 = vsel %vm2164_vm11, nan, %v2174_v49  ;;  %v2259_v44 = vmul.f32 %v2258_v52, %v2256_v0  ;;  %v2756_v40 = vadd.s32 %v2755_v18, %v2751_v36  ;;  %v2817_v22 = vshll.u32 %v7520_v53, %v2814_v43 }
 0x2b5   : > { %3959 = vst [vmem:[%s5029_s27 + $0x70] sm:$0xff] %v2175_v19  ;;  %v2818_v38 = vshrl.u32 %v7521_v60, %v2815_v59  ;;  %v2820_v51 = vshll.u32 %v7521_v60, %v2814_v43  ;;  %v2821_v27 = vshrl.u32 %v7522_v31, %v2815_v59  ;;  %v2823_v61 = vshll.u32 %v7522_v31, %v2814_v43 }
 0x2b6   : > { %v2260_v26 = vxor.u32 2147483648, %v2259_v44  ;;  %v2757_v23 = vadd.s32 536870912, %v2756_v40  ;;  %v2824_v11 = vshrl.u32 %v7523_v6, %v2815_v59  ;;  %v2826_v30 = vshll.u32 %v7523_v6, %v2814_v43 }
 0x2b7   : > { %v2819_v16 = vor.u32 %v2818_v38, %v2817_v22  ;;  %v2822_v54 = vor.u32 %v2821_v27, %v2820_v51  ;;  %v2827_v29 = vshrl.u32 %v7524_v57, %v2815_v59  ;;  %v2830_v50 = vshrl.u32 %v7525_v3, %v2815_v59 }
 0x2b8   : > { %v2261_v41 = vsel %vm2178_vm13, %v2260_v26, %v2259_v44  ;;  %v2758_v12 = vshrl.u32 %v2757_v23, 30  ;;  %v2825_v7 = vor.u32 %v2824_v11, %v2823_v61  ;;  %v2829_v21 = vshll.u32 %v7524_v57, %v2814_v43 }
 0x2b9   : > { %v2264_v15 = vsel %vm6345_vm15, %v6117_v4, %v2261_v41  ;;  %v2828_v1 = vor.u32 %v2827_v29, %v2826_v30  ;;  %v528_v48 = vmul.f32 %v4714_v17, %v6302_v46  ;;  %v6410_v47 = vand.u32 3, %v2269_v13  ;;  %v7571_v13 = vld [vmem:[#allocation4_spill] sm:$0xff] }
 0x2ba   : > { %4398 = vcosq.f32 %v2264_v15  ;;  %v2759_v39 = vshll.u32 %v2758_v12, 30  ;;  %v6412_v35 = vshll.u32 %v2808_v10, 8  ;;  %v2831_v58 = vor.u32 %v2830_v50, %v2829_v21 }
 0x2bb   : > { %4400 = vsinq.f32 %v2264_v15  ;;  %vm2832_vm8 = vcmp.lt.s32.totalorder %v2813_v24, 1  ;;  %vm2835_vm12 = vcmp.lt.s32.totalorder %v2813_v24, 4  ;;  %v6418_v63 = vadd.f32 %v4731_v34, %v559_v9 }
 0x2bc   : > { %v6414_v33 = vsub.s32 %v2756_v40, %v2759_v39  ;;  %v2837_v56 = vsel %vm2835_vm12, %v2825_v7, 2102212464  ;;  %v2840_v14 = vsel %vm2832_vm8, %v2819_v16, %v2822_v54  ;;  %v2816_v46 = vshrl.u32 %v7520_v53, %v2815_v59 }
 0x2bd   : > { %vm2833_vm13 = vcmp.lt.s32.totalorder %v2813_v24, 2  ;;  %vm2834_vm14 = vcmp.lt.s32.totalorder %v2813_v24, 3  ;;  %v2841_v42 = vsel %vm2835_vm12, %v2828_v1, 920167782  ;;  %v2782_v37 = vsub.s32 4, %v2758_v12 }
 0x2be   : > { %v2762_v10 = vsub.s32 0, %v6414_v33  ;;  %v2842_v36 = vsel %vm2834_vm14, %v2825_v7, %v2841_v42  ;;  %v2844_v2 = vsel %vm2832_vm8, %v2822_v54, %v2825_v7  ;;  %v2836_v43 = vsel %vm2832_vm8, %v2816_v46, %v2819_v16 }
 0x2bf   : > { %v2838_v45 = vsel %vm2834_vm14, %v2822_v54, %v2837_v56  ;;  %v2843_v0 = vsel %vm2833_vm13, %v2840_v14, %v2842_v36  ;;  %v2845_v52 = vsel %vm2835_vm12, %v2831_v58, 1326507024  ;;  %vm2698_vm15 = vcmp.lt.s32.totalorder %v6259_v32, 0 }
 0x2c0   : > { %v4129_v9 = vmin.u32 %v2762_v10, %v6414_v33  ;;  %v2846_v49 = vsel %vm2834_vm14, %v2828_v1, %v2845_v52  ;;  %v560_v18 = vadd.f32 %v528_v48, %v7571_v13  ;;  %vm2268_vm0 = vweird.f32 %v6117_v4 }
 0x2c1   : > { %vm6431_vm1 = vcmp.le.f32.partialorder %v2696_v28, 0.7853982  ;;  %v2847_v19 = vsel %vm2833_vm13, %v2844_v2, %v2846_v49  ;;  %v6437_v44 = vmul.u32.u64.low %v6412_v35, %v2843_v0  ;;  %v6438_v40 = vmul.u32.u64.high %v6412_v35, %v2843_v0, %v6437_v44 }
 0x2c2   : > { %vm2271_vm3 = vcmp.lt.s32.totalorder %v6410_v47, 2  ;;  %v2764_v22 = vclz %v4129_v9  ;;  %v2783_v38 = vsel %vm2698_vm15, %v2782_v37, %v2758_v12  ;;  %v2839_v51 = vsel %vm2833_vm13, %v2836_v43, %v2838_v45 }
 0x2c3   : > { %v6445_v27 = vmul.u32.u64.low %v6412_v35, %v2847_v19  ;;  %v6446_v28 = vmul.u32.u64.high %v6412_v35, %v2847_v19, %v6445_v27  ;;  %v2488_v26 = vand.u32 2147483647, %v6418_v63  ;;  %v2491_v23 = vand.u32 2139095040, %v6418_v63 }
 0x2c4   : > { %v4399_v61 = vpop.eup %4398  ;;  %vm2272_vm2 = vcmp.eq.s32.totalorder %v6410_v47, 0  ;;  %vm2275_vm5 = vcmp.eq.s32.totalorder %v6410_v47, 2  ;;  %v4130_v11 = vadd.s32 4294967294, %v2764_v22  ;;  %v6453_v16 = vadd.f32 %v4734_v5, %v560_v18  ;;  %v6475_v47 = vpop.permute.xlu0 %483 }
 0x2c5   : > { %v4401_v54 = vpop.eup %4400  ;;  %v2276_v24 = vxor.u32 2147483648, %v4399_v61  ;;  %v2752_v30 = vadd.s32 %v6366_v8, %v6372_v20  ;;  %v2858_v29 = vadd.s32 1, %v6438_v40  ;;  %v2492_v41 = vshrl.u32 %v2491_v23, 23 }
 0x2c6   : > { %v2273_v12 = vxor.u32 2147483648, %v4401_v54  ;;  %vm4131_vm6 = vcmp.lt.s32.totalorder %v4130_v11, 0  ;;  %v2785_v7 = vsel %vm6431_vm1, 0, %v2783_v38  ;;  %v2855_v50 = vmul.u32 %v6412_v35, %v2839_v51 }
 0x2c7   : > { %v2277_v15 = vsel %vm2275_vm5, %v2276_v24, %v4401_v54  ;;  %v2767_v1 = vsel %vm4131_vm6, 0, %v4130_v11  ;;  %vm2857_vm11 = vc.u32 %v6446_v28, %v6437_v44  ;;  %v2495_v21 = vand.u32 8388607, %v2488_v26 }
 0x2c8   : > { %v2274_v8 = vsel %vm2272_vm2, %v4399_v61, %v2273_v12  ;;  %v2768_v20 = vsub.s32 32, %v2767_v1  ;;  %v2772_v48 = vsub.s32 4294967266, %v2767_v1  ;;  %v2595_v39 = vand.u32 2139095040, %v6453_v16 }
 0x2c9   : > { %v2278_v58 = vsel %vm2271_vm3, %v2274_v8, %v2277_v15  ;;  %v2769_v35 = vshll.u32 %v6414_v33, %v2767_v1  ;;  %v2859_v56 = vsel %vm2857_vm11, %v2858_v29, %v6438_v40  ;;  %v4120_v14 = vadd.s32 4294967169, %v2492_v41 }
 0x2ca   : > { %v2279_v46 = vsel %vm2268_vm0, nan, %v2278_v58  ;;  %v2770_v42 = vshrl.u32 %v2752_v30, %v2768_v20  ;;  %v2773_v10 = vadd.s32 127, %v2772_v48  ;;  %v2860_v37 = vadd.s32 %v2859_v56, %v2855_v50 }
 0x2cb   : > { %3960 = vst.msk [vmem:[%s5029_s27 + $0x78] sm:$0xff] %vm3945_vm4, %v2279_v46  ;;  %v2498_v36 = vadd.s32 1, %v4120_v14  ;;  %v2789_v45 = vadd.s32 3, %v2785_v7  ;;  %v2496_v52 = vor.u32 8388608, %v2495_v21  ;;  %v2592_v33 = vand.u32 2147483647, %v6453_v16 }
 0x2cc   : > { %v2771_v2 = vor.u32 %v2770_v42, %v2769_v35  ;;  %v2774_v43 = vshll.u32 %v2773_v10, 23  ;;  %v2861_v0 = vadd.s32 536870912, %v2860_v37  ;;  %v2596_v13 = vshrl.u32 %v2595_v39, 23 }
 0x2cd   : > { %vm2499_vm10 = vcmp.gt.s32.totalorder %v2498_v36, 0  ;;  %v6480_v19 = vmul.f32 %v4698_v62, %v6475_v47  ;;  %v6482_v38 = vand.u32 3, %v2789_v45  ;;  %vm2802_vm7 = vcmp.lt.s32.totalorder %v6282_v55, 0 }
 0x2ce   : > { %v2775_v9 = vor.u32 4788187, %v2774_v43  ;;  %v2862_v49 = vshrl.u32 %v2861_v0, 30  ;;  %v2500_v4 = vsel %vm2499_vm10, %v2498_v36, 0  ;;  %v2778_v22 = vcvt.s32.f32 %v2771_v2 }
 0x2cf   : > { %v2502_v18 = vand.u32 31, %v2500_v4  ;;  %v6486_v27 = vadd.s32 %v6437_v44, %v6446_v28  ;;  %v6488_v61 = vshll.u32 %v2496_v52, 8  ;;  %v6492_v11 = vand.u32 8388607, %v2592_v33 }
 0x2d0   : > { %v2776_v40 = vand.u32 2147483647, %v2775_v9  ;;  %v2863_v51 = vshll.u32 %v2862_v49, 30  ;;  %v6496_v30 = vshrl.u32 %v2500_v4, 5  ;;  %v4124_v29 = vadd.s32 4294967169, %v2596_v13 }
 0x2d1   : > { %v2503_v23 = vsub.s32 32, %v2502_v18  ;;  %v2886_v41 = vsub.s32 4, %v2862_v49  ;;  %v2505_v12 = vshll.u32 %v7520_v53, %v2502_v18  ;;  %v2508_v15 = vshll.u32 %v7521_v60, %v2502_v18 }
 0x2d2   : > { %v2779_v54 = vmul.f32 %v2778_v22, %v2776_v40  ;;  %v6494_v24 = vsub.s32 %v2860_v37, %v2863_v51  ;;  %v2511_v8 = vshll.u32 %v7522_v31, %v2502_v18  ;;  %v2514_v20 = vshll.u32 %v7523_v6, %v2502_v18 }
 0x2d3   : > { %v2506_v7 = vshrl.u32 %v7521_v60, %v2503_v23  ;;  %v2509_v44 = vshrl.u32 %v7522_v31, %v2503_v23  ;;  %v2512_v1 = vshrl.u32 %v7523_v6, %v2503_v23  ;;  %v2515_v48 = vshrl.u32 %v7524_v57, %v2503_v23 }
 0x2d4   : > { %v2780_v28 = vxor.u32 2147483648, %v2779_v54  ;;  %v2866_v50 = vsub.s32 0, %v6494_v24  ;;  %v2517_v56 = vshll.u32 %v7524_v57, %v2502_v18  ;;  %v2518_v10 = vshrl.u32 %v7525_v3, %v2503_v23 }
 0x2d5   : > { %v2507_v21 = vor.u32 %v2506_v7, %v2505_v12  ;;  %v2510_v35 = vor.u32 %v2509_v44, %v2508_v15  ;;  %v2513_v46 = vor.u32 %v2512_v1, %v2511_v8  ;;  %v2516_v42 = vor.u32 %v2515_v48, %v2514_v20  ;;  %v7576_v48 = vld [vmem:[#allocation9_spill] sm:$0xff] }
 0x2d6   : > { %v2781_v39 = vsel %vm2698_vm15, %v2780_v28, %v2779_v54  ;;  %v4133_v58 = vmin.u32 %v2866_v50, %v6494_v24  ;;  %v2600_v36 = vor.u32 8388608, %v6492_v11  ;;  %v2602_v2 = vadd.s32 1, %v4124_v29 }
 0x2d7   : > { %v2784_v14 = vsel %vm6431_vm1, %v6259_v32, %v2781_v39  ;;  %vm6518_vm9 = vcmp.le.f32.partialorder %v2800_v25, 0.7853982  ;;  %v2887_v59 = vsel %vm2802_vm7, %v2886_v41, %v2862_v49  ;;  %v2504_v45 = vshrl.u32 %v7520_v53, %v2503_v23 }
 0x2d8   : > { %4402 = vcosq.f32 %v2784_v14  ;;  %v2868_v37 = vclz %v4133_v58  ;;  %v2519_v0 = vor.u32 %v2518_v10, %v2517_v56  ;;  %vm2520_vm8 = vcmp.lt.s32.totalorder %v6496_v30, 1 }
 0x2d9   : > { %4404 = vsinq.f32 %v2784_v14  ;;  %vm2522_vm12 = vcmp.lt.s32.totalorder %v6496_v30, 3  ;;  %vm2523_vm13 = vcmp.lt.s32.totalorder %v6496_v30, 4  ;;  %v2528_v4 = vsel %vm2520_vm8, %v2507_v21, %v2510_v35 }
 0x2da   : > { %v4134_v52 = vadd.s32 4294967294, %v2868_v37  ;;  %v2525_v9 = vsel %vm2523_vm13, %v2513_v46, 2102212464  ;;  %v2529_v13 = vsel %vm2523_vm13, %v2516_v42, 920167782  ;;  %v2532_v25 = vsel %vm2520_vm8, %v2510_v35, %v2513_v46 }
 0x2db   : > { %vm2795_vm14 = vcmp.eq.s32.totalorder %v6482_v38, 2  ;;  %vm2521_vm0 = vcmp.lt.s32.totalorder %v6496_v30, 2  ;;  %v2530_v49 = vsel %vm2522_vm12, %v2513_v46, %v2529_v13  ;;  %v2533_v18 = vsel %vm2523_vm13, %v2519_v0, 1326507024  ;;  %v7577_v0 = vld [vmem:[#allocation10_spill] sm:$0xff] }
 0x2dc   : > { %vm4135_vm15 = vcmp.lt.s32.totalorder %v4134_v52, 0  ;;  %vm2792_vm1 = vcmp.eq.s32.totalorder %v6482_v38, 0  ;;  %v2524_v22 = vsel %vm2520_vm8, %v2504_v45, %v2507_v21  ;;  %v2531_v51 = vsel %vm2521_vm0, %v2528_v4, %v2530_v49 }
 0x2dd   : > { %v2871_v40 = vsel %vm4135_vm15, 0, %v4134_v52  ;;  %v2534_v23 = vsel %vm2522_vm12, %v2516_v42, %v2533_v18  ;;  %vm2791_vm3 = vcmp.lt.s32.totalorder %v6482_v38, 2  ;;  %v2526_v29 = vsel %vm2522_vm12, %v2510_v35, %v2525_v9 }
 0x2de   : > { %v2872_v11 = vsub.s32 32, %v2871_v40  ;;  %v2876_v54 = vsub.s32 4294967266, %v2871_v40  ;;  %v2535_v41 = vsel %vm2521_vm0, %v2532_v25, %v2534_v23  ;;  %vm2788_vm2 = vweird.f32 %v6259_v32 }
 0x2df   : > { %v6544_v12 = vmul.u32.u64.low %v6488_v61, %v2535_v41  ;;  %v6545_v7 = vmul.u32.u64.high %v6488_v61, %v2535_v41, %v6544_v12  ;;  %v6548_v44 = vmul.u32.u64.low %v6488_v61, %v2531_v51  ;;  %v6549_v28 = vmul.u32.u64.high %v6488_v61, %v2531_v51, %v6548_v44 }
 0x2e0   : > { %v2873_v50 = vshll.u32 %v6494_v24, %v2871_v40  ;;  %v2874_v15 = vshrl.u32 %v6486_v27, %v2872_v11  ;;  %v2877_v1 = vadd.s32 127, %v2876_v54  ;;  %vm2603_vm5 = vcmp.gt.s32.totalorder %v2602_v2, 0 }
 0x2e1   : > { %v2527_v21 = vsel %vm2521_vm0, %v2524_v22, %v2526_v29  ;;  %v2604_v8 = vsel %vm2603_vm5, %v2602_v2, 0  ;;  %v534_v20 = vmul.f32 %v4714_v17, %v6475_v47  ;;  %v565_v39 = vadd.f32 %v6480_v19, %v7576_v48 }
 0x2e2   : > { %v4403_v58 = vpop.eup %4402  ;;  %v2875_v35 = vor.u32 %v2874_v15, %v2873_v50  ;;  %v2878_v56 = vshll.u32 %v2877_v1, 23  ;;  %v2889_v24 = vsel %vm6518_vm9, 0, %v2887_v59  ;;  %v2606_v14 = vand.u32 31, %v2604_v8 }
 0x2e3   : > { %v4405_v27 = vpop.eup %4404  ;;  %v2796_v46 = vxor.u32 2147483648, %v4403_v58  ;;  %vm2545_vm6 = vc.u32 %v6545_v7, %v6548_v44  ;;  %v2546_v30 = vadd.s32 1, %v6549_v28  ;;  %v6565_v42 = vshll.u32 %v2600_v36, 8 }
 0x2e4   : > { %v2793_v47 = vxor.u32 2147483648, %v4405_v27  ;;  %v2879_v10 = vor.u32 4788187, %v2878_v56  ;;  %v2543_v19 = vmul.u32 %v6488_v61, %v2527_v21  ;;  %v2607_v37 = vsub.s32 32, %v2606_v14 }
 0x2e5   : > { %v2797_v2 = vsel %vm2795_vm14, %v2796_v46, %v4405_v27  ;;  %v2893_v59 = vadd.s32 3, %v2889_v24  ;;  %v2547_v45 = vsel %vm2545_vm6, %v2546_v30, %v6549_v28  ;;  %v6572_v52 = vadd.f32 %v534_v20, %v7577_v0 }
 0x2e6   : > { %v2794_v9 = vsel %vm2792_vm1, %v4403_v58, %v2793_v47  ;;  %v2880_v36 = vand.u32 2147483647, %v2879_v10  ;;  %v2882_v4 = vcvt.s32.f32 %v2875_v35  ;;  %v2548_v13 = vadd.s32 %v2547_v45, %v2543_v19 }
 0x2e7   : > { %v2798_v61 = vsel %vm2791_vm3, %v2794_v9, %v2797_v2  ;;  %v2609_v25 = vshll.u32 %v7520_v53, %v2606_v14  ;;  %v2610_v49 = vshrl.u32 %v7521_v60, %v2607_v37  ;;  %v2613_v18 = vshrl.u32 %v7522_v31, %v2607_v37 }
 0x2e8   : > { %v2799_v40 = vsel %vm2788_vm2, nan, %v2798_v61  ;;  %v2883_v22 = vmul.f32 %v2882_v4, %v2880_v36  ;;  %v2549_v51 = vadd.s32 536870912, %v2548_v13  ;;  %v2616_v23 = vshrl.u32 %v7523_v6, %v2607_v37 }
 0x2e9   : > { %3965 = vst [vmem:[%s5029_s27 + $0xa0] sm:$0xff] %v2799_v40  ;;  %v2605_v11 = vshrl.u32 %v2604_v8, 5  ;;  %v2612_v54 = vshll.u32 %v7521_v60, %v2606_v14  ;;  %v2615_v38 = vshll.u32 %v7522_v31, %v2606_v14  ;;  %v2619_v29 = vshrl.u32 %v7524_v57, %v2607_v37 }
 0x2ea   : > { %v2884_v41 = vxor.u32 2147483648, %v2883_v22  ;;  %v2550_v12 = vshrl.u32 %v2549_v51, 30  ;;  %v2611_v28 = vor.u32 %v2610_v49, %v2609_v25  ;;  %v2618_v50 = vshll.u32 %v7523_v6, %v2606_v14 }
 0x2eb   : > { %v2614_v15 = vor.u32 %v2613_v18, %v2612_v54  ;;  %v2617_v32 = vor.u32 %v2616_v23, %v2615_v38  ;;  %v2621_v1 = vshll.u32 %v7524_v57, %v2606_v14  ;;  %v2622_v21 = vshrl.u32 %v7525_v3, %v2607_v37 }
 0x2ec   : > { %v2885_v8 = vsel %vm2802_vm7, %v2884_v41, %v2883_v22  ;;  %v6593_v20 = vand.u32 3, %v2893_v59  ;;  %v2551_v48 = vshll.u32 %v2550_v12, 30  ;;  %v2620_v58 = vor.u32 %v2619_v29, %v2618_v50 }
 0x2ed   : > { %v2888_v35 = vsel %vm6518_vm9, %v6282_v55, %v2885_v8  ;;  %v2608_v56 = vshrl.u32 %v7520_v53, %v2607_v37  ;;  %v2623_v24 = vor.u32 %v2622_v21, %v2621_v1  ;;  %v6600_v27 = vadd.f32 %v4731_v34, %v565_v39 }
 0x2ee   : > { %4406 = vcosq.f32 %v2888_v35  ;;  %v6602_v14 = vsub.s32 %v2548_v13, %v2551_v48  ;;  %vm2624_vm11 = vcmp.lt.s32.totalorder %v2605_v11, 1  ;;  %vm2627_vm10 = vcmp.lt.s32.totalorder %v2605_v11, 4 }
 0x2ef   : > { %4408 = vsinq.f32 %v2888_v35  ;;  %vm2625_vm7 = vcmp.lt.s32.totalorder %v2605_v11, 2  ;;  %v2629_v46 = vsel %vm2627_vm10, %v2617_v32, 2102212464  ;;  %v2632_v30 = vsel %vm2624_vm11, %v2611_v28, %v2614_v15 }
 0x2f0   : > { %v2554_v47 = vsub.s32 0, %v6602_v14  ;;  %v2574_v10 = vsub.s32 4, %v2550_v12  ;;  %vm2626_vm8 = vcmp.lt.s32.totalorder %v2605_v11, 3  ;;  %v2633_v43 = vsel %vm2627_vm10, %v2620_v58, 920167782 }
 0x2f1   : > { %v2628_v19 = vsel %vm2624_vm11, %v2608_v56, %v2611_v28  ;;  %v2634_v37 = vsel %vm2626_vm8, %v2617_v32, %v2633_v43  ;;  %v2636_v2 = vsel %vm2624_vm11, %v2614_v15, %v2617_v32  ;;  %v2637_v59 = vsel %vm2627_vm10, %v2623_v24, 1326507024 }
 0x2f2   : > { %v4121_v39 = vmin.u32 %v2554_v47, %v6602_v14  ;;  %v2630_v45 = vsel %vm2626_vm8, %v2614_v15, %v2629_v46  ;;  %v2635_v0 = vsel %vm2625_vm7, %v2632_v30, %v2634_v37  ;;  %v2638_v9 = vsel %vm2626_vm8, %v2620_v58, %v2637_v59 }
 0x2f3   : > { %vm2490_vm9 = vcmp.lt.s32.totalorder %v6418_v63, 0  ;;  %v2639_v36 = vsel %vm2625_vm7, %v2636_v2, %v2638_v9  ;;  %v6610_v4 = vmul.u32.u64.low %v6565_v42, %v2635_v0  ;;  %v6611_v13 = vmul.u32.u64.high %v6565_v42, %v2635_v0, %v6610_v4  ;;  %v6656_v2 = vpop.permute.xlu1 %479 }
 0x2f4   : > { %vm6616_vm12 = vcmp.le.f32.partialorder %v2488_v26, 0.7853982  ;;  %v2556_v25 = vclz %v4121_v39  ;;  %v2575_v49 = vsel %vm2490_vm9, %v2574_v10, %v2550_v12  ;;  %v2631_v18 = vsel %vm2625_vm7, %v2628_v19, %v2630_v45 }
 0x2f5   : > { %v6624_v40 = vmul.u32.u64.low %v6565_v42, %v2639_v36  ;;  %v6625_v22 = vmul.u32.u64.high %v6565_v42, %v2639_v36, %v6624_v40  ;;  %v3112_v51 = vand.u32 2147483647, %v6600_v27  ;;  %vm2895_vm13 = vcmp.lt.s32.totalorder %v6593_v20, 2 }
 0x2f6   : > { %v4122_v23 = vadd.s32 4294967294, %v2556_v25  ;;  %v6631_v26 = vadd.f32 %v4734_v5, %v6572_v52  ;;  %v3115_v54 = vand.u32 2139095040, %v6600_v27  ;;  %vm2896_vm14 = vcmp.eq.s32.totalorder %v6593_v20, 0 }
 0x2f7   : > { %vm2899_vm15 = vcmp.eq.s32.totalorder %v6593_v20, 2  ;;  %v2544_v11 = vadd.s32 %v6548_v44, %v6545_v7  ;;  %v2650_v38 = vadd.s32 1, %v6611_v13  ;;  %v2577_v41 = vsel %vm6616_vm12, 0, %v2575_v49 }
 0x2f8   : > { %v4407_v29 = vpop.eup %4406  ;;  %vm4123_vm0 = vcmp.lt.s32.totalorder %v4122_v23, 0  ;;  %v2647_v12 = vmul.u32 %v6565_v42, %v2631_v18  ;;  %v3116_v52 = vshrl.u32 %v3115_v54, 23  ;;  %vm2649_vm1 = vc.u32 %v6625_v22, %v6610_v4 }
 0x2f9   : > { %v4409_v28 = vpop.eup %4408  ;;  %v2900_v50 = vxor.u32 2147483648, %v4407_v29  ;;  %v2559_v15 = vsel %vm4123_vm0, 0, %v4122_v23  ;;  %v3119_v32 = vand.u32 8388607, %v3112_v51  ;;  %v3219_v21 = vand.u32 2139095040, %v6631_v26 }
 0x2fa   : > { %v2897_v7 = vxor.u32 2147483648, %v4409_v28  ;;  %v2560_v44 = vsub.s32 32, %v2559_v15  ;;  %v2564_v1 = vsub.s32 4294967266, %v2559_v15  ;;  %v2561_v42 = vshll.u32 %v6602_v14, %v2559_v15 }
 0x2fb   : > { %v2901_v8 = vsel %vm2899_vm15, %v2900_v50, %v4409_v28  ;;  %v2651_v48 = vsel %vm2649_vm1, %v2650_v38, %v6611_v13  ;;  %v4144_v58 = vadd.s32 4294967169, %v3116_v52  ;;  %vm2892_vm3 = vweird.f32 %v6282_v55 }
 0x2fc   : > { %v2898_v35 = vsel %vm2896_vm14, %v4407_v29, %v2897_v7  ;;  %v2562_v56 = vshrl.u32 %v2544_v11, %v2560_v44  ;;  %v2565_v24 = vadd.s32 127, %v2564_v1  ;;  %v2652_v46 = vadd.s32 %v2651_v48, %v2647_v12 }
 0x2fd   : > { %v2902_v30 = vsel %vm2895_vm13, %v2898_v35, %v2901_v8  ;;  %v2581_v47 = vadd.s32 3, %v2577_v41  ;;  %v3122_v10 = vadd.s32 1, %v4144_v58  ;;  %v3120_v59 = vor.u32 8388608, %v3119_v32 }
 0x2fe   : > { %v2903_v43 = vsel %vm2892_vm3, nan, %v2902_v30  ;;  %v2563_v19 = vor.u32 %v2562_v56, %v2561_v42  ;;  %v2566_v14 = vshll.u32 %v2565_v24, 23  ;;  %v2653_v37 = vadd.s32 536870912, %v2652_v46 }
 0x2ff   : > { %3966 = vst.msk [vmem:[%s5029_s27 + $0xa8] sm:$0xff] %vm3945_vm4, %v2903_v43  ;;  %vm3123_vm2 = vcmp.gt.s32.totalorder %v3122_v10, 0  ;;  %v3220_v9 = vshrl.u32 %v3219_v21, 23  ;;  %v6660_v55 = vand.u32 3, %v2581_v47  ;;  %vm2594_vm5 = vcmp.lt.s32.totalorder %v6453_v16, 0 }
 0x300   : > { %v2567_v39 = vor.u32 4788187, %v2566_v14  ;;  %v2654_v45 = vshrl.u32 %v2653_v37, 30  ;;  %v3124_v0 = vsel %vm3123_vm2, %v3122_v10, 0  ;;  %v6665_v36 = vmul.f32 %v4698_v62, %v6656_v2 }
 0x301   : > { %v3126_v20 = vand.u32 31, %v3124_v0  ;;  %v2570_v25 = vcvt.s32.f32 %v2563_v19  ;;  %vm6669_vm6 = vcmp.le.f32.partialorder %v2592_v33, 0.7853982  ;;  %v3216_v40 = vand.u32 2147483647, %v6631_v26 }
 0x302   : > { %v2568_v13 = vand.u32 2147483647, %v2567_v39  ;;  %v2655_v18 = vshll.u32 %v2654_v45, 30  ;;  %v6676_v23 = vadd.s32 %v6610_v4, %v6625_v22  ;;  %v2678_v54 = vsub.s32 4, %v2654_v45 }
 0x303   : > { %v3127_v11 = vsub.s32 32, %v3126_v20  ;;  %v6678_v38 = vshll.u32 %v3120_v59, 8  ;;  %v6682_v12 = vshrl.u32 %v3124_v0, 5  ;;  %v4148_v33 = vadd.s32 4294967169, %v3220_v9 }
 0x304   : > { %v2571_v29 = vmul.f32 %v2570_v25, %v2568_v13  ;;  %v6680_v41 = vsub.s32 %v2652_v46, %v2655_v18  ;;  %v3129_v52 = vshll.u32 %v7520_v53, %v3126_v20  ;;  %v3132_v50 = vshll.u32 %v7521_v60, %v3126_v20 }
 0x305   : > { %v3130_v28 = vshrl.u32 %v7521_v60, %v3127_v11  ;;  %v3133_v15 = vshrl.u32 %v7522_v31, %v3127_v11  ;;  %v3135_v32 = vshll.u32 %v7522_v31, %v3126_v20  ;;  %v3136_v7 = vshrl.u32 %v7523_v6, %v3127_v11 }
 0x306   : > { %v2572_v4 = vxor.u32 2147483648, %v2571_v29  ;;  %v2658_v22 = vsub.s32 0, %v6680_v41  ;;  %v2679_v44 = vsel %vm2594_vm5, %v2678_v54, %v2654_v45  ;;  %v3138_v21 = vshll.u32 %v7523_v6, %v3126_v20 }
 0x307   : > { %v3131_v1 = vor.u32 %v3130_v28, %v3129_v52  ;;  %v3139_v8 = vshrl.u32 %v7524_v57, %v3127_v11  ;;  %v3134_v58 = vor.u32 %v3133_v15, %v3132_v50  ;;  %v3141_v35 = vshll.u32 %v7524_v57, %v3126_v20 }
 0x308   : > { %v2573_v42 = vsel %vm2490_vm9, %v2572_v4, %v2571_v29  ;;  %v4125_v48 = vmin.u32 %v2658_v22, %v6680_v41  ;;  %v3137_v24 = vor.u32 %v3136_v7, %v3135_v32  ;;  %v3142_v30 = vshrl.u32 %v7525_v3, %v3127_v11 }
 0x309   : > { %v2576_v56 = vsel %vm6616_vm12, %v6418_v63, %v2573_v42  ;;  %v3140_v46 = vor.u32 %v3139_v8, %v3138_v21  ;;  %v3223_v10 = vand.u32 8388607, %v3216_v40  ;;  %v3226_v43 = vadd.s32 1, %v4148_v33 }
 0x30a   : > { %4410 = vcosq.f32 %v2576_v56  ;;  %v2660_v47 = vclz %v4125_v48  ;;  %v2681_v19 = vsel %vm6669_vm6, 0, %v2679_v44  ;;  %v3128_v14 = vshrl.u32 %v7520_v53, %v3127_v11 }
 0x30b   : > { %4412 = vsinq.f32 %v2576_v56  ;;  %v3143_v37 = vor.u32 %v3142_v30, %v3141_v35  ;;  %vm3144_vm11 = vcmp.lt.s32.totalorder %v6682_v12, 1  ;;  %vm3146_vm10 = vcmp.lt.s32.totalorder %v6682_v12, 3 }
 0x30c   : > { %v4126_v59 = vadd.s32 4294967294, %v2660_v47  ;;  %vm3147_vm7 = vcmp.lt.s32.totalorder %v6682_v12, 4  ;;  %v3152_v39 = vsel %vm3144_vm11, %v3131_v1, %v3134_v58  ;;  %v3156_v0 = vsel %vm3144_vm11, %v3134_v58, %v3137_v24 }
 0x30d   : > { %v3149_v61 = vsel %vm3147_vm7, %v3137_v24, 2102212464  ;;  %v3153_v45 = vsel %vm3147_vm7, %v3140_v46, 920167782  ;;  %vm2587_vm8 = vcmp.eq.s32.totalorder %v6660_v55, 2  ;;  %vm3145_vm12 = vcmp.lt.s32.totalorder %v6682_v12, 2 }
 0x30e   : > { %vm4127_vm9 = vcmp.lt.s32.totalorder %v4126_v59, 0  ;;  %v3154_v9 = vsel %vm3146_vm10, %v3137_v24, %v3153_v45  ;;  %v3157_v20 = vsel %vm3147_vm7, %v3143_v37, 1326507024  ;;  %vm2584_vm13 = vcmp.eq.s32.totalorder %v6660_v55, 0 }
 0x30f   : > { %v2663_v13 = vsel %vm4127_vm9, 0, %v4126_v59  ;;  %v3148_v25 = vsel %vm3144_vm11, %v3128_v14, %v3131_v1  ;;  %v3155_v18 = vsel %vm3145_vm12, %v3152_v39, %v3154_v9  ;;  %v3158_v54 = vsel %vm3146_vm10, %v3140_v46, %v3157_v20 }
 0x310   : > { %vm2583_vm14 = vcmp.lt.s32.totalorder %v6660_v55, 2  ;;  %v2664_v11 = vsub.s32 32, %v2663_v13  ;;  %v2668_v29 = vsub.s32 4294967266, %v2663_v13  ;;  %v3150_v33 = vsel %vm3146_vm10, %v3134_v58, %v3149_v61 }
 0x311   : > { %v3159_v52 = vsel %vm3145_vm12, %v3156_v0, %v3158_v54  ;;  %vm2580_vm15 = vweird.f32 %v6418_v63  ;;  %v6731_v15 = vmul.u32.u64.low %v6678_v38, %v3155_v18  ;;  %v6732_v4 = vmul.u32.u64.high %v6678_v38, %v3155_v18, %v6731_v15 }
 0x312   : > { %v6727_v28 = vmul.u32.u64.low %v6678_v38, %v3159_v52  ;;  %v6728_v50 = vmul.u32.u64.high %v6678_v38, %v3159_v52, %v6727_v28  ;;  %v2665_v22 = vshll.u32 %v6680_v41, %v2663_v13  ;;  %v2666_v32 = vshrl.u32 %v6676_v23, %v2664_v11  ;;  %v7582_v41 = vld [vmem:[#allocation7_spill] sm:$0xff] }
 0x313   : > { %v2669_v7 = vadd.s32 127, %v2668_v29  ;;  %vm3227_vm0 = vcmp.gt.s32.totalorder %v3226_v43, 0  ;;  %v2685_v44 = vadd.s32 3, %v2681_v19  ;;  %v3151_v1 = vsel %vm3145_vm12, %v3148_v25, %v3150_v33 }
 0x314   : > { %v3224_v21 = vor.u32 8388608, %v3223_v10  ;;  %v3228_v8 = vsel %vm3227_vm0, %v3226_v43, 0  ;;  %v4411_v42 = vpop.eup %4410  ;;  %v2667_v48 = vor.u32 %v2666_v32, %v2665_v22  ;;  %v532_v56 = vmul.f32 %v4714_v17, %v6656_v2 }
 0x315   : > { %v2670_v58 = vshll.u32 %v2669_v7, 23  ;;  %v3230_v35 = vand.u32 31, %v3228_v8  ;;  %v4413_v24 = vpop.eup %4412  ;;  %v2588_v46 = vxor.u32 2147483648, %v4411_v42  ;;  %vm3169_vm1 = vc.u32 %v6728_v50, %v6731_v15 }
 0x316   : > { %v3170_v23 = vadd.s32 1, %v6732_v4  ;;  %v563_v12 = vadd.f32 %v6665_v36, %v7582_v41  ;;  %v2585_v30 = vxor.u32 2147483648, %v4413_v24  ;;  %v3167_v10 = vmul.u32 %v6678_v38, %v3151_v1 }
 0x317   : > { %v2671_v47 = vor.u32 4788187, %v2670_v58  ;;  %v3231_v43 = vsub.s32 32, %v3230_v35  ;;  %v2589_v19 = vsel %vm2587_vm8, %v2588_v46, %v4413_v24  ;;  %v6749_v2 = vand.u32 3, %v2685_v44 }
 0x318   : > { %v3171_v14 = vsel %vm3169_vm1, %v3170_v23, %v6732_v4  ;;  %v6752_v37 = vshll.u32 %v3224_v21, 8  ;;  %v2586_v59 = vsel %vm2584_vm13, %v4411_v42, %v2585_v30  ;;  %v2674_v36 = vcvt.s32.f32 %v2667_v48 }
 0x319   : > { %v2672_v61 = vand.u32 2147483647, %v2671_v47  ;;  %v3172_v39 = vadd.s32 %v3171_v14, %v3167_v10  ;;  %v2590_v38 = vsel %vm2583_vm14, %v2586_v59, %v2589_v19  ;;  %v3233_v45 = vshll.u32 %v7520_v53, %v3230_v35 }
 0x31a   : > { %v3234_v0 = vshrl.u32 %v7521_v60, %v3231_v43  ;;  %v3237_v9 = vshrl.u32 %v7522_v31, %v3231_v43  ;;  %v2591_v20 = vsel %vm2580_vm15, nan, %v2590_v38  ;;  %v3240_v18 = vshrl.u32 %v7523_v6, %v3231_v43 }
 0x31b   : > { %v2675_v13 = vmul.f32 %v2674_v36, %v2672_v61  ;;  %v3173_v25 = vadd.s32 536870912, %v3172_v39  ;;  %3963 = vst [vmem:[%s5029_s27 + $0x90] sm:$0xff] %v2591_v20  ;;  %v3229_v54 = vshrl.u32 %v3228_v8, 5  ;;  %v3236_v11 = vshll.u32 %v7521_v60, %v3230_v35  ;;  %v7583_v8 = vld [vmem:[#allocation8_spill] sm:$0xff] }
 0x31c   : > { %v3239_v55 = vshll.u32 %v7522_v31, %v3230_v35  ;;  %v3243_v29 = vshrl.u32 %v7524_v57, %v3231_v43  ;;  %v3235_v28 = vor.u32 %v3234_v0, %v3233_v45  ;;  %v3242_v4 = vshll.u32 %v7523_v6, %v3230_v35 }
 0x31d   : > { %v2676_v33 = vxor.u32 2147483648, %v2675_v13  ;;  %v3174_v52 = vshrl.u32 %v3173_v25, 30  ;;  %v3238_v22 = vor.u32 %v3237_v9, %v3236_v11  ;;  %v3245_v32 = vshll.u32 %v7524_v57, %v3230_v35 }
 0x31e   : > { %v3241_v63 = vor.u32 %v3240_v18, %v3239_v55  ;;  %v3246_v7 = vshrl.u32 %v7525_v3, %v3231_v43  ;;  %v3244_v21 = vor.u32 %v3243_v29, %v3242_v4  ;;  %v564_v42 = vadd.f32 %v532_v56, %v7583_v8 }
 0x31f   : > { %v2677_v44 = vsel %vm2594_vm5, %v2676_v33, %v2675_v13  ;;  %v3175_v1 = vshll.u32 %v3174_v52, 30  ;;  %v3232_v58 = vshrl.u32 %v7520_v53, %v3231_v43  ;;  %v6779_v46 = vadd.f32 %v4731_v34, %v563_v12 }
 0x320   : > { %v2680_v48 = vsel %vm6669_vm6, %v6453_v16, %v2677_v44  ;;  %v3247_v24 = vor.u32 %v3246_v7, %v3245_v32  ;;  %vm3248_vm3 = vcmp.lt.s32.totalorder %v3229_v54, 1  ;;  %vm3251_vm2 = vcmp.lt.s32.totalorder %v3229_v54, 4 }
 0x321   : > { %4414 = vcosq.f32 %v2680_v48  ;;  %v6781_v35 = vsub.s32 %v3172_v39, %v3175_v1  ;;  %vm3249_vm5 = vcmp.lt.s32.totalorder %v3229_v54, 2  ;;  %v3253_v23 = vsel %vm3251_vm2, %v3241_v63, 2102212464 }
 0x322   : > { %4416 = vsinq.f32 %v2680_v48  ;;  %v3256_v41 = vsel %vm3248_vm3, %v3235_v28, %v3238_v22  ;;  %v3198_v30 = vsub.s32 4, %v3174_v52  ;;  %vm3250_vm11 = vcmp.lt.s32.totalorder %v3229_v54, 3 }
 0x323   : > { %v3178_v56 = vsub.s32 0, %v6781_v35  ;;  %v3257_v49 = vsel %vm3251_vm2, %v3244_v21, 920167782  ;;  %v3252_v47 = vsel %vm3248_vm3, %v3232_v58, %v3235_v28  ;;  %v3260_v43 = vsel %vm3248_vm3, %v3238_v22, %v3241_v63 }
 0x324   : > { %v3258_v10 = vsel %vm3250_vm11, %v3241_v63, %v3257_v49  ;;  %v3261_v19 = vsel %vm3251_vm2, %v3247_v24, 1326507024  ;;  %v3254_v14 = vsel %vm3250_vm11, %v3238_v22, %v3253_v23  ;;  %vm3114_vm6 = vcmp.lt.s32.totalorder %v6600_v27, 0 }
 0x325   : > { %v4145_v12 = vmin.u32 %v3178_v56, %v6781_v35  ;;  %v3259_v59 = vsel %vm3249_vm5, %v3256_v41, %v3258_v10  ;;  %v3262_v61 = vsel %vm3250_vm11, %v3244_v21, %v3261_v19  ;;  %vm6794_vm10 = vcmp.le.f32.partialorder %v3112_v51, 0.7853982 }
 0x326   : > { %v3263_v36 = vsel %vm3249_vm5, %v3260_v43, %v3262_v61  ;;  %v6789_v39 = vmul.u32.u64.low %v6752_v37, %v3259_v59  ;;  %v6790_v38 = vmul.u32.u64.high %v6752_v37, %v3259_v59, %v6789_v39  ;;  %v3199_v9 = vsel %vm3114_vm6, %v3198_v30, %v3174_v52 }
 0x327   : > { %v3180_v0 = vclz %v4145_v12  ;;  %v3255_v20 = vsel %vm3249_vm5, %v3252_v47, %v3254_v14  ;;  %v6802_v13 = vmul.u32.u64.low %v6752_v37, %v3263_v36  ;;  %v6803_v25 = vmul.u32.u64.high %v6752_v37, %v3263_v36, %v6802_v13 }
 0x328   : > { %v2904_v18 = vand.u32 2147483647, %v6779_v46  ;;  %vm2687_vm7 = vcmp.lt.s32.totalorder %v6749_v2, 2  ;;  %v6808_v51 = vadd.f32 %v4734_v5, %v564_v42  ;;  %v2907_v55 = vand.u32 2139095040, %v6779_v46 }
 0x329   : > { %v4146_v11 = vadd.s32 4294967294, %v3180_v0  ;;  %vm2688_vm8 = vcmp.eq.s32.totalorder %v6749_v2, 0  ;;  %vm2691_vm9 = vcmp.eq.s32.totalorder %v6749_v2, 2  ;;  %v3168_v54 = vadd.s32 %v6731_v15, %v6728_v50 }
 0x32a   : > { %v3274_v29 = vadd.s32 1, %v6790_v38  ;;  %v3201_v52 = vsel %vm6794_vm10, 0, %v3199_v9  ;;  %v3271_v28 = vmul.u32 %v6752_v37, %v3255_v20  ;;  %v2908_v4 = vshrl.u32 %v2907_v55, 23 }
 0x32b   : > { %v4415_v33 = vpop.eup %4414  ;;  %vm4147_vm12 = vcmp.lt.s32.totalorder %v4146_v11, 0  ;;  %vm3273_vm13 = vc.u32 %v6803_v25, %v6789_v39  ;;  %v2911_v7 = vand.u32 8388607, %v2904_v18  ;;  %v3011_v1 = vand.u32 2139095040, %v6808_v51 }
 0x32c   : > { %v4417_v22 = vpop.eup %4416  ;;  %v2692_v63 = vxor.u32 2147483648, %v4415_v33  ;;  %v3183_v32 = vsel %vm4147_vm12, 0, %v4146_v11  ;;  %v3275_v8 = vsel %vm3273_vm13, %v3274_v29, %v6790_v38  ;;  %v4136_v42 = vadd.s32 4294967169, %v2908_v4 }
 0x32d   : > { %v2689_v44 = vxor.u32 2147483648, %v4417_v22  ;;  %v3184_v50 = vsub.s32 32, %v3183_v32  ;;  %v3188_v15 = vsub.s32 4294967266, %v3183_v32  ;;  %v3185_v37 = vshll.u32 %v6781_v35, %v3183_v32 }
 0x32e   : > { %v2693_v21 = vsel %vm2691_vm9, %v2692_v63, %v4417_v22  ;;  %v3276_v23 = vadd.s32 %v3275_v8, %v3271_v28  ;;  %vm2684_vm14 = vweird.f32 %v6453_v16  ;;  %v3205_v56 = vadd.s32 3, %v3201_v52 }
 0x32f   : > { %v2690_v48 = vsel %vm2688_vm8, %v4415_v33, %v2689_v44  ;;  %v3186_v58 = vshrl.u32 %v3168_v54, %v3184_v50  ;;  %v3189_v24 = vadd.s32 127, %v3188_v15  ;;  %v2914_v30 = vadd.s32 1, %v4136_v42 }
 0x330   : > { %v2694_v41 = vsel %vm2687_vm7, %v2690_v48, %v2693_v21  ;;  %v3277_v35 = vadd.s32 536870912, %v3276_v23  ;;  %v2912_v43 = vor.u32 8388608, %v2911_v7  ;;  %v3012_v59 = vshrl.u32 %v3011_v1, 23 }
 0x331   : > { %v2695_v49 = vsel %vm2684_vm14, nan, %v2694_v41  ;;  %v3187_v47 = vor.u32 %v3186_v58, %v3185_v37  ;;  %v3190_v10 = vshll.u32 %v3189_v24, 23  ;;  %vm2915_vm15 = vcmp.gt.s32.totalorder %v2914_v30, 0 }
 0x332   : > { %3964 = vst.msk [vmem:[%s5029_s27 + $0x98] sm:$0xff] %vm3945_vm4, %v2695_v49  ;;  %v3278_v12 = vshrl.u32 %v3277_v35, 30  ;;  %v2916_v14 = vsel %vm2915_vm15, %v2914_v30, 0  ;;  %v6834_v61 = vand.u32 3, %v3205_v56  ;;  %vm3218_vm0 = vcmp.lt.s32.totalorder %v6631_v26, 0 }
 0x333   : > { %v3191_v19 = vor.u32 4788187, %v3190_v10  ;;  %v2918_v16 = vand.u32 31, %v2916_v14  ;;  %v3194_v36 = vcvt.s32.f32 %v3187_v47  ;;  %vm6839_vm1 = vcmp.le.f32.partialorder %v3216_v40, 0.7853982 }
 0x334   : > { %v3279_v0 = vshll.u32 %v3278_v12, 30  ;;  %v3008_v9 = vand.u32 2147483647, %v6808_v51  ;;  %v3272_v20 = vadd.s32 %v6789_v39, %v6803_v25  ;;  %v3302_v13 = vsub.s32 4, %v3278_v12 }
 0x335   : > { %v3192_v2 = vand.u32 2147483647, %v3191_v19  ;;  %v2919_v11 = vsub.s32 32, %v2918_v16  ;;  %v6845_v55 = vshll.u32 %v2912_v43, 8  ;;  %v2917_v33 = vshrl.u32 %v2916_v14, 5 }
 0x336   : > { %v6847_v29 = vsub.s32 %v3276_v23, %v3279_v0  ;;  %v4140_v52 = vadd.s32 4294967169, %v3012_v59  ;;  %v2921_v28 = vshll.u32 %v7520_v53, %v2918_v16  ;;  %v2924_v4 = vshll.u32 %v7521_v60, %v2918_v16 }
 0x337   : > { %v3195_v54 = vmul.f32 %v3194_v36, %v3192_v2  ;;  %v2922_v40 = vshrl.u32 %v7521_v60, %v2919_v11  ;;  %v2925_v22 = vshrl.u32 %v7522_v31, %v2919_v11  ;;  %v2927_v25 = vshll.u32 %v7522_v31, %v2918_v16 }
 0x338   : > { %v3282_v39 = vsub.s32 0, %v6847_v29  ;;  %v2928_v32 = vshrl.u32 %v7523_v6, %v2919_v11  ;;  %v3303_v7 = vsel %vm3218_vm0, %v3302_v13, %v3278_v12  ;;  %v2930_v50 = vshll.u32 %v7523_v6, %v2918_v16 }
 0x339   : > { %v3196_v63 = vxor.u32 2147483648, %v3195_v54  ;;  %v2923_v44 = vor.u32 %v2922_v40, %v2921_v28  ;;  %v2931_v15 = vshrl.u32 %v7524_v57, %v2919_v11  ;;  %v2926_v37 = vor.u32 %v2925_v22, %v2924_v4 }
 0x33a   : > { %v4149_v21 = vmin.u32 %v3282_v39, %v6847_v29  ;;  %v2933_v8 = vshll.u32 %v7524_v57, %v2918_v16  ;;  %v2929_v48 = vor.u32 %v2928_v32, %v2927_v25  ;;  %v2934_v24 = vshrl.u32 %v7525_v3, %v2919_v11 }
 0x33b   : > { %v3197_v1 = vsel %vm3114_vm6, %v3196_v63, %v3195_v54  ;;  %v2932_v58 = vor.u32 %v2931_v15, %v2930_v50  ;;  %v6870_v41 = vand.u32 8388607, %v3008_v9  ;;  %v3018_v56 = vadd.s32 1, %v4140_v52 }
 0x33c   : > { %v3200_v42 = vsel %vm6794_vm10, %v6600_v27, %v3197_v1  ;;  %v3284_v23 = vclz %v4149_v21  ;;  %v3305_v30 = vsel %vm6839_vm1, 0, %v3303_v7  ;;  %v2920_v49 = vshrl.u32 %v7520_v53, %v2919_v11  ;;  %v492_v21 = vpop.permute.xlu0 %491 }
 0x33d   : > { %4418 = vcosq.f32 %v3200_v42  ;;  %v2935_v47 = vor.u32 %v2934_v24, %v2933_v8  ;;  %vm2936_vm3 = vcmp.lt.s32.totalorder %v2917_v33, 1  ;;  %vm2938_vm2 = vcmp.lt.s32.totalorder %v2917_v33, 3 }
 0x33e   : > { %4420 = vsinq.f32 %v3200_v42  ;;  %v4150_v45 = vadd.s32 4294967294, %v3284_v23  ;;  %vm2939_vm5 = vcmp.lt.s32.totalorder %v2917_v33, 4  ;;  %v2944_v35 = vsel %vm2936_vm3, %v2923_v44, %v2926_v37 }
 0x33f   : > { %v2941_v10 = vsel %vm2939_vm5, %v2929_v48, 2102212464  ;;  %v2945_v43 = vsel %vm2939_vm5, %v2932_v58, 920167782  ;;  %v2948_v19 = vsel %vm2936_vm3, %v2926_v37, %v2929_v48  ;;  %vm2937_vm6 = vcmp.lt.s32.totalorder %v2917_v33, 2 }
 0x340   : > { %vm4151_vm11 = vcmp.lt.s32.totalorder %v4150_v45, 0  ;;  %v2946_v12 = vsel %vm2938_vm2, %v2929_v48, %v2945_v43  ;;  %v2949_v14 = vsel %vm2939_vm5, %v2935_v47, 1326507024  ;;  %v2940_v16 = vsel %vm2936_vm3, %v2920_v49, %v2923_v44 }
 0x341   : > { %v3287_v59 = vsel %vm4151_vm11, 0, %v4150_v45  ;;  %v2947_v2 = vsel %vm2937_vm6, %v2944_v35, %v2946_v12  ;;  %v2950_v36 = vsel %vm2938_vm2, %v2932_v58, %v2949_v14  ;;  %vm3207_vm10 = vcmp.lt.s32.totalorder %v6834_v61, 2 }
 0x342   : > { %v3288_v0 = vsub.s32 32, %v3287_v59  ;;  %v3292_v13 = vsub.s32 4294967266, %v3287_v59  ;;  %v2942_v11 = vsel %vm2938_vm2, %v2926_v37, %v2941_v10  ;;  %v2951_v54 = vsel %vm2937_vm6, %v2948_v19, %v2950_v36 }
 0x343   : > { %vm3204_vm7 = vweird.f32 %v6600_v27  ;;  %v6883_v52 = vmul.u32.u64.low %v6845_v55, %v2951_v54  ;;  %v6884_v28 = vmul.u32.u64.high %v6845_v55, %v2951_v54, %v6883_v52  ;;  %v3289_v22 = vshll.u32 %v6847_v29, %v3287_v59 }
 0x344   : > { %v6887_v40 = vmul.u32.u64.low %v6845_v55, %v2947_v2  ;;  %v6888_v4 = vmul.u32.u64.high %v6845_v55, %v2947_v2, %v6887_v40  ;;  %v3290_v63 = vshrl.u32 %v3272_v20, %v3288_v0  ;;  %v3293_v39 = vadd.s32 127, %v3292_v13 }
 0x345   : > { %vm3019_vm8 = vcmp.gt.s32.totalorder %v3018_v56, 0  ;;  %vm3208_vm9 = vcmp.eq.s32.totalorder %v6834_v61, 0  ;;  %v3309_v25 = vadd.s32 3, %v3305_v30  ;;  %v2943_v32 = vsel %vm2937_vm6, %v2940_v16, %v2942_v11 }
 0x346   : > { %v3020_v7 = vsel %vm3019_vm8, %v3018_v56, 0  ;;  %vm3211_vm12 = vcmp.eq.s32.totalorder %v6834_v61, 2  ;;  %v3291_v50 = vor.u32 %v3290_v63, %v3289_v22  ;;  %v3294_v15 = vshll.u32 %v3293_v39, 23 }
 0x347   : > { %v4419_v44 = vpop.eup %4418  ;;  %v3022_v1 = vand.u32 31, %v3020_v7  ;;  %vm2961_vm13 = vc.u32 %v6884_v28, %v6887_v40  ;;  %v2962_v20 = vadd.s32 1, %v6888_v4  ;;  %v3016_v29 = vor.u32 8388608, %v6870_v41 }
 0x348   : > { %v4421_v37 = vpop.eup %4420  ;;  %v3212_v8 = vxor.u32 2147483648, %v4419_v44  ;;  %v3295_v33 = vor.u32 4788187, %v3294_v15  ;;  %v2959_v48 = vmul.u32 %v6845_v55, %v2943_v32  ;;  %v6900_v23 = vand.u32 3, %v3309_v25  ;;  %v7588_v15 = vld [vmem:[#allocation13_spill] sm:$0xff] }
 0x349   : > { %v3209_v42 = vxor.u32 2147483648, %v4421_v37  ;;  %v3023_v58 = vsub.s32 32, %v3022_v1  ;;  %v2963_v56 = vsel %vm2961_vm13, %v2962_v20, %v6888_v4  ;;  %v537_v30 = vmul.f32 %v4698_v62, %v492_v21 }
 0x34a   : > { %v3213_v24 = vsel %vm3211_vm12, %v3212_v8, %v4421_v37  ;;  %v3296_v47 = vand.u32 2147483647, %v3295_v33  ;;  %v3298_v45 = vcvt.s32.f32 %v3291_v50  ;;  %v2964_v10 = vadd.s32 %v2963_v56, %v2959_v48 }
 0x34b   : > { %v3210_v49 = vsel %vm3208_vm9, %v4419_v44, %v3209_v42  ;;  %v3025_v55 = vshll.u32 %v7520_v53, %v3022_v1  ;;  %v3026_v35 = vshrl.u32 %v7521_v60, %v3023_v58  ;;  %v3029_v43 = vshrl.u32 %v7522_v31, %v3023_v58 }
 0x34c   : > { %v3214_v41 = vsel %vm3207_vm10, %v3210_v49, %v3213_v24  ;;  %v3299_v12 = vmul.f32 %v3298_v45, %v3296_v47  ;;  %v2965_v14 = vadd.s32 536870912, %v2964_v10  ;;  %v3032_v59 = vshrl.u32 %v7523_v6, %v3023_v58 }
 0x34d   : > { %v3215_v19 = vsel %vm3204_vm7, nan, %v3214_v41  ;;  %v3021_v16 = vshrl.u32 %v3020_v7, 5  ;;  %v3028_v2 = vshll.u32 %v7521_v60, %v3022_v1  ;;  %v3031_v61 = vshll.u32 %v7522_v31, %v3022_v1 }
 0x34e   : > { %3969 = vst [vmem:[%s5029_s27 + $0xc0] sm:$0xff] %v3215_v19  ;;  %v3035_v36 = vshrl.u32 %v7524_v57, %v3023_v58  ;;  %v3300_v0 = vxor.u32 2147483648, %v3299_v12  ;;  %v2966_v13 = vshrl.u32 %v2965_v14, 30  ;;  %v3027_v11 = vor.u32 %v3026_v35, %v3025_v55 }
 0x34f   : > { %v3034_v54 = vshll.u32 %v7523_v6, %v3022_v1  ;;  %v3030_v52 = vor.u32 %v3029_v43, %v3028_v2  ;;  %v3033_v27 = vor.u32 %v3032_v59, %v3031_v61  ;;  %v3037_v4 = vshll.u32 %v7524_v57, %v3022_v1  ;;  %v7591_v2 = vld [vmem:[#allocation14_spill] sm:$0xff] }
 0x350   : > { %v3038_v22 = vshrl.u32 %v7525_v3, %v3023_v58  ;;  %v3301_v63 = vsel %vm3218_vm0, %v3300_v0, %v3299_v12  ;;  %v2967_v39 = vshll.u32 %v2966_v13, 30  ;;  %v6923_v32 = vshll.u32 %v3016_v29, 8 }
 0x351   : > { %v3036_v25 = vor.u32 %v3035_v36, %v3034_v54  ;;  %v3304_v7 = vsel %vm6839_vm1, %v6631_v26, %v3301_v63  ;;  %v538_v50 = vmul.f32 %v4714_v17, %v492_v21  ;;  %v569_v37 = vadd.f32 %v537_v30, %v7588_v15 }
 0x352   : > { %v3039_v44 = vor.u32 %v3038_v22, %v3037_v4  ;;  %4422 = vcosq.f32 %v3304_v7  ;;  %v6930_v1 = vsub.s32 %v2964_v10, %v2967_v39  ;;  %vm3040_vm14 = vcmp.lt.s32.totalorder %v3021_v16, 1 }
 0x353   : > { %vm3043_vm15 = vcmp.lt.s32.totalorder %v3021_v16, 4  ;;  %4424 = vsinq.f32 %v3304_v7  ;;  %v3024_v8 = vshrl.u32 %v7520_v53, %v3023_v58  ;;  %v3048_v29 = vsel %vm3040_vm14, %v3027_v11, %v3030_v52 }
 0x354   : > { %v3045_v20 = vsel %vm3043_vm15, %v3033_v27, 2102212464  ;;  %v2970_v42 = vsub.s32 0, %v6930_v1  ;;  %vm3041_vm0 = vcmp.lt.s32.totalorder %v3021_v16, 2  ;;  %vm3042_vm3 = vcmp.lt.s32.totalorder %v3021_v16, 3 }
 0x355   : > { %v3049_v38 = vsel %vm3043_vm15, %v3036_v25, 920167782  ;;  %v3044_v33 = vsel %vm3040_vm14, %v3024_v8, %v3027_v11  ;;  %v3052_v21 = vsel %vm3040_vm14, %v3030_v52, %v3033_v27  ;;  %v3053_v24 = vsel %vm3043_vm15, %v3039_v44, 1326507024 }
 0x356   : > { %v3050_v48 = vsel %vm3042_vm3, %v3033_v27, %v3049_v38  ;;  %v4137_v56 = vmin.u32 %v2970_v42, %v6930_v1  ;;  %v3046_v30 = vsel %vm3042_vm3, %v3030_v52, %v3045_v20  ;;  %v3054_v47 = vsel %vm3042_vm3, %v3036_v25, %v3053_v24 }
 0x357   : > { %v3051_v49 = vsel %vm3041_vm0, %v3048_v29, %v3050_v48  ;;  %v3055_v45 = vsel %vm3041_vm0, %v3052_v21, %v3054_v47  ;;  %vm2906_vm1 = vcmp.lt.s32.totalorder %v6779_v46, 0  ;;  %v2990_v55 = vsub.s32 4, %v2966_v13 }
 0x358   : > { %v6938_v58 = vmul.u32.u64.low %v6923_v32, %v3051_v49  ;;  %v6939_v10 = vmul.u32.u64.high %v6923_v32, %v3051_v49, %v6938_v58  ;;  %v2972_v41 = vclz %v4137_v56  ;;  %vm3308_vm2 = vweird.f32 %v6631_v26 }
 0x359   : > { %v3047_v35 = vsel %vm3041_vm0, %v3044_v33, %v3046_v30  ;;  %v6946_v43 = vmul.u32.u64.low %v6923_v32, %v3055_v45  ;;  %v6947_v19 = vmul.u32.u64.high %v6923_v32, %v3055_v45, %v6946_v43  ;;  %v6950_v12 = vadd.f32 %v4731_v34, %v569_v37  ;;  %v6993_v45 = vpop.permute.xlu1 %487 }
 0x35a   : > { %vm3311_vm5 = vcmp.lt.s32.totalorder %v6900_v23, 2  ;;  %vm6955_vm11 = vcmp.le.f32.partialorder %v2904_v18, 0.7853982  ;;  %v4138_v59 = vadd.s32 4294967294, %v2972_v41  ;;  %v570_v61 = vadd.f32 %v538_v50, %v7591_v2 }
 0x35b   : > { %vm3312_vm6 = vcmp.eq.s32.totalorder %v6900_v23, 0  ;;  %vm3315_vm10 = vcmp.eq.s32.totalorder %v6900_v23, 2  ;;  %v3066_v16 = vadd.s32 1, %v6939_v10  ;;  %v3531_v36 = vand.u32 2139095040, %v6950_v12 }
 0x35c   : > { %v4423_v0 = vpop.eup %4422  ;;  %v2960_v11 = vadd.s32 %v6887_v40, %v6884_v28  ;;  %vm4139_vm7 = vcmp.lt.s32.totalorder %v4138_v59, 0  ;;  %v2991_v18 = vsel %vm2906_vm1, %v2990_v55, %v2966_v13  ;;  %v3063_v54 = vmul.u32 %v6923_v32, %v3047_v35 }
 0x35d   : > { %v4425_v52 = vpop.eup %4424  ;;  %v3316_v27 = vxor.u32 2147483648, %v4423_v0  ;;  %v2975_v4 = vsel %vm4139_vm7, 0, %v4138_v59  ;;  %vm3065_vm8 = vc.u32 %v6947_v19, %v6938_v58  ;;  %v3528_v22 = vand.u32 2147483647, %v6950_v12 }
 0x35e   : > { %v3313_v63 = vxor.u32 2147483648, %v4425_v52  ;;  %v2976_v39 = vsub.s32 32, %v2975_v4  ;;  %v2980_v25 = vsub.s32 4294967266, %v2975_v4  ;;  %v6973_v7 = vadd.f32 %v4734_v5, %v570_v61 }
 0x35f   : > { %v3317_v28 = vsel %vm3315_vm10, %v3316_v27, %v4425_v52  ;;  %v2977_v40 = vshll.u32 %v6930_v1, %v2975_v4  ;;  %v3067_v13 = vsel %vm3065_vm8, %v3066_v16, %v6939_v10  ;;  %v3532_v32 = vshrl.u32 %v3531_v36, 23 }
 0x360   : > { %v3314_v44 = vsel %vm3312_vm6, %v4423_v0, %v3313_v63  ;;  %v2978_v50 = vshrl.u32 %v2960_v11, %v2976_v39  ;;  %v2981_v15 = vadd.s32 127, %v2980_v25  ;;  %v3068_v37 = vadd.s32 %v3067_v13, %v3063_v54 }
 0x361   : > { %v3318_v8 = vsel %vm3311_vm5, %v3314_v44, %v3317_v28  ;;  %v2993_v20 = vsel %vm6955_vm11, 0, %v2991_v18  ;;  %v4160_v29 = vadd.s32 4294967169, %v3532_v32  ;;  %v3535_v42 = vand.u32 8388607, %v3528_v22 }
 0x362   : > { %v3319_v1 = vsel %vm3308_vm2, nan, %v3318_v8  ;;  %v2979_v38 = vor.u32 %v2978_v50, %v2977_v40  ;;  %v2982_v33 = vshll.u32 %v2981_v15, 23  ;;  %v3069_v48 = vadd.s32 536870912, %v3068_v37 }
 0x363   : > { %3970 = vst.msk [vmem:[%s5029_s27 + $0xc8] sm:$0xff] %vm3945_vm4, %v3319_v1  ;;  %v3538_v21 = vadd.s32 1, %v4160_v29  ;;  %v3635_v24 = vand.u32 2139095040, %v6973_v7  ;;  %v2997_v56 = vadd.s32 3, %v2993_v20  ;;  %v3536_v49 = vor.u32 8388608, %v3535_v42 }
 0x364   : > { %v2983_v23 = vor.u32 4788187, %v2982_v33  ;;  %v3070_v30 = vshrl.u32 %v3069_v48, 30  ;;  %v3632_v47 = vand.u32 2147483647, %v6973_v7  ;;  %v2986_v26 = vcvt.s32.f32 %v2979_v38 }
 0x365   : > { %vm3539_vm9 = vcmp.gt.s32.totalorder %v3538_v21, 0  ;;  %vm3010_vm12 = vcmp.lt.s32.totalorder %v6808_v51, 0  ;;  %v3636_v43 = vshrl.u32 %v3635_v24, 23  ;;  %v6996_v2 = vand.u32 3, %v2997_v56 }
 0x366   : > { %v2984_v10 = vand.u32 2147483647, %v2983_v23  ;;  %v3071_v41 = vshll.u32 %v3070_v30, 30  ;;  %v3540_v55 = vsel %vm3539_vm9, %v3538_v21, 0  ;;  %v7002_v16 = vmul.f32 %v4698_v62, %v6993_v45 }
 0x367   : > { %v3542_v35 = vand.u32 31, %v3540_v55  ;;  %v3064_v36 = vadd.s32 %v6938_v58, %v6947_v19  ;;  %v3094_v0 = vsub.s32 4, %v3070_v30  ;;  %v7008_v18 = vand.u32 8388607, %v3632_v47 }
 0x368   : > { %v2987_v59 = vmul.f32 %v2986_v26, %v2984_v10  ;;  %v6998_v61 = vsub.s32 %v3068_v37, %v3071_v41  ;;  %v3541_v27 = vshrl.u32 %v3540_v55, 5  ;;  %v7011_v4 = vshll.u32 %v3536_v49, 8 }
 0x369   : > { %v3543_v11 = vsub.s32 32, %v3542_v35  ;;  %v4164_v28 = vadd.s32 4294967169, %v3636_v43  ;;  %v3545_v40 = vshll.u32 %v7520_v53, %v3542_v35  ;;  %v3551_v13 = vshll.u32 %v7522_v31, %v3542_v35 }
 0x36a   : > { %v2988_v54 = vxor.u32 2147483648, %v2987_v59  ;;  %v3074_v52 = vsub.s32 0, %v6998_v61  ;;  %v7026_v44 = vsel %vm3010_vm12, %v3094_v0, %v3070_v30  ;;  %v3548_v15 = vshll.u32 %v7521_v60, %v3542_v35 }
 0x36b   : > { %v3546_v63 = vshrl.u32 %v7521_v60, %v3543_v11  ;;  %v3549_v39 = vshrl.u32 %v7522_v31, %v3543_v11  ;;  %v3552_v25 = vshrl.u32 %v7523_v6, %v3543_v11  ;;  %v3544_v50 = vshrl.u32 %v7520_v53, %v3543_v11 }
 0x36c   : > { %v2989_v58 = vsel %vm2906_vm1, %v2988_v54, %v2987_v59  ;;  %v4141_v19 = vmin.u32 %v3074_v52, %v6998_v61  ;;  %v3554_v42 = vshll.u32 %v7523_v6, %v3542_v35  ;;  %v3555_v1 = vshrl.u32 %v7524_v57, %v3543_v11 }
 0x36d   : > { %v2992_v32 = vsel %vm6955_vm11, %v6779_v46, %v2989_v58  ;;  %v3547_v8 = vor.u32 %v3546_v63, %v3545_v40  ;;  %v3553_v20 = vor.u32 %v3552_v25, %v3551_v13  ;;  %v3550_v29 = vor.u32 %v3549_v39, %v3548_v15 }
 0x36e   : > { %4426 = vcosq.f32 %v2992_v32  ;;  %v3076_v37 = vclz %v4141_v19  ;;  %v3557_v38 = vshll.u32 %v7524_v57, %v3542_v35  ;;  %v3558_v33 = vshrl.u32 %v7525_v3, %v3543_v11 }
 0x36f   : > { %4428 = vsinq.f32 %v2992_v32  ;;  %vm3560_vm13 = vcmp.lt.s32.totalorder %v3541_v27, 1  ;;  %vm7036_vm14 = vcmp.le.f32.partialorder %v3008_v9, 0.7853982  ;;  %v3556_v21 = vor.u32 %v3555_v1, %v3554_v42 }
 0x370   : > { %v4142_v14 = vadd.s32 4294967294, %v3076_v37  ;;  %vm3561_vm15 = vcmp.lt.s32.totalorder %v3541_v27, 2  ;;  %vm3562_vm0 = vcmp.lt.s32.totalorder %v3541_v27, 3  ;;  %vm3563_vm3 = vcmp.lt.s32.totalorder %v3541_v27, 4 }
 0x371   : > { %v3559_v24 = vor.u32 %v3558_v33, %v3557_v38  ;;  %v3564_v23 = vsel %vm3560_vm13, %v3544_v50, %v3547_v8  ;;  %v3565_v56 = vsel %vm3563_vm3, %v3553_v20, 2102212464  ;;  %vm3000_vm2 = vcmp.eq.s32.totalorder %v6996_v2, 0 }
 0x372   : > { %vm4143_vm1 = vcmp.lt.s32.totalorder %v4142_v14, 0  ;;  %v3566_v49 = vsel %vm3562_vm0, %v3550_v29, %v3565_v56  ;;  %v3568_v9 = vsel %vm3560_vm13, %v3547_v8, %v3550_v29  ;;  %v3569_v10 = vsel %vm3563_vm3, %v3556_v21, 920167782 }
 0x373   : > { %v3079_v30 = vsel %vm4143_vm1, 0, %v4142_v14  ;;  %vm2999_vm5 = vcmp.lt.s32.totalorder %v6996_v2, 2  ;;  %v3572_v35 = vsel %vm3560_vm13, %v3550_v29, %v3553_v20  ;;  %vm2996_vm11 = vweird.f32 %v6779_v46  ;;  %v7594_v29 = vld [vmem:[#allocation11_spill] sm:$0xff] }
 0x374   : > { %v3080_v26 = vsub.s32 32, %v3079_v30  ;;  %v3081_v41 = vshll.u32 %v6998_v61, %v3079_v30  ;;  %v3084_v55 = vsub.s32 4294967266, %v3079_v30  ;;  %v3567_v43 = vsel %vm3561_vm15, %v3564_v23, %v3566_v49 }
 0x375   : > { %v3570_v59 = vsel %vm3562_vm0, %v3553_v20, %v3569_v10  ;;  %v3573_v0 = vsel %vm3563_vm3, %v3559_v24, 1326507024  ;;  %v3642_v11 = vadd.s32 1, %v4164_v28  ;;  %vm3003_vm10 = vcmp.eq.s32.totalorder %v6996_v2, 2 }
 0x376   : > { %v3082_v54 = vshrl.u32 %v3064_v36, %v3080_v26  ;;  %v3085_v52 = vadd.s32 127, %v3084_v55  ;;  %v3571_v63 = vsel %vm3561_vm15, %v3568_v9, %v3570_v59  ;;  %v3574_v39 = vsel %vm3562_vm0, %v3556_v21, %v3573_v0 }
 0x377   : > { %v3575_v61 = vsel %vm3561_vm15, %v3572_v35, %v3574_v39  ;;  %v7057_v25 = vmul.u32.u64.low %v7011_v4, %v3571_v63  ;;  %v7058_v58 = vmul.u32.u64.high %v7011_v4, %v3571_v63, %v7057_v25  ;;  %vm3643_vm6 = vcmp.gt.s32.totalorder %v3642_v11, 0 }
 0x378   : > { %v4427_v19 = vpop.eup %4426  ;;  %v3083_v40 = vor.u32 %v3082_v54, %v3081_v41  ;;  %v3086_v13 = vshll.u32 %v3085_v52, 23  ;;  %v7062_v32 = vmul.u32.u64.low %v7011_v4, %v3575_v61  ;;  %v7063_v28 = vmul.u32.u64.high %v7011_v4, %v3575_v61, %v7062_v32 }
 0x379   : > { %v4429_v36 = vpop.eup %4428  ;;  %v3004_v50 = vxor.u32 2147483648, %v4427_v19  ;;  %v3640_v27 = vor.u32 8388608, %v7008_v18  ;;  %v3644_v15 = vsel %vm3643_vm6, %v3642_v11, 0  ;;  %v3097_v20 = vsel %vm7036_vm14, 0, %v7026_v44 }
 0x37a   : > { %v3001_v37 = vxor.u32 2147483648, %v4429_v36  ;;  %v3087_v8 = vor.u32 4788187, %v3086_v13  ;;  %v567_v42 = vadd.f32 %v7002_v16, %v7594_v29  ;;  %v3583_v14 = vmul.u32 %v7011_v4, %v3567_v43 }
 0x37b   : > { %v3005_v1 = vsel %vm3003_vm10, %v3004_v50, %v4429_v36  ;;  %v3586_v38 = vadd.s32 1, %v7058_v58  ;;  %v3646_v33 = vand.u32 31, %v3644_v15  ;;  %v3090_v24 = vcvt.s32.f32 %v3083_v40 }
 0x37c   : > { %v3002_v18 = vsel %vm3000_vm2, %v4427_v19, %v3001_v37  ;;  %v3088_v21 = vand.u32 2147483647, %v3087_v8  ;;  %vm3585_vm7 = vc.u32 %v7063_v28, %v7057_v25  ;;  %v3101_v23 = vadd.s32 3, %v3097_v20 }
 0x37d   : > { %v3006_v44 = vsel %vm2999_vm5, %v3002_v18, %v3005_v1  ;;  %v3587_v16 = vsel %vm3585_vm7, %v3586_v38, %v7058_v58  ;;  %v3647_v56 = vsub.s32 32, %v3646_v33  ;;  %v3645_v9 = vshrl.u32 %v3644_v15, 5 }
 0x37e   : > { %v3007_v4 = vsel %vm2996_vm11, nan, %v3006_v44  ;;  %v3091_v30 = vmul.f32 %v3090_v24, %v3088_v21  ;;  %v3588_v49 = vadd.s32 %v3587_v16, %v3583_v14  ;;  %v3649_v10 = vshll.u32 %v7520_v53, %v3646_v33 }
 0x37f   : > { %3967 = vst [vmem:[%s5029_s27 + $0xb0] sm:$0xff] %v3007_v4  ;;  %v3650_v26 = vshrl.u32 %v7521_v60, %v3647_v56  ;;  %v3652_v41 = vshll.u32 %v7521_v60, %v3646_v33  ;;  %v3653_v2 = vshrl.u32 %v7522_v31, %v3647_v56  ;;  %v3655_v43 = vshll.u32 %v7522_v31, %v3646_v33 }
 0x380   : > { %v3092_v55 = vxor.u32 2147483648, %v3091_v30  ;;  %v3589_v35 = vadd.s32 536870912, %v3588_v49  ;;  %v3656_v59 = vshrl.u32 %v7523_v6, %v3647_v56  ;;  %v3658_v11 = vshll.u32 %v7523_v6, %v3646_v33 }
 0x381   : > { %v3651_v46 = vor.u32 %v3650_v26, %v3649_v10  ;;  %v3654_v0 = vor.u32 %v3653_v2, %v3652_v41  ;;  %v3659_v54 = vshrl.u32 %v7524_v57, %v3647_v56  ;;  %v3662_v61 = vshrl.u32 %v7525_v3, %v3647_v56 }
 0x382   : > { %v3093_v52 = vsel %vm3010_vm12, %v3092_v55, %v3091_v30  ;;  %v3590_v63 = vshrl.u32 %v3589_v35, 30  ;;  %v3657_v39 = vor.u32 %v3656_v59, %v3655_v43  ;;  %v3661_v40 = vshll.u32 %v7524_v57, %v3646_v33 }
 0x383   : > { %v3096_v58 = vsel %vm7036_vm14, %v6808_v51, %v3093_v52  ;;  %v3660_v19 = vor.u32 %v3659_v54, %v3658_v11  ;;  %v536_v13 = vmul.f32 %v4714_v17, %v6993_v45  ;;  %v7101_v32 = vand.u32 3, %v3101_v23  ;;  %v7595_v23 = vld [vmem:[#allocation12_spill] sm:$0xff] }
 0x384   : > { %4430 = vcosq.f32 %v3096_v58  ;;  %v3591_v36 = vshll.u32 %v3590_v63, 30  ;;  %v7103_v50 = vshll.u32 %v3640_v27, 8  ;;  %v3663_v15 = vor.u32 %v3662_v61, %v3661_v40 }
 0x385   : > { %4432 = vsinq.f32 %v3096_v58  ;;  %vm3664_vm8 = vcmp.lt.s32.totalorder %v3645_v9, 1  ;;  %vm3667_vm9 = vcmp.lt.s32.totalorder %v3645_v9, 4  ;;  %v7109_v20 = vadd.f32 %v4731_v34, %v567_v42 }
 0x386   : > { %v7105_v37 = vsub.s32 %v3588_v49, %v3591_v36  ;;  %v3669_v48 = vsel %vm3667_vm9, %v3657_v39, 2102212464  ;;  %v3672_v8 = vsel %vm3664_vm8, %v3651_v46, %v3654_v0  ;;  %v3648_v45 = vshrl.u32 %v7520_v53, %v3647_v56 }
 0x387   : > { %vm3665_vm12 = vcmp.lt.s32.totalorder %v3645_v9, 2  ;;  %vm3666_vm13 = vcmp.lt.s32.totalorder %v3645_v9, 3  ;;  %v3673_v29 = vsel %vm3667_vm9, %v3660_v19, 920167782  ;;  %v3614_v1 = vsub.s32 4, %v3590_v63 }
 0x388   : > { %v3594_v27 = vsub.s32 0, %v7105_v37  ;;  %v3674_v14 = vsel %vm3666_vm13, %v3657_v39, %v3673_v29  ;;  %v3676_v38 = vsel %vm3664_vm8, %v3654_v0, %v3657_v39  ;;  %v3668_v33 = vsel %vm3664_vm8, %v3648_v45, %v3651_v46 }
 0x389   : > { %v3670_v18 = vsel %vm3666_vm13, %v3654_v0, %v3669_v48  ;;  %v3675_v21 = vsel %vm3665_vm12, %v3672_v8, %v3674_v14  ;;  %v3677_v24 = vsel %vm3667_vm9, %v3663_v15, 1326507024  ;;  %vm3530_vm14 = vcmp.lt.s32.totalorder %v6950_v12, 0 }
 0x38a   : > { %v4161_v42 = vmin.u32 %v3594_v27, %v7105_v37  ;;  %v3678_v44 = vsel %vm3666_vm13, %v3660_v19, %v3677_v24  ;;  %v568_v16 = vadd.f32 %v536_v13, %v7595_v23  ;;  %vm3100_vm15 = vweird.f32 %v6808_v51 }
 0x38b   : > { %vm7122_vm0 = vcmp.le.f32.partialorder %v3528_v22, 0.7853982  ;;  %v3679_v4 = vsel %vm3665_vm12, %v3676_v38, %v3678_v44  ;;  %v7128_v30 = vmul.u32.u64.low %v7103_v50, %v3675_v21  ;;  %v7129_v49 = vmul.u32.u64.high %v7103_v50, %v3675_v21, %v7128_v30 }
 0x38c   : > { %vm3103_vm3 = vcmp.lt.s32.totalorder %v7101_v32, 2  ;;  %v3596_v10 = vclz %v4161_v42  ;;  %v3615_v26 = vsel %vm3530_vm14, %v3614_v1, %v3590_v63  ;;  %v3671_v41 = vsel %vm3665_vm12, %v3668_v33, %v3670_v18 }
 0x38d   : > { %v7136_v2 = vmul.u32.u64.low %v7103_v50, %v3679_v4  ;;  %v7137_v22 = vmul.u32.u64.high %v7103_v50, %v3679_v4, %v7136_v2  ;;  %v3320_v55 = vand.u32 2147483647, %v7109_v20  ;;  %v3323_v35 = vand.u32 2139095040, %v7109_v20 }
 0x38e   : > { %v4431_v43 = vpop.eup %4430  ;;  %vm3104_vm1 = vcmp.eq.s32.totalorder %v7101_v32, 0  ;;  %vm3107_vm2 = vcmp.eq.s32.totalorder %v7101_v32, 2  ;;  %v4162_v59 = vadd.s32 4294967294, %v3596_v10  ;;  %v7144_v46 = vadd.f32 %v4734_v5, %v568_v16  ;;  %v7166_v32 = vpop.permute.xlu1 %495 }
 0x38f   : > { %v4433_v0 = vpop.eup %4432  ;;  %v3108_v9 = vxor.u32 2147483648, %v4431_v43  ;;  %v3584_v11 = vadd.s32 %v7057_v25, %v7063_v28  ;;  %v3690_v54 = vadd.s32 1, %v7129_v49  ;;  %v3324_v52 = vshrl.u32 %v3323_v35, 23 }
 0x390   : > { %v3105_v63 = vxor.u32 2147483648, %v4433_v0  ;;  %vm4163_vm5 = vcmp.lt.s32.totalorder %v4162_v59, 0  ;;  %v3617_v39 = vsel %vm7122_vm0, 0, %v3615_v26  ;;  %v3687_v61 = vmul.u32 %v7103_v50, %v3671_v41 }
 0x391   : > { %v3109_v58 = vsel %vm3107_vm2, %v3108_v9, %v4433_v0  ;;  %v3599_v19 = vsel %vm4163_vm5, 0, %v4162_v59  ;;  %vm3689_vm11 = vc.u32 %v7137_v22, %v7128_v30  ;;  %v3327_v40 = vand.u32 8388607, %v3320_v55 }
 0x392   : > { %v3106_v25 = vsel %vm3104_vm1, %v4431_v43, %v3105_v63  ;;  %v3600_v28 = vsub.s32 32, %v3599_v19  ;;  %v3604_v13 = vsub.s32 4294967266, %v3599_v19  ;;  %v3427_v36 = vand.u32 2139095040, %v7144_v46 }
 0x393   : > { %v3110_v15 = vsel %vm3103_vm3, %v3106_v25, %v3109_v58  ;;  %v3601_v50 = vshll.u32 %v7105_v37, %v3599_v19  ;;  %v3691_v48 = vsel %vm3689_vm11, %v3690_v54, %v7129_v49  ;;  %v4152_v8 = vadd.s32 4294967169, %v3324_v52 }
 0x394   : > { %v3111_v45 = vsel %vm3100_vm15, nan, %v3110_v15  ;;  %v3602_v29 = vshrl.u32 %v3584_v11, %v3600_v28  ;;  %v3605_v27 = vadd.s32 127, %v3604_v13  ;;  %v3692_v1 = vadd.s32 %v3691_v48, %v3687_v61 }
 0x395   : > { %3968 = vst.msk [vmem:[%s5029_s27 + $0xb8] sm:$0xff] %vm3945_vm4, %v3111_v45  ;;  %v3330_v14 = vadd.s32 1, %v4152_v8  ;;  %v3621_v18 = vadd.s32 3, %v3617_v39  ;;  %v3328_v24 = vor.u32 8388608, %v3327_v40  ;;  %v3424_v37 = vand.u32 2147483647, %v7144_v46 }
 0x396   : > { %v3603_v38 = vor.u32 %v3602_v29, %v3601_v50  ;;  %v3606_v33 = vshll.u32 %v3605_v27, 23  ;;  %v3693_v21 = vadd.s32 536870912, %v3692_v1  ;;  %v3428_v23 = vshrl.u32 %v3427_v36, 23 }
 0x397   : > { %vm3331_vm6 = vcmp.gt.s32.totalorder %v3330_v14, 0  ;;  %v7171_v4 = vmul.f32 %v4698_v62, %v7166_v32  ;;  %v7173_v26 = vand.u32 3, %v3621_v18  ;;  %vm3634_vm10 = vcmp.lt.s32.totalorder %v6973_v7, 0 }
 0x398   : > { %v3607_v42 = vor.u32 4788187, %v3606_v33  ;;  %v3694_v44 = vshrl.u32 %v3693_v21, 30  ;;  %v3332_v51 = vsel %vm3331_vm6, %v3330_v14, 0  ;;  %v3610_v10 = vcvt.s32.f32 %v3603_v38 }
 0x399   : > { %v3334_v16 = vand.u32 31, %v3332_v51  ;;  %v7177_v2 = vadd.s32 %v7128_v30, %v7137_v22  ;;  %v7179_v43 = vshll.u32 %v3328_v24, 8  ;;  %v7183_v59 = vand.u32 8388607, %v3424_v37 }
 0x39a   : > { %v3608_v49 = vand.u32 2147483647, %v3607_v42  ;;  %v3695_v41 = vshll.u32 %v3694_v44, 30  ;;  %v7187_v9 = vshrl.u32 %v3332_v51, 5  ;;  %v4156_v11 = vadd.s32 4294967169, %v3428_v23 }
 0x39b   : > { %v3335_v35 = vsub.s32 32, %v3334_v16  ;;  %v3718_v54 = vsub.s32 4, %v3694_v44  ;;  %v3337_v52 = vshll.u32 %v7520_v53, %v3334_v16  ;;  %v3340_v61 = vshll.u32 %v7521_v60, %v3334_v16 }
 0x39c   : > { %v3611_v0 = vmul.f32 %v3610_v10, %v3608_v49  ;;  %v7185_v62 = vsub.s32 %v3692_v1, %v3695_v41  ;;  %v3343_v40 = vshll.u32 %v7522_v31, %v3334_v16  ;;  %v3346_v25 = vshll.u32 %v7523_v6, %v3334_v16 }
 0x39d   : > { %v3338_v63 = vshrl.u32 %v7521_v60, %v3335_v35  ;;  %v3341_v30 = vshrl.u32 %v7522_v31, %v3335_v35  ;;  %v3344_v58 = vshrl.u32 %v7523_v6, %v3335_v35  ;;  %v3347_v28 = vshrl.u32 %v7524_v57, %v3335_v35 }
 0x39e   : > { %v3612_v22 = vxor.u32 2147483648, %v3611_v0  ;;  %v3698_v39 = vsub.s32 0, %v7185_v62  ;;  %v3349_v50 = vshll.u32 %v7524_v57, %v3334_v16  ;;  %v3350_v29 = vshrl.u32 %v7525_v3, %v3335_v35 }
 0x39f   : > { %v3339_v19 = vor.u32 %v3338_v63, %v3337_v52  ;;  %v3342_v15 = vor.u32 %v3341_v30, %v3340_v61  ;;  %v3345_v8 = vor.u32 %v3344_v58, %v3343_v40  ;;  %v3348_v45 = vor.u32 %v3347_v28, %v3346_v25  ;;  %v7600_v25 = vld [vmem:[#allocation15_spill] sm:$0xff] }
 0x3a0   : > { %v3613_v13 = vsel %vm3530_vm14, %v3612_v22, %v3611_v0  ;;  %v4165_v36 = vmin.u32 %v3698_v39, %v7185_v62  ;;  %v3432_v1 = vor.u32 8388608, %v7183_v59  ;;  %v3434_v14 = vadd.s32 1, %v4156_v11 }
 0x3a1   : > { %v3616_v48 = vsel %vm7122_vm0, %v6950_v12, %v3613_v13  ;;  %vm7209_vm7 = vcmp.le.f32.partialorder %v3632_v47, 0.7853982  ;;  %v3719_v56 = vsel %vm3634_vm10, %v3718_v54, %v3694_v44  ;;  %v3336_v33 = vshrl.u32 %v7520_v53, %v3335_v35 }
 0x3a2   : > { %4434 = vcosq.f32 %v3616_v48  ;;  %v3700_v27 = vclz %v4165_v36  ;;  %v3351_v18 = vor.u32 %v3350_v29, %v3349_v50  ;;  %vm3352_vm8 = vcmp.lt.s32.totalorder %v7187_v9, 1 }
 0x3a3   : > { %4436 = vsinq.f32 %v3616_v48  ;;  %vm3354_vm9 = vcmp.lt.s32.totalorder %v7187_v9, 3  ;;  %vm3355_vm12 = vcmp.lt.s32.totalorder %v7187_v9, 4  ;;  %v3360_v42 = vsel %vm3352_vm8, %v3339_v19, %v3342_v15 }
 0x3a4   : > { %v4166_v21 = vadd.s32 4294967294, %v3700_v27  ;;  %v3357_v24 = vsel %vm3355_vm12, %v3345_v8, 2102212464  ;;  %v3361_v51 = vsel %vm3355_vm12, %v3348_v45, 920167782  ;;  %v3364_v47 = vsel %vm3352_vm8, %v3342_v15, %v3345_v8 }
 0x3a5   : > { %vm3627_vm13 = vcmp.eq.s32.totalorder %v7173_v26, 2  ;;  %vm3353_vm15 = vcmp.lt.s32.totalorder %v7187_v9, 2  ;;  %v3362_v44 = vsel %vm3354_vm9, %v3345_v8, %v3361_v51  ;;  %v3365_v23 = vsel %vm3355_vm12, %v3351_v18, 1326507024 }
 0x3a6   : > { %vm4167_vm14 = vcmp.lt.s32.totalorder %v4166_v21, 0  ;;  %vm3624_vm0 = vcmp.eq.s32.totalorder %v7173_v26, 0  ;;  %v3356_v49 = vsel %vm3352_vm8, %v3336_v33, %v3339_v19  ;;  %v3363_v10 = vsel %vm3353_vm15, %v3360_v42, %v3362_v44 }
 0x3a7   : > { %v3703_v16 = vsel %vm4167_vm14, 0, %v4166_v21  ;;  %v3366_v41 = vsel %vm3354_vm9, %v3348_v45, %v3365_v23  ;;  %vm3623_vm3 = vcmp.lt.s32.totalorder %v7173_v26, 2  ;;  %v3358_v0 = vsel %vm3354_vm9, %v3342_v15, %v3357_v24 }
 0x3a8   : > { %v3704_v35 = vsub.s32 32, %v3703_v16  ;;  %v3708_v59 = vsub.s32 4294967266, %v3703_v16  ;;  %v3367_v11 = vsel %vm3353_vm15, %v3364_v47, %v3366_v41  ;;  %vm3620_vm1 = vweird.f32 %v6950_v12 }
 0x3a9   : > { %v7235_v54 = vmul.u32.u64.low %v7179_v43, %v3367_v11  ;;  %v7236_v52 = vmul.u32.u64.high %v7179_v43, %v3367_v11, %v7235_v54  ;;  %v7239_v63 = vmul.u32.u64.low %v7179_v43, %v3363_v10  ;;  %v7240_v30 = vmul.u32.u64.high %v7179_v43, %v3363_v10, %v7239_v63 }
 0x3aa   : > { %v3705_v22 = vshll.u32 %v7185_v62, %v3703_v16  ;;  %v3706_v39 = vshrl.u32 %v7177_v2, %v3704_v35  ;;  %v3709_v61 = vadd.s32 127, %v3708_v59  ;;  %vm3435_vm2 = vcmp.gt.s32.totalorder %v3434_v14, 0 }
 0x3ab   : > { %v3359_v58 = vsel %vm3353_vm15, %v3356_v49, %v3358_v0  ;;  %v3436_v19 = vsel %vm3435_vm2, %v3434_v14, 0  ;;  %v540_v40 = vmul.f32 %v4714_v17, %v7166_v32  ;;  %v571_v28 = vadd.f32 %v7171_v4, %v7600_v25 }
 0x3ac   : > { %v4435_v13 = vpop.eup %4434  ;;  %v3707_v36 = vor.u32 %v3706_v39, %v3705_v22  ;;  %v3710_v15 = vshll.u32 %v3709_v61, 23  ;;  %v3721_v62 = vsel %vm7209_vm7, 0, %v3719_v56  ;;  %v3438_v50 = vand.u32 31, %v3436_v19  ;;  %v7601_v56 = vld [vmem:[#allocation16_spill] sm:$0xff] }
 0x3ad   : > { %v4437_v2 = vpop.eup %4436  ;;  %v3628_v48 = vxor.u32 2147483648, %v4435_v13  ;;  %vm3377_vm5 = vc.u32 %v7236_v52, %v7239_v63  ;;  %v3378_v9 = vadd.s32 1, %v7240_v30  ;;  %v7256_v8 = vshll.u32 %v3432_v1, 8 }
 0x3ae   : > { %v3625_v17 = vxor.u32 2147483648, %v4437_v2  ;;  %v3711_v32 = vor.u32 4788187, %v3710_v15  ;;  %v3375_v4 = vmul.u32 %v7179_v43, %v3359_v58  ;;  %v3439_v45 = vsub.s32 32, %v3438_v50 }
 0x3af   : > { %v3629_v29 = vsel %vm3627_vm13, %v3628_v48, %v4437_v2  ;;  %v3725_v27 = vadd.s32 3, %v3721_v62  ;;  %v3379_v14 = vsel %vm3377_vm5, %v3378_v9, %v7240_v30  ;;  %v7263_v33 = vadd.f32 %v540_v40, %v7601_v56 }
 0x3b0   : > { %v3626_v18 = vsel %vm3624_vm0, %v4435_v13, %v3625_v17  ;;  %v3712_v1 = vand.u32 2147483647, %v3711_v32  ;;  %v3714_v21 = vcvt.s32.f32 %v3707_v36  ;;  %v3380_v24 = vadd.s32 %v3379_v14, %v3375_v4 }
 0x3b1   : > { %v3630_v43 = vsel %vm3623_vm3, %v3626_v18, %v3629_v29  ;;  %v3441_v42 = vshll.u32 %v7520_v53, %v3438_v50  ;;  %v3442_v51 = vshrl.u32 %v7521_v60, %v3439_v45  ;;  %v3445_v47 = vshrl.u32 %v7522_v31, %v3439_v45 }
 0x3b2   : > { %v3631_v44 = vsel %vm3620_vm1, nan, %v3630_v43  ;;  %v3715_v23 = vmul.f32 %v3714_v21, %v3712_v1  ;;  %v3381_v16 = vadd.s32 536870912, %v3380_v24  ;;  %v3448_v49 = vshrl.u32 %v7523_v6, %v3439_v45 }
 0x3b3   : > { %3973 = vst [vmem:[%s5029_s27 + $0xe0] sm:$0xff] %v3631_v44  ;;  %v3437_v10 = vshrl.u32 %v3436_v19, 5  ;;  %v3444_v41 = vshll.u32 %v7521_v60, %v3438_v50  ;;  %v3447_v26 = vshll.u32 %v7522_v31, %v3438_v50  ;;  %v3451_v35 = vshrl.u32 %v7524_v57, %v3439_v45 }
 0x3b4   : > { %v3716_v59 = vxor.u32 2147483648, %v3715_v23  ;;  %v3382_v0 = vshrl.u32 %v3381_v16, 30  ;;  %v3443_v11 = vor.u32 %v3442_v51, %v3441_v42  ;;  %v3450_v54 = vshll.u32 %v7523_v6, %v3438_v50 }
 0x3b5   : > { %v3446_v30 = vor.u32 %v3445_v47, %v3444_v41  ;;  %v3449_v12 = vor.u32 %v3448_v49, %v3447_v26  ;;  %v3453_v22 = vshll.u32 %v7524_v57, %v3438_v50  ;;  %v3454_v39 = vshrl.u32 %v7525_v3, %v3439_v45 }
 0x3b6   : > { %v3717_v61 = vsel %vm3634_vm10, %v3716_v59, %v3715_v23  ;;  %v7284_v58 = vand.u32 3, %v3725_v27  ;;  %v3383_v19 = vshll.u32 %v3382_v0, 30  ;;  %v3452_v40 = vor.u32 %v3451_v35, %v3450_v54 }
 0x3b7   : > { %v3720_v25 = vsel %vm7209_vm7, %v6973_v7, %v3717_v61  ;;  %v3440_v13 = vshrl.u32 %v7520_v53, %v3439_v45  ;;  %v3455_v36 = vor.u32 %v3454_v39, %v3453_v22  ;;  %v7291_v15 = vadd.f32 %v4731_v34, %v571_v28 }
 0x3b8   : > { %4438 = vcosq.f32 %v3720_v25  ;;  %v7293_v62 = vsub.s32 %v3380_v24, %v3383_v19  ;;  %vm3456_vm11 = vcmp.lt.s32.totalorder %v3437_v10, 1  ;;  %vm3459_vm6 = vcmp.lt.s32.totalorder %v3437_v10, 4 }
 0x3b9   : > { %4440 = vsinq.f32 %v3720_v25  ;;  %vm3457_vm10 = vcmp.lt.s32.totalorder %v3437_v10, 2  ;;  %v3461_v50 = vsel %vm3459_vm6, %v3449_v12, 2102212464  ;;  %v3464_v2 = vsel %vm3456_vm11, %v3443_v11, %v3446_v30 }
 0x3ba   : > { %v3386_v48 = vsub.s32 0, %v7293_v62  ;;  %v3406_v9 = vsub.s32 4, %v3382_v0  ;;  %vm3458_vm8 = vcmp.lt.s32.totalorder %v3437_v10, 3  ;;  %v3465_v38 = vsel %vm3459_vm6, %v3452_v40, 920167782 }
 0x3bb   : > { %v3460_v17 = vsel %vm3456_vm11, %v3440_v13, %v3443_v11  ;;  %v3466_v32 = vsel %vm3458_vm8, %v3449_v12, %v3465_v38  ;;  %v3468_v4 = vsel %vm3456_vm11, %v3446_v30, %v3449_v12  ;;  %v3469_v45 = vsel %vm3459_vm6, %v3455_v36, 1326507024 }
 0x3bc   : > { %v4153_v34 = vmin.u32 %v3386_v48, %v7293_v62  ;;  %v3462_v28 = vsel %vm3458_vm8, %v3446_v30, %v3461_v50  ;;  %v3467_v29 = vsel %vm3457_vm10, %v3464_v2, %v3466_v32  ;;  %v3470_v27 = vsel %vm3458_vm8, %v3452_v40, %v3469_v45 }
 0x3bd   : > { %v3471_v14 = vsel %vm3457_vm10, %v3468_v4, %v3470_v27  ;;  %v7300_v56 = vmul.u32.u64.low %v7256_v8, %v3467_v29  ;;  %v7301_v18 = vmul.u32.u64.high %v7256_v8, %v3467_v29, %v7300_v56  ;;  %vm7306_vm7 = vcmp.le.f32.partialorder %v3320_v55, 0.7853982 }
 0x3be   : > { %vm3322_vm9 = vcmp.lt.s32.totalorder %v7109_v20, 0  ;;  %v3388_v21 = vclz %v4153_v34  ;;  %v3463_v43 = vsel %vm3457_vm10, %v3460_v17, %v3462_v28  ;;  %vm3727_vm12 = vcmp.lt.s32.totalorder %v7284_v58, 2 }
 0x3bf   : > { %v3407_v24 = vsel %vm3322_vm9, %v3406_v9, %v3382_v0  ;;  %v7315_v42 = vmul.u32.u64.low %v7256_v8, %v3471_v14  ;;  %v7316_v51 = vmul.u32.u64.high %v7256_v8, %v3471_v14, %v7315_v42  ;;  %v7321_v55 = vadd.f32 %v4734_v5, %v7263_v33 }
 0x3c0   : > { %v4154_v47 = vadd.s32 4294967294, %v3388_v21  ;;  %v3739_v44 = vand.u32 2139095040, %v7291_v15  ;;  %vm3728_vm13 = vcmp.eq.s32.totalorder %v7284_v58, 0  ;;  %vm3731_vm14 = vcmp.eq.s32.totalorder %v7284_v58, 2 }
 0x3c1   : > { %v3376_v23 = vadd.s32 %v7239_v63, %v7236_v52  ;;  %v3482_v16 = vadd.s32 1, %v7301_v18  ;;  %v3409_v10 = vsel %vm7306_vm7, 0, %v3407_v24  ;;  %v3479_v41 = vmul.u32 %v7256_v8, %v3463_v43 }
 0x3c2   : > { %v4439_v49 = vpop.eup %4438  ;;  %vm4155_vm15 = vcmp.lt.s32.totalorder %v4154_v47, 0  ;;  %v3740_v5 = vshrl.u32 %v3739_v44, 23  ;;  %vm3481_vm0 = vc.u32 %v7316_v51, %v7300_v56  ;;  %v3736_v59 = vand.u32 2147483647, %v7291_v15 }
 0x3c3   : > { %v4441_v33 = vpop.eup %4440  ;;  %v3732_v26 = vxor.u32 2147483648, %v4439_v49  ;;  %v3391_v35 = vsel %vm4155_vm15, 0, %v4154_v47  ;;  %v3843_v11 = vand.u32 2139095040, %v7321_v55  ;;  %v3483_v30 = vsel %vm3481_vm0, %v3482_v16, %v7301_v18 }
 0x3c4   : > { %v3729_v0 = vxor.u32 2147483648, %v4441_v33  ;;  %v3392_v52 = vsub.s32 32, %v3391_v35  ;;  %v3396_v63 = vsub.s32 4294967266, %v3391_v35  ;;  %v3393_v8 = vshll.u32 %v7293_v62, %v3391_v35 }
 0x3c5   : > { %v3733_v54 = vsel %vm3731_vm14, %v3732_v26, %v4441_v33  ;;  %v4168_v12 = vadd.s32 4294967169, %v3740_v5  ;;  %v3484_v19 = vadd.s32 %v3483_v30, %v3479_v41  ;;  %vm3724_vm3 = vweird.f32 %v6973_v7 }
 0x3c6   : > { %v3730_v22 = vsel %vm3728_vm13, %v4439_v49, %v3729_v0  ;;  %v3394_v39 = vshrl.u32 %v3376_v23, %v3392_v52  ;;  %v3397_v61 = vadd.s32 127, %v3396_v63  ;;  %v3413_v62 = vadd.s32 3, %v3409_v10 }
 0x3c7   : > { %v3734_v40 = vsel %vm3727_vm12, %v3730_v22, %v3733_v54  ;;  %v3746_v25 = vadd.s32 1, %v4168_v12  ;;  %v3485_v2 = vadd.s32 536870912, %v3484_v19  ;;  %v3743_v48 = vand.u32 8388607, %v3736_v59 }
 0x3c8   : > { %v3735_v13 = vsel %vm3724_vm3, nan, %v3734_v40  ;;  %v3395_v36 = vor.u32 %v3394_v39, %v3393_v8  ;;  %v3398_v50 = vshll.u32 %v3397_v61, 23  ;;  %v3844_v7 = vshrl.u32 %v3843_v11, 23 }
 0x3c9   : > { %3974 = vst.msk [vmem:[%s5029_s27 + $0xe8] sm:$0xff] %vm3945_vm4, %v3735_v13  ;;  %vm3747_vm1 = vcmp.gt.s32.totalorder %v3746_v25, 0  ;;  %v7349_v38 = vshrl.u32 %v3485_v2, 30  ;;  %v7352_v34 = vand.u32 3, %v3413_v62  ;;  %v3744_v28 = vor.u32 8388608, %v3743_v48 }
 0x3ca   : > { %v3399_v9 = vor.u32 4788187, %v3398_v50  ;;  %v3748_v17 = vsel %vm3747_vm1, %v3746_v25, 0  ;;  %v3402_v4 = vcvt.s32.f32 %v3395_v36  ;;  %v3840_v27 = vand.u32 2147483647, %v7321_v55 }
 0x3cb   : > { %v3750_v32 = vand.u32 31, %v3748_v17  ;;  %v3487_v45 = vshll.u32 %v7349_v38, 30  ;;  %v3480_v18 = vadd.s32 %v7300_v56, %v7316_v51  ;;  %v4172_v24 = vadd.s32 4294967169, %v3844_v7 }
 0x3cc   : > { %v3400_v58 = vand.u32 2147483647, %v3399_v9  ;;  %v3749_v43 = vshrl.u32 %v3748_v17, 5  ;;  %v7376_v30 = vshll.u32 %v3744_v28, 8  ;;  %v3510_v22 = vsub.s32 4, %v7349_v38 }
 0x3cd   : > { %v3751_v29 = vsub.s32 32, %v3750_v32  ;;  %v7357_v21 = vsub.s32 %v3484_v19, %v3487_v45  ;;  %v3753_v42 = vshll.u32 %v7520_v53, %v3750_v32  ;;  %v3756_v49 = vshll.u32 %v7521_v60, %v3750_v32 }
 0x3ce   : > { %v3403_v14 = vmul.f32 %v3402_v4, %v3400_v58  ;;  %v3759_v56 = vshll.u32 %v7522_v31, %v3750_v32  ;;  %v3762_v51 = vshll.u32 %v7523_v6, %v3750_v32  ;;  %v3765_v0 = vshll.u32 %v7524_v57, %v3750_v32 }
 0x3cf   : > { %v3754_v47 = vshrl.u32 %v7521_v60, %v3751_v29  ;;  %v3757_v44 = vshrl.u32 %v7522_v31, %v3751_v29  ;;  %v3490_v16 = vsub.s32 0, %v7357_v21  ;;  %v3760_v10 = vshrl.u32 %v7523_v6, %v3751_v29 }
 0x3d0   : > { %v3404_v23 = vxor.u32 2147483648, %v3403_v14  ;;  %v3763_v5 = vshrl.u32 %v7524_v57, %v3751_v29  ;;  %v3766_v54 = vshrl.u32 %v7525_v3, %v3751_v29  ;;  %v3850_v12 = vadd.s32 1, %v4172_v24 }
 0x3d1   : > { %v3755_v41 = vor.u32 %v3754_v47, %v3753_v42  ;;  %v4157_v26 = vmin.u32 %v3490_v16, %v7357_v21  ;;  %v3758_v35 = vor.u32 %v3757_v44, %v3756_v49  ;;  %v3761_v63 = vor.u32 %v3760_v10, %v3759_v56 }
 0x3d2   : > { %v3405_v33 = vsel %vm3322_vm9, %v3404_v23, %v3403_v14  ;;  %v3764_v11 = vor.u32 %v3763_v5, %v3762_v51  ;;  %v3752_v39 = vshrl.u32 %v7520_v53, %v3751_v29  ;;  %v3767_v61 = vor.u32 %v3766_v54, %v3765_v0 }
 0x3d3   : > { %v3408_v52 = vsel %vm7306_vm7, %v7109_v20, %v3405_v33  ;;  %v3492_v8 = vclz %v4157_v26  ;;  %vm3426_vm2 = vcmp.lt.s32.totalorder %v7144_v46, 0  ;;  %vm3768_vm5 = vcmp.lt.s32.totalorder %v3749_v43, 1 }
 0x3d4   : > { %4442 = vcosq.f32 %v3408_v52  ;;  %vm3770_vm11 = vcmp.lt.s32.totalorder %v3749_v43, 3  ;;  %vm3771_vm6 = vcmp.lt.s32.totalorder %v3749_v43, 4  ;;  %v3776_v40 = vsel %vm3768_vm5, %v3755_v41, %v3758_v35 }
 0x3d5   : > { %4444 = vsinq.f32 %v3408_v52  ;;  %v4158_v19 = vadd.s32 4294967294, %v3492_v8  ;;  %v3773_v1 = vsel %vm3771_vm6, %v3761_v63, 2102212464  ;;  %v3777_v25 = vsel %vm3771_vm6, %v3764_v11, 920167782 }
 0x3d6   : > { %v3780_v13 = vsel %vm3768_vm5, %v3758_v35, %v3761_v63  ;;  %vm3769_vm8 = vcmp.lt.s32.totalorder %v3749_v43, 2  ;;  %v3778_v36 = vsel %vm3770_vm11, %v3761_v63, %v3777_v25  ;;  %v3781_v50 = vsel %vm3771_vm6, %v3767_v61, 1326507024 }
 0x3d7   : > { %vm4159_vm10 = vcmp.lt.s32.totalorder %v4158_v19, 0  ;;  %v3772_v62 = vsel %vm3768_vm5, %v3752_v39, %v3755_v41  ;;  %v3779_v48 = vsel %vm3769_vm8, %v3776_v40, %v3778_v36  ;;  %v3782_v9 = vsel %vm3770_vm11, %v3764_v11, %v3781_v50 }
 0x3d8   : > { %v3495_v2 = vsel %vm4159_vm10, 0, %v4158_v19  ;;  %vm7386_vm7 = vcmp.le.f32.partialorder %v3424_v37, 0.7853982  ;;  %v3774_v58 = vsel %vm3770_vm11, %v3758_v35, %v3773_v1  ;;  %v3783_v4 = vsel %vm3769_vm8, %v3780_v13, %v3782_v9 }
 0x3d9   : > { %v3496_v7 = vsub.s32 32, %v3495_v2  ;;  %v3500_v32 = vsub.s32 4294967266, %v3495_v2  ;;  %vm3412_vm9 = vweird.f32 %v7109_v20  ;;  %v3497_v37 = vshll.u32 %v7357_v21, %v3495_v2 }
 0x3da   : > { %v7394_v45 = vmul.u32.u64.low %v7376_v30, %v3783_v4  ;;  %v7395_v28 = vmul.u32.u64.high %v7376_v30, %v3783_v4, %v7394_v45  ;;  %v7398_v29 = vmul.u32.u64.low %v7376_v30, %v3779_v48  ;;  %v7399_v14 = vmul.u32.u64.high %v7376_v30, %v3779_v48, %v7398_v29 }
 0x3db   : > { %v3498_v24 = vshrl.u32 %v3480_v18, %v3496_v7  ;;  %v3501_v42 = vadd.s32 127, %v3500_v32  ;;  %vm3851_vm12 = vcmp.gt.s32.totalorder %v3850_v12, 0  ;;  %vm3415_vm13 = vcmp.lt.s32.totalorder %v7352_v34, 2 }
 0x3dc   : > { %v3775_v47 = vsel %vm3769_vm8, %v3772_v62, %v3774_v58  ;;  %v3847_v44 = vand.u32 8388607, %v3840_v27  ;;  %v3852_v23 = vsel %vm3851_vm12, %v3850_v12, 0  ;;  %vm3419_vm14 = vcmp.eq.s32.totalorder %v7352_v34, 2 }
 0x3dd   : > { %v3499_v49 = vor.u32 %v3498_v24, %v3497_v37  ;;  %v3502_v10 = vshll.u32 %v3501_v42, 23  ;;  %v3854_v41 = vand.u32 31, %v3852_v23  ;;  %v3511_v18 = vsel %vm3426_vm2, %v3510_v22, %v7349_v38 }
 0x3de   : > { %v4443_v16 = vpop.eup %4442  ;;  %vm3793_vm15 = vc.u32 %v7395_v28, %v7398_v29  ;;  %v3794_v21 = vadd.s32 1, %v7399_v14  ;;  %v3791_v33 = vmul.u32 %v7376_v30, %v3775_v47  ;;  %vm3416_vm0 = vcmp.eq.s32.totalorder %v7352_v34, 0 }
 0x3df   : > { %v4445_v56 = vpop.eup %4444  ;;  %v3420_v51 = vxor.u32 2147483648, %v4443_v16  ;;  %v3503_v5 = vor.u32 4788187, %v3502_v10  ;;  %v3855_v26 = vsub.s32 32, %v3854_v41  ;;  %v3848_v52 = vor.u32 8388608, %v3847_v44 }
 0x3e0   : > { %v3417_v43 = vxor.u32 2147483648, %v4445_v56  ;;  %v3795_v0 = vsel %vm3793_vm15, %v3794_v21, %v7399_v14  ;;  %v3506_v38 = vcvt.s32.f32 %v3499_v49  ;;  %v3513_v12 = vsel %vm7386_vm7, 0, %v3511_v18 }
 0x3e1   : > { %v3421_v35 = vsel %vm3419_vm14, %v3420_v51, %v4445_v56  ;;  %v3504_v11 = vand.u32 2147483647, %v3503_v5  ;;  %v3796_v54 = vadd.s32 %v3795_v0, %v3791_v33  ;;  %v3858_v30 = vshrl.u32 %v7521_v60, %v3855_v26 }
 0x3e2   : > { %v3418_v63 = vsel %vm3416_vm0, %v4443_v16, %v3417_v43  ;;  %v3861_v22 = vshrl.u32 %v7522_v31, %v3855_v26  ;;  %v3853_v1 = vshrl.u32 %v3852_v23, 5  ;;  %v3857_v40 = vshll.u32 %v7520_v53, %v3854_v41 }
 0x3e3   : > { %v3422_v8 = vsel %vm3415_vm13, %v3418_v63, %v3421_v35  ;;  %v3507_v61 = vmul.f32 %v3506_v38, %v3504_v11  ;;  %v3797_v19 = vadd.s32 536870912, %v3796_v54  ;;  %v3860_v25 = vshll.u32 %v7521_v60, %v3854_v41 }
 0x3e4   : > { %v3423_v39 = vsel %vm3412_vm9, nan, %v3422_v8  ;;  %v3864_v34 = vshrl.u32 %v7523_v6, %v3855_v26  ;;  %v3867_v13 = vshrl.u32 %v7524_v57, %v3855_v26  ;;  %v3863_v2 = vshll.u32 %v7522_v31, %v3854_v41 }
 0x3e5   : > { %3971 = vst [vmem:[%s5029_s27 + $0xd0] sm:$0xff] %v3423_v39  ;;  %v3508_v36 = vxor.u32 2147483648, %v3507_v61  ;;  %v7430_v50 = vshrl.u32 %v3797_v19, 30  ;;  %v3866_v20 = vshll.u32 %v7523_v6, %v3854_v41  ;;  %v3859_v62 = vor.u32 %v3858_v30, %v3857_v40 }
 0x3e6   : > { %v3862_v48 = vor.u32 %v3861_v22, %v3860_v25  ;;  %v3869_v9 = vshll.u32 %v7524_v57, %v3854_v41  ;;  %v3870_v7 = vshrl.u32 %v7525_v3, %v3855_v26  ;;  %v3865_v45 = vor.u32 %v3864_v34, %v3863_v2 }
 0x3e7   : > { %v3509_v60 = vsel %vm3426_vm2, %v3508_v36, %v3507_v61  ;;  %v3799_v32 = vshll.u32 %v7430_v50, 30  ;;  %v3868_v58 = vor.u32 %v3867_v13, %v3866_v20  ;;  %v3517_v6 = vadd.s32 3, %v3513_v12 }
 0x3e8   : > { %v3512_v4 = vsel %vm7386_vm7, %v7144_v46, %v3509_v60  ;;  %v3871_v31 = vor.u32 %v3870_v7, %v3869_v9  ;;  %vm3872_vm3 = vcmp.lt.s32.totalorder %v3853_v1, 1  ;;  %vm3875_vm1 = vcmp.lt.s32.totalorder %v3853_v1, 4 }
 0x3e9   : > { %4446 = vcosq.f32 %v3512_v4  ;;  %v3800_v14 = vsub.s32 %v3796_v54, %v3799_v32  ;;  %v3880_v57 = vsel %vm3872_vm3, %v3859_v62, %v3862_v48  ;;  %v3888_v3 = vshll.u32 %v3848_v52, 8 }
 0x3ea   : > { %4448 = vsinq.f32 %v3512_v4  ;;  %vm3873_vm2 = vcmp.lt.s32.totalorder %v3853_v1, 2  ;;  %vm3874_vm5 = vcmp.lt.s32.totalorder %v3853_v1, 3  ;;  %v3881_v24 = vsel %vm3875_vm1, %v3868_v58, 920167782 }
 0x3eb   : > { %v3802_v37 = vsub.s32 0, %v3800_v14  ;;  %v3877_v42 = vsel %vm3875_vm1, %v3865_v45, 2102212464  ;;  %v3882_v47 = vsel %vm3874_vm5, %v3865_v45, %v3881_v24  ;;  %v3884_v17 = vsel %vm3872_vm3, %v3862_v48, %v3865_v45 }
 0x3ec   : > { %v3885_v44 = vsel %vm3875_vm1, %v3871_v31, 1326507024  ;;  %v3856_v16 = vshrl.u32 %v7520_v53, %v3855_v26  ;;  %v3883_v49 = vsel %vm3873_vm2, %v3880_v57, %v3882_v47  ;;  %v3518_v18 = vand.u32 3, %v3517_v6 }
 0x3ed   : > { %v4169_v23 = vmin.u32 %v3802_v37, %v3800_v14  ;;  %v3886_v10 = vsel %vm3874_vm5, %v3868_v58, %v3885_v44  ;;  %v7447_v56 = vmul.u32.u64.low %v3888_v3, %v3883_v49  ;;  %v7448_v51 = vmul.u32.u64.high %v3888_v3, %v3883_v49, %v7447_v56 }
 0x3ee   : > { %v3887_v41 = vsel %vm3873_vm2, %v3884_v17, %v3886_v10  ;;  %v3876_v43 = vsel %vm3872_vm3, %v3856_v16, %v3859_v62  ;;  %v3878_v5 = vsel %vm3874_vm5, %v3862_v48, %v3877_v42  ;;  %vm3519_vm11 = vcmp.lt.s32.totalorder %v3518_v18, 2 }
 0x3ef   : > { %v3804_v21 = vclz %v4169_v23  ;;  %v7452_v33 = vmul.u32.u64.low %v3888_v3, %v3887_v41  ;;  %v7453_v35 = vmul.u32.u64.high %v3888_v3, %v3887_v41, %v7452_v33  ;;  %v3879_v53 = vsel %vm3873_vm2, %v3876_v43, %v3878_v5 }
 0x3f0   : > { %v3898_v26 = vadd.s32 1, %v7448_v51  ;;  %vm3523_vm6 = vcmp.eq.s32.totalorder %v3518_v18, 2  ;;  %v3792_v38 = vadd.s32 %v7398_v29, %v7395_v28  ;;  %v3895_v22 = vmul.u32 %v3888_v3, %v3879_v53 }
 0x3f1   : > { %v4170_v0 = vadd.s32 4294967294, %v3804_v21  ;;  %vm3897_vm8 = vc.u32 %v7453_v35, %v7447_v56  ;;  %vm3520_vm7 = vcmp.eq.s32.totalorder %v3518_v18, 0  ;;  %vm3516_vm9 = vweird.f32 %v7144_v46 }
 0x3f2   : > { %v3899_v19 = vsel %vm3897_vm8, %v3898_v26, %v7448_v51  ;;  %v3822_v32 = vsub.s32 4, %v7430_v50  ;;  %vm3738_vm12 = vcmp.lt.s32.totalorder %v7291_v15, 0  ;;  %vm3737_vm13 = vcmp.le.f32.partialorder %v3736_v59, 0.7853982 }
 0x3f3   : > { %v4447_v52 = vpop.eup %4446  ;;  %vm4171_vm10 = vcmp.lt.s32.totalorder %v4170_v0, 0  ;;  %v3900_v34 = vadd.s32 %v3899_v19, %v3895_v22  ;;  %v3896_v47 = vadd.s32 %v7447_v56, %v7453_v35  ;;  %vm3828_vm1 = vweird.f32 %v7291_v15 }
 0x3f4   : > { %v4449_v63 = vpop.eup %4448  ;;  %v3524_v11 = vxor.u32 2147483648, %v4447_v52  ;;  %v3807_v54 = vsel %vm4171_vm10, 0, %v4170_v0  ;;  %v3823_v31 = vsel %vm3738_vm12, %v3822_v32, %v7430_v50  ;;  %vm3842_vm2 = vcmp.lt.s32.totalorder %v7321_v55, 0 }
 0x3f5   : > { %v3521_v8 = vxor.u32 2147483648, %v4449_v63  ;;  %v3808_v12 = vsub.s32 32, %v3807_v54  ;;  %v3812_v30 = vsub.s32 4294967266, %v3807_v54  ;;  %v3809_v61 = vshll.u32 %v3800_v14, %v3807_v54 }
 0x3f6   : > { %v3525_v39 = vsel %vm3523_vm6, %v3524_v11, %v4449_v63  ;;  %v3901_v2 = vadd.s32 536870912, %v3900_v34  ;;  %v3825_v3 = vsel %vm3737_vm13, 0, %v3823_v31  ;;  %vm3841_vm5 = vcmp.le.f32.partialorder %v3840_v27, 0.7853982 }
 0x3f7   : > { %v3522_v1 = vsel %vm3520_vm7, %v4447_v52, %v3521_v8  ;;  %v3810_v40 = vshrl.u32 %v3792_v38, %v3808_v12  ;;  %v3813_v25 = vadd.s32 127, %v3812_v30  ;;  %v3829_v24 = vadd.s32 3, %v3825_v3 }
 0x3f8   : > { %v3526_v28 = vsel %vm3519_vm11, %v3522_v1, %v3525_v39  ;;  %v3902_v62 = vshrl.u32 %v3901_v2, 30  ;;  %vm3932_vm8 = vweird.f32 %v7321_v55 }
 0x3f9   : > { %v3527_v29 = vsel %vm3516_vm9, nan, %v3526_v28  ;;  %v3811_v13 = vor.u32 %v3810_v40, %v3809_v61  ;;  %v3814_v36 = vshll.u32 %v3813_v25, 23  ;;  %v3830_v59 = vand.u32 3, %v3829_v24 }
 0x3fa   : > { %3972 = vst.msk [vmem:[%s5029_s27 + $0xd8] sm:$0xff] %vm3945_vm4, %v3527_v29  ;;  %v3903_v7 = vshll.u32 %v3902_v62, 30  ;;  %v3926_v52 = vsub.s32 4, %v3902_v62 }
 0x3fb   : > { %v3815_v20 = vor.u32 4788187, %v3814_v36  ;;  %v3818_v9 = vcvt.s32.f32 %v3811_v13  ;;  %vm3835_vm15 = vcmp.eq.s32.totalorder %v3830_v59, 2  ;;  %vm3832_vm0 = vcmp.eq.s32.totalorder %v3830_v59, 0 }
 0x3fc   : > { %v3904_v58 = vsub.s32 %v3900_v34, %v3903_v7  ;;  %vm3831_vm3 = vcmp.lt.s32.totalorder %v3830_v59, 2  ;;  %v3927_v38 = vsel %vm3842_vm2, %v3926_v52, %v3902_v62 }
 0x3fd   : > { %v3816_v48 = vand.u32 2147483647, %v3815_v20  ;;  %v3929_v8 = vsel %vm3841_vm5, 0, %v3927_v38 }
 0x3fe   : > { %v3906_v45 = vsub.s32 0, %v3904_v58 }
 0x3ff   : > { %v3819_v60 = vmul.f32 %v3818_v9, %v3816_v48 }
 0x400   : > { %v4173_v6 = vmin.u32 %v3906_v45, %v3904_v58 }
 0x401   : > { %v3820_v4 = vxor.u32 2147483648, %v3819_v60 }
 0x402   : > { %v3908_v57 = vclz %v4173_v6 }
 0x403   : > { %v3821_v46 = vsel %vm3738_vm12, %v3820_v4, %v3819_v60 }
 0x404   : > { %v3824_v14 = vsel %vm3737_vm13, %v7291_v15, %v3821_v46  ;;  %v4174_v37 = vadd.s32 4294967294, %v3908_v57  ;;  %v3933_v15 = vadd.s32 3, %v3929_v8 }
 0x405   : > { %4450 = vcosq.f32 %v3824_v14 }
 0x406   : > { %4452 = vsinq.f32 %v3824_v14  ;;  %vm4175_vm14 = vcmp.lt.s32.totalorder %v4174_v37, 0  ;;  %v3934_v12 = vand.u32 3, %v3933_v15 }
 0x407   : > { %v3911_v42 = vsel %vm4175_vm14, 0, %v4174_v37 }
 0x408   : > { %v3912_v17 = vsub.s32 32, %v3911_v42  ;;  %v3916_v44 = vsub.s32 4294967266, %v3911_v42  ;;  %v3913_v23 = vshll.u32 %v3904_v58, %v3911_v42  ;;  %vm3939_vm11 = vcmp.eq.s32.totalorder %v3934_v12, 2 }
 0x409   : > { %vm3936_vm6 = vcmp.eq.s32.totalorder %v3934_v12, 0  ;;  %vm3935_vm10 = vcmp.lt.s32.totalorder %v3934_v12, 2 }
 0x40a   : > { %v3914_v16 = vshrl.u32 %v3896_v47, %v3912_v17  ;;  %v3917_v50 = vadd.s32 127, %v3916_v44 }
 0x40c   : > { %v3915_v10 = vor.u32 %v3914_v16, %v3913_v23  ;;  %v3918_v41 = vshll.u32 %v3917_v50, 23 }
 0x40e   : > { %v3919_v43 = vor.u32 4788187, %v3918_v41  ;;  %v3922_v35 = vcvt.s32.f32 %v3915_v10 }
 0x40f   : > { %v4451_v49 = vpop.eup %4450 }
 0x410   : > { %v4453_v51 = vpop.eup %4452  ;;  %v3836_v18 = vxor.u32 2147483648, %v4451_v49  ;;  %v3920_v56 = vand.u32 2147483647, %v3919_v43 }
 0x411   : > { %v3833_v21 = vxor.u32 2147483648, %v4453_v51 }
 0x412   : > { %v3837_v5 = vsel %vm3835_vm15, %v3836_v18, %v4453_v51  ;;  %v3923_v26 = vmul.f32 %v3922_v35, %v3920_v56 }
 0x413   : > { %v3834_v33 = vsel %vm3832_vm0, %v4451_v49, %v3833_v21 }
 0x414   : > { %v3838_v0 = vsel %vm3831_vm3, %v3834_v33, %v3837_v5  ;;  %v3924_v63 = vxor.u32 2147483648, %v3923_v26 }
 0x415   : > { %v3839_v53 = vsel %vm3828_vm1, nan, %v3838_v0 }
 0x416   : > { %3975 = vst [vmem:[%s5029_s27 + $0xf0] sm:$0xff] %v3839_v53  ;;  %v3925_v11 = vsel %vm3842_vm2, %v3924_v63, %v3923_v26 }
 0x417   : > { %v3928_v54 = vsel %vm3841_vm5, %v7321_v55, %v3925_v11 }
 0x418   : > { %4454 = vcosq.f32 %v3928_v54 }
 0x419   : > { %4456 = vsinq.f32 %v3928_v54 }
 0x422   : > { %v4455_v30 = vpop.eup %4454 }
 0x423   : > { %v4457_v22 = vpop.eup %4456  ;;  %v3940_v39 = vxor.u32 2147483648, %v4455_v30 }
 0x424   : > { %v3937_v61 = vxor.u32 2147483648, %v4457_v22 }
 0x425   : > { %v3941_v19 = vsel %vm3939_vm11, %v3940_v39, %v4457_v22 }
 0x426   : > { %v3938_v1 = vsel %vm3936_vm6, %v4455_v30, %v3937_v61 }
 0x427   : > { %v3942_v27 = vsel %vm3935_vm10, %v3938_v1, %v3941_v19 }
 0x428   : > { %v3943_v40 = vsel %vm3932_vm8, nan, %v3942_v27 }
 0x429   : > { %3976 = vst.msk [vmem:[%s5029_s27 + $0xf8] sm:$0xff] %vm3945_vm4, %v3943_v40 }
 0x42a PF: > { %s12_s9 = sadd.s32 1, %s4464_s9  }
 0x42b   : > { %p9_p4 = scmp.ge.s32.totalorder %s12_s9, 6  }
 0x42d   :  { %11 = sbr.rel (!%p9_p4) target bundleno = 1 (0x1), region = 61 }

</bundles_post_ra>
